<compile_context>
chip_gen: v5e
topology: v5e:2x2
jax: 0.10.0
libtpu: 0.0.40
codegen_flags: <defaults>
</compile_context>

<pallas_src>
import functools

import jax
import jax.numpy as jnp
from jax.experimental import pallas as pl
from jax.experimental.pallas import tpu as pltpu

LANE = 128  # TPU lane width; every weight block / activation padded to this.

# Row offsets of the packed weight slab (each weight block is (LANE, LANE)).
_W_IN, _W1, _W2, _FC1, _WFUSE, _BIAS = 0, 128, 256, 384, 512, 640
_SLAB_ROWS = _BIAS + 8


# ------------------------------ fused kernel --------------------------------

def _fused_forward_kernel(x_ref, ckt_ref, cv_ref, w_ref, o_ref, *, context_size):
    f32 = jnp.float32
    x = x_ref[...]          # (B, 128)   zero-padded input features
    ckt = ckt_ref[...]      # (128, N)   candidate keys, transposed + zero-padded rows
    cv = cv_ref[...]        # (N, 128)   candidate values, zero-padded lanes

    # ---- packed weight slab: static, tile-aligned slices (no extra DMAs) ----
    w_in = w_ref[_W_IN:_W_IN + LANE, :]
    w1 = w_ref[_W1:_W1 + LANE, :]
    w2 = w_ref[_W2:_W2 + LANE, :]
    fc1w = w_ref[_FC1:_FC1 + LANE, :]
    wfuse = w_ref[_WFUSE:_WFUSE + LANE, :]      # fc2_w @ head_w  (padded)
    b_in = w_ref[_BIAS + 0:_BIAS + 1, :]
    b1 = w_ref[_BIAS + 1:_BIAS + 2, :]
    b2 = w_ref[_BIAS + 2:_BIAS + 3, :]
    fc1b = w_ref[_BIAS + 3:_BIAS + 4, :]
    bfuse = w_ref[_BIAS + 4:_BIAS + 5, :]       # fc2_b @ head_w + head_b (padded)

    # ---- encoder_query: Linear + [Linear, ReLU, Linear] (dropout=identity in eval) ----
    # TODO(synk): lib.reformer.BaseEncoder internals unavailable; modeled as
    # Linear(d_in,d_main) + [Linear(d_main,d_hidden), ReLU, Linear(d_hidden,d_main)].
    h = jnp.dot(x, w_in, preferred_element_type=f32) + b_in
    h = jnp.maximum(jnp.dot(h, w1, preferred_element_type=f32) + b1, 0.0)
    q = jnp.dot(h, w2, preferred_element_type=f32) + b2             # (B, 128)

    # ---- retrieve(): squared-L2 distance to every candidate (faiss IndexFlatL2) ----
    qsq = jnp.sum(q * q, axis=-1, keepdims=True)                    # (B, 1)
    ksq = jnp.sum(ckt * ckt, axis=0, keepdims=True)                 # (1, N)
    cross = jnp.dot(q, ckt, preferred_element_type=f32)             # (B, N)
    d2 = qsq + ksq - 2.0 * cross                                    # (B, N)

    # ---- single-pass rank-based top-K (lowest-index tie break, same as top_k) ----
    B, N = d2.shape
    d_n = d2[:, :, None]                                            # (B, N, 1)
    d_m = d2[:, None, :]                                            # (B, 1, N)
    m_idx = jax.lax.broadcasted_iota(jnp.int32, (B, N, N), 2)
    n_idx = jax.lax.broadcasted_iota(jnp.int32, (B, N, N), 1)
    beats = (d_m < d_n) | ((d_m == d_n) & (m_idx < n_idx))
    rank = jnp.sum(beats.astype(f32), axis=2)                       # (B, N)
    sel = rank < jnp.float32(context_size)

    # ---- weights = softmax(-cdist) restricted to the K selected candidates ----
    dist = jnp.sqrt(jnp.maximum(d2, 0.0))                           # torch.cdist
    logits = jnp.where(sel, -dist, jnp.float32(-1e30))
    mmax = jnp.max(logits, axis=-1, keepdims=True)
    e = jnp.exp(logits - mmax)
    wts = e / jnp.sum(e, axis=-1, keepdims=True)                    # (B, N), 0 on unselected

    # ---- blocks1[0] fc1 distributed over (query + context_v) ----
    # TODO(synk): lib.qtabformer.MLP internals unavailable; using Linear->ReLU->Linear.
    qf = jnp.dot(q, fc1w, preferred_element_type=f32) + fc1b        # (B, 128)
    cvf = jnp.dot(cv, fc1w, preferred_element_type=f32)             # (N, 128)
    p = jnp.maximum(qf[:, None, :] + cvf[None, :, :], 0.0)          # (B, N, 128)

    # ---- commute softmax-weighted sum ahead of the linear fc2/head tail ----
    pw = jnp.sum(wts[:, :, None] * p, axis=1)                       # (B, 128)

    # ---- fused fc2 ∘ head (bias scaled by sum_n w == 1); lane-dense store ----
    o_ref[...] = jnp.dot(pw, wfuse, preferred_element_type=f32) + bfuse


def _pad2(a, rows, cols):
    r, c = a.shape
    return jnp.pad(a, ((0, rows - r), (0, cols - c)))


@functools.partial(jax.jit, static_argnames=("context_size",))
def model_forward(params, x_num, candidate_k, candidate_v, *, context_size):
    enc = params["encoder_query"]
    assert len(enc["blocks"]) == 1, "fused kernel written for encoder_n_blocks == 1"
    blk = enc["blocks"][0]
    pred = params["predictor"]

    B, d_in = x_num.shape
    N, d_main = candidate_k.shape
    d_hidden = blk["w1"].shape[1]
    d_out = pred["head_w"].shape[1]
    assert max(d_in, d_main, d_hidden, d_out) <= LANE

    # Fold fc2 and head into one matmul (no nonlinearity between them).
    wfuse = pred["fc2_w"] @ pred["head_w"]                         # (d_main, d_out)
    bfuse = pred["fc2_b"] @ pred["head_w"] + pred["head_b"]        # (d_out,)

    bias_block = jnp.zeros((8, LANE), jnp.float32)
    bias_block = bias_block.at[0, :d_main].set(enc["b_in"])
    bias_block = bias_block.at[1, :d_hidden].set(blk["b1"])
    bias_block = bias_block.at[2, :d_main].set(blk["b2"])
    bias_block = bias_block.at[3, :d_main].set(pred["fc1_b"])
    bias_block = bias_block.at[4, :d_out].set(bfuse)

    # One pre-concatenated weight slab -> a single prologue DMA.
    slab = jnp.concatenate(
        [_pad2(enc["w_in"], LANE, LANE),
         _pad2(blk["w1"], LANE, LANE),
         _pad2(blk["w2"], LANE, LANE),
         _pad2(pred["fc1_w"], LANE, LANE),
         _pad2(wfuse, LANE, LANE),
         bias_block], axis=0)                                      # (648, 128)

    x_pad = jnp.pad(x_num, ((0, 0), (0, LANE - d_in)))             # (B, 128)
    ckt_pad = jnp.pad(candidate_k.T, ((0, LANE - d_main), (0, 0))) # (128, N) pre-transposed
    cv_pad = jnp.pad(candidate_v, ((0, 0), (0, LANE - d_main)))    # (N, 128)

    vmem = pl.BlockSpec(memory_space=pltpu.MemorySpace.VMEM)
    flops = 2 * (3 * B * LANE * LANE            # encoder
                 + B * LANE * N                 # cross term
                 + (B + N) * LANE * LANE        # distributed fc1
                 + 2 * B * N * LANE             # weighted sum
                 + B * LANE * LANE)             # fused fc2∘head
    bytes_accessed = 4 * (x_pad.size + ckt_pad.size + cv_pad.size + slab.size + B * LANE)

    out = pl.pallas_call(
        functools.partial(_fused_forward_kernel, context_size=context_size),
        out_shape=jax.ShapeDtypeStruct((B, LANE), jnp.float32),
        in_specs=[vmem, vmem, vmem, vmem],
        out_specs=vmem,
        cost_estimate=pl.CostEstimate(flops=int(flops),
                                      transcendentals=int(2 * B * N),
                                      bytes_accessed=int(bytes_accessed)),
    )(x_pad, ckt_pad, cv_pad, slab)
    return out[:, :d_out].reshape(B, 1, d_out)


# ------------------------------ param init ----------------------------------

def _init_linear(key, din, dout):
    kw, kb = jax.random.split(key)
    bound = 1.0 / (din ** 0.5)
    w = jax.random.uniform(kw, (din, dout), jnp.float32, -bound, bound)
    b = jax.random.uniform(kb, (dout,), jnp.float32, -bound, bound)
    return w, b


def init_params(key, d_in, d_main, d_hidden, d_out, encoder_n_blocks):
    keys = jax.random.split(key, 16)
    w_in, b_in = _init_linear(keys[0], d_in, d_main)
    blocks = []
    for i in range(encoder_n_blocks):
        w1, b1 = _init_linear(keys[1 + 2 * i], d_main, d_hidden)
        w2, b2 = _init_linear(keys[2 + 2 * i], d_hidden, d_main)
        blocks.append(dict(w1=w1, b1=b1, w2=w2, b2=b2))
    enc = dict(w_in=w_in, b_in=b_in, blocks=blocks)

    fc1_w, fc1_b = _init_linear(keys[10], d_main, d_main)
    fc2_w, fc2_b = _init_linear(keys[11], d_main, d_main)
    head_w, head_b = _init_linear(keys[12], d_main, d_out)
    pred = dict(fc1_w=fc1_w, fc1_b=fc1_b, fc2_w=fc2_w, fc2_b=fc2_b,
                head_w=head_w, head_b=head_b)
    # nn.Embedding(n_classes, d_main) label encoder (uniform(-1,1) per reset_parameters)
    emb = jax.random.uniform(keys[13], (d_out, d_main), jnp.float32, -1.0, 1.0)
    return dict(encoder_query=enc, predictor=pred, label_emb=emb)


def encode_candidates(params, x):
    # calculate_key() runs before eval (encoder_key weights == encoder_query at init);
    # it is not part of Model.forward, so plain jnp here.
    p = params["encoder_query"]
    h = x @ p["w_in"] + p["b_in"]
    for blk in p["blocks"]:
        h = jnp.maximum(h @ blk["w1"] + blk["b1"], 0.0)
        h = h @ blk["w2"] + blk["b2"]
    return h


# ------------------------------ reference (jnp) ------------------------------

def reference_forward(params, x_num, candidate_k, candidate_v, *, context_size):
    query = encode_candidates(params, x_num)  # same encoder as encoder_query
    d2 = (jnp.sum(query ** 2, -1, keepdims=True)
          + jnp.sum(candidate_k ** 2, -1)[None, :]
          - 2.0 * query @ candidate_k.T)
    _, idx = jax.lax.top_k(-d2, context_size)
    ck = jnp.take(candidate_k, idx, axis=0)
    cv = jnp.take(candidate_v, idx, axis=0)

    q3 = query[:, None, :]
    dist = jnp.sqrt(jnp.maximum(
        jnp.sum(q3 ** 2, -1, keepdims=True) + jnp.sum(ck ** 2, -1)[:, None, :]
        - 2.0 * jnp.einsum("bqd,bkd->bqk", q3, ck), 0.0))
    w = jax.nn.softmax(-dist, axis=-1)
    h = q3 + cv
    p = params["predictor"]
    h = jnp.maximum(h @ p["fc1_w"] + p["fc1_b"], 0.0) @ p["fc2_w"] + p["fc2_b"]
    out = h @ p["head_w"] + p["head_b"]
    return jnp.einsum("bqk,bkd->bqd", w, out)


# ----------------------------------- main ------------------------------------

if __name__ == "__main__":
    B = 8              # batch
    d_in = 16          # n_num_features (no num/cat embeddings)
    d_main = 32
    d_multiplier = 2.0
    d_hidden = int(d_main * d_multiplier)
    encoder_n_blocks = 1
    n_classes = 3      # -> d_out = 3
    context_size = 8
    n_candidates = 64

    root = jax.random.PRNGKey(0)
    k_par, k_x, k_cand, k_y = jax.random.split(root, 4)
    params = init_params(k_par, d_in, d_main, d_hidden, n_classes, encoder_n_blocks)

    x_num = jax.random.normal(k_x, (B, d_in), jnp.float32)

    # Pre-computed candidates, as produced by calculate_key() before eval:
    #   candidate_k = encoder_key(cand_x); candidate_v = label_encoder(y)
    cand_x = jax.random.normal(k_cand, (n_candidates, d_in), jnp.float32)
    candidate_k = encode_candidates(params, cand_x)
    y_cand = jax.random.randint(k_y, (n_candidates,), 0, n_classes)
    candidate_v = params["label_emb"][y_cand]                # (N, d_main)

    out = model_forward(params, x_num, candidate_k, candidate_v,
                        context_size=context_size)
    out = jax.block_until_ready(out)
    assert out.shape == (B, 1, n_classes), out.shape

    ref = reference_forward(params, x_num, candidate_k, candidate_v,
                            context_size=context_size)
    assert jnp.allclose(out, ref, rtol=2e-3, atol=2e-3), (
        float(jnp.max(jnp.abs(out - ref))))

    print("KERNEL_OK")
</pallas_src>

<mosaic_0001>
module attributes {stable_mosaic.version = 11 : i64} {
  func.func @_fused_forward_kernel(%arg0: memref<8x128xf32, #tpu.memory_space<vmem>>, %arg1: memref<128x64xf32, #tpu.memory_space<vmem>>, %arg2: memref<64x128xf32, #tpu.memory_space<vmem>>, %arg3: memref<648x128xf32, #tpu.memory_space<vmem>>, %arg4: memref<8x128xf32, #tpu.memory_space<vmem>>) attributes {dimension_semantics = [], scalar_prefetch = 0 : i64, scratch_operands = 0 : i64, tpu.core_type = #tpu.core_type<tc>} {
    %c0 = arith.constant 0 : index
    %c0_0 = arith.constant 0 : index
    %0 = vector.load %arg0[%c0, %c0_0] : memref<8x128xf32, #tpu.memory_space<vmem>>, vector<8x128xf32>
    %c0_1 = arith.constant 0 : index
    %c0_2 = arith.constant 0 : index
    %1 = vector.load %arg1[%c0_1, %c0_2] : memref<128x64xf32, #tpu.memory_space<vmem>>, vector<128x64xf32>
    %c0_3 = arith.constant 0 : index
    %c0_4 = arith.constant 0 : index
    %2 = vector.load %arg2[%c0_3, %c0_4] : memref<64x128xf32, #tpu.memory_space<vmem>>, vector<64x128xf32>
    %c0_5 = arith.constant 0 : index
    %c0_6 = arith.constant 0 : index
    %3 = vector.load %arg3[%c0_5, %c0_6] : memref<648x128xf32, #tpu.memory_space<vmem>>, vector<128x128xf32>
    %c128 = arith.constant 128 : index
    %c0_7 = arith.constant 0 : index
    %4 = vector.load %arg3[%c128, %c0_7] : memref<648x128xf32, #tpu.memory_space<vmem>>, vector<128x128xf32>
    %c256 = arith.constant 256 : index
    %c0_8 = arith.constant 0 : index
    %5 = vector.load %arg3[%c256, %c0_8] : memref<648x128xf32, #tpu.memory_space<vmem>>, vector<128x128xf32>
    %c384 = arith.constant 384 : index
    %c0_9 = arith.constant 0 : index
    %6 = vector.load %arg3[%c384, %c0_9] : memref<648x128xf32, #tpu.memory_space<vmem>>, vector<128x128xf32>
    %c512 = arith.constant 512 : index
    %c0_10 = arith.constant 0 : index
    %7 = vector.load %arg3[%c512, %c0_10] : memref<648x128xf32, #tpu.memory_space<vmem>>, vector<128x128xf32>
    %c640 = arith.constant 640 : index
    %c0_11 = arith.constant 0 : index
    %8 = vector.load %arg3[%c640, %c0_11] : memref<648x128xf32, #tpu.memory_space<vmem>>, vector<1x128xf32>
    %c641 = arith.constant 641 : index
    %c0_12 = arith.constant 0 : index
    %9 = vector.load %arg3[%c641, %c0_12] : memref<648x128xf32, #tpu.memory_space<vmem>>, vector<1x128xf32>
    %c642 = arith.constant 642 : index
    %c0_13 = arith.constant 0 : index
    %10 = vector.load %arg3[%c642, %c0_13] : memref<648x128xf32, #tpu.memory_space<vmem>>, vector<1x128xf32>
    %c643 = arith.constant 643 : index
    %c0_14 = arith.constant 0 : index
    %11 = vector.load %arg3[%c643, %c0_14] : memref<648x128xf32, #tpu.memory_space<vmem>>, vector<1x128xf32>
    %c644 = arith.constant 644 : index
    %c0_15 = arith.constant 0 : index
    %12 = vector.load %arg3[%c644, %c0_15] : memref<648x128xf32, #tpu.memory_space<vmem>>, vector<1x128xf32>
    %cst = arith.constant dense<0.000000e+00> : vector<8x128xf32>
    %13 = tpu.matmul %0, %3, %cst {dimension_numbers = #tpu.dot_dimension_numbers<[1], [0], [0], [1], [0, 0, 1, 1], [], []>} : vector<8x128xf32>, vector<128x128xf32>, vector<8x128xf32> -> vector<8x128xf32>
    %14 = vector.broadcast %8 : vector<1x128xf32> to vector<8x128xf32>
    %15 = arith.addf %13, %14 : vector<8x128xf32>
    %cst_16 = arith.constant dense<0.000000e+00> : vector<8x128xf32>
    %16 = tpu.matmul %15, %4, %cst_16 {dimension_numbers = #tpu.dot_dimension_numbers<[1], [0], [0], [1], [0, 0, 1, 1], [], []>} : vector<8x128xf32>, vector<128x128xf32>, vector<8x128xf32> -> vector<8x128xf32>
    %17 = vector.broadcast %9 : vector<1x128xf32> to vector<8x128xf32>
    %18 = arith.addf %16, %17 : vector<8x128xf32>
    %cst_17 = arith.constant 0.000000e+00 : f32
    %19 = vector.broadcast %cst_17 : f32 to vector<8x128xf32>
    %20 = arith.maximumf %18, %19 : vector<8x128xf32>
    %cst_18 = arith.constant dense<0.000000e+00> : vector<8x128xf32>
    %21 = tpu.matmul %20, %5, %cst_18 {dimension_numbers = #tpu.dot_dimension_numbers<[1], [0], [0], [1], [0, 0, 1, 1], [], []>} : vector<8x128xf32>, vector<128x128xf32>, vector<8x128xf32> -> vector<8x128xf32>
    %22 = vector.broadcast %10 : vector<1x128xf32> to vector<8x128xf32>
    %23 = arith.addf %21, %22 : vector<8x128xf32>
    %24 = arith.mulf %23, %23 : vector<8x128xf32>
    %cst_19 = arith.constant dense<0.000000e+00> : vector<8xf32>
    %25 = vector.multi_reduction <add>, %24, %cst_19 [1] : vector<8x128xf32> to vector<8xf32>
    %26 = vector.shape_cast %25 : vector<8xf32> to vector<8x1xf32>
    %27 = arith.mulf %1, %1 : vector<128x64xf32>
    %cst_20 = arith.constant dense<0.000000e+00> : vector<64xf32>
    %28 = vector.multi_reduction <add>, %27, %cst_20 [0] : vector<128x64xf32> to vector<64xf32>
    %29 = vector.shape_cast %28 : vector<64xf32> to vector<1x64xf32>
    %cst_21 = arith.constant dense<0.000000e+00> : vector<8x64xf32>
    %30 = tpu.matmul %23, %1, %cst_21 {dimension_numbers = #tpu.dot_dimension_numbers<[1], [0], [0], [1], [0, 0, 1, 1], [], []>} : vector<8x128xf32>, vector<128x64xf32>, vector<8x64xf32> -> vector<8x64xf32>
    %31 = vector.broadcast %26 : vector<8x1xf32> to vector<8x64xf32>
    %32 = vector.broadcast %29 : vector<1x64xf32> to vector<8x64xf32>
    %33 = arith.addf %31, %32 : vector<8x64xf32>
    %cst_22 = arith.constant 2.000000e+00 : f32
    %34 = vector.broadcast %cst_22 : f32 to vector<8x64xf32>
    %35 = arith.mulf %34, %30 : vector<8x64xf32>
    %36 = arith.subf %33, %35 : vector<8x64xf32>
    %37 = vector.shape_cast %36 : vector<8x64xf32> to vector<8x64x1xf32>
    %38 = vector.shape_cast %36 : vector<8x64xf32> to vector<8x1x64xf32>
    %39 = tpu.iota {dimensions = array<i32: 2>} : vector<8x64x64xi32>
    %40 = tpu.iota {dimensions = array<i32: 1>} : vector<8x64x64xi32>
    %41 = vector.broadcast %38 : vector<8x1x64xf32> to vector<8x64x64xf32>
    %42 = vector.broadcast %37 : vector<8x64x1xf32> to vector<8x64x64xf32>
    %43 = arith.cmpf olt, %41, %42 : vector<8x64x64xf32>
    %44 = vector.broadcast %38 : vector<8x1x64xf32> to vector<8x64x64xf32>
    %45 = vector.broadcast %37 : vector<8x64x1xf32> to vector<8x64x64xf32>
    %46 = arith.cmpf oeq, %44, %45 : vector<8x64x64xf32>
    %47 = arith.cmpi slt, %39, %40 : vector<8x64x64xi32>
    %48 = arith.andi %46, %47 : vector<8x64x64xi1>
    %49 = arith.ori %43, %48 : vector<8x64x64xi1>
    %50 = arith.extui %49 : vector<8x64x64xi1> to vector<8x64x64xi32>
    %51 = arith.sitofp %50 : vector<8x64x64xi32> to vector<8x64x64xf32>
    %cst_23 = arith.constant dense<0.000000e+00> : vector<8x64xf32>
    %52 = vector.multi_reduction <add>, %51, %cst_23 [2] : vector<8x64x64xf32> to vector<8x64xf32>
    %cst_24 = arith.constant 8.000000e+00 : f32
    %53 = vector.broadcast %cst_24 : f32 to vector<8x64xf32>
    %54 = arith.cmpf olt, %52, %53 : vector<8x64xf32>
    %cst_25 = arith.constant 0.000000e+00 : f32
    %55 = vector.broadcast %cst_25 : f32 to vector<8x64xf32>
    %56 = arith.maximumf %36, %55 : vector<8x64xf32>
    %57 = math.sqrt %56 : vector<8x64xf32>
    %cst_26 = arith.constant 0.000000e+00 : f32
    %58 = vector.broadcast %cst_26 : f32 to vector<8x64xf32>
    %59 = arith.subf %58, %57 : vector<8x64xf32>
    %cst_27 = arith.constant -1.000000e+30 : f32
    %60 = vector.broadcast %cst_27 : f32 to vector<8x64xf32>
    %61 = arith.select %54, %59, %60 : vector<8x64xi1>, vector<8x64xf32>
    %cst_28 = arith.constant dense<0xFF800000> : vector<8xf32>
    %62 = vector.multi_reduction <maximumf>, %61, %cst_28 [1] : vector<8x64xf32> to vector<8xf32>
    %63 = vector.shape_cast %62 : vector<8xf32> to vector<8x1xf32>
    %64 = vector.broadcast %63 : vector<8x1xf32> to vector<8x64xf32>
    %65 = arith.subf %61, %64 : vector<8x64xf32>
    %66 = math.exp %65 : vector<8x64xf32>
    %cst_29 = arith.constant dense<0.000000e+00> : vector<8xf32>
    %67 = vector.multi_reduction <add>, %66, %cst_29 [1] : vector<8x64xf32> to vector<8xf32>
    %68 = vector.shape_cast %67 : vector<8xf32> to vector<8x1xf32>
    %69 = vector.broadcast %68 : vector<8x1xf32> to vector<8x64xf32>
    %70 = arith.divf %66, %69 : vector<8x64xf32>
    %cst_30 = arith.constant dense<0.000000e+00> : vector<8x128xf32>
    %71 = tpu.matmul %23, %6, %cst_30 {dimension_numbers = #tpu.dot_dimension_numbers<[1], [0], [0], [1], [0, 0, 1, 1], [], []>} : vector<8x128xf32>, vector<128x128xf32>, vector<8x128xf32> -> vector<8x128xf32>
    %72 = vector.broadcast %11 : vector<1x128xf32> to vector<8x128xf32>
    %73 = arith.addf %71, %72 : vector<8x128xf32>
    %cst_31 = arith.constant dense<0.000000e+00> : vector<64x128xf32>
    %74 = tpu.matmul %2, %6, %cst_31 {dimension_numbers = #tpu.dot_dimension_numbers<[1], [0], [0], [1], [0, 0, 1, 1], [], []>} : vector<64x128xf32>, vector<128x128xf32>, vector<64x128xf32> -> vector<64x128xf32>
    %75 = vector.shape_cast %73 : vector<8x128xf32> to vector<8x1x128xf32>
    %76 = vector.shape_cast %74 : vector<64x128xf32> to vector<1x64x128xf32>
    %77 = vector.broadcast %75 : vector<8x1x128xf32> to vector<8x64x128xf32>
    %78 = vector.broadcast %76 : vector<1x64x128xf32> to vector<8x64x128xf32>
    %79 = arith.addf %77, %78 : vector<8x64x128xf32>
    %cst_32 = arith.constant 0.000000e+00 : f32
    %80 = vector.broadcast %cst_32 : f32 to vector<8x64x128xf32>
    %81 = arith.maximumf %79, %80 : vector<8x64x128xf32>
    %82 = vector.shape_cast %70 : vector<8x64xf32> to vector<8x64x1xf32>
    %83 = vector.broadcast %82 : vector<8x64x1xf32> to vector<8x64x128xf32>
    %84 = arith.mulf %83, %81 : vector<8x64x128xf32>
    %cst_33 = arith.constant dense<0.000000e+00> : vector<8x128xf32>
    %85 = vector.multi_reduction <add>, %84, %cst_33 [1] : vector<8x64x128xf32> to vector<8x128xf32>
    %cst_34 = arith.constant dense<0.000000e+00> : vector<8x128xf32>
    %86 = tpu.matmul %85, %7, %cst_34 {dimension_numbers = #tpu.dot_dimension_numbers<[1], [0], [0], [1], [0, 0, 1, 1], [], []>} : vector<8x128xf32>, vector<128x128xf32>, vector<8x128xf32> -> vector<8x128xf32>
    %87 = vector.broadcast %12 : vector<1x128xf32> to vector<8x128xf32>
    %88 = arith.addf %86, %87 : vector<8x128xf32>
    %c0_35 = arith.constant 0 : index
    %c0_36 = arith.constant 0 : index
    %89 = vector.load %arg4[%c0_35, %c0_36] : memref<8x128xf32, #tpu.memory_space<vmem>>, vector<8x128xf32>
    tpu.vector_store %arg4[%c0_35, %c0_36], %88 {strides = array<i32>} : memref<8x128xf32, #tpu.memory_space<vmem>>, vector<8x128xf32>,
    return
  }
}

</mosaic_0001>

<bundles_post_ra>
// kernel: model_forward.1
= control target key start
LH: loop header
LB: loop body
LE: loop exit
PB: predicated region body
PF: predicated region fallthrough
CT: control target
= control target key end

     0   :  { %vm210_vm0 = vcmask 523264   ;;  %s7247_s3 = inlined_call_operand.vmem [shape: f32[648,128], index: 3, kind: input, shape index: {}]   ;;  %s7248_s0 = inlined_call_operand.vmem [shape: f32[8,128], index: 0, kind: input, shape index: {}]   ;;  %s7249_s1 = inlined_call_operand.vmem [shape: f32[128,64], index: 1, kind: input, shape index: {}]   ;;  %s7250_s2 = inlined_call_operand.vmem [shape: f32[64,128], index: 2, kind: input, shape index: {}]   ;;  %s7251_s4 = inlined_call_operand.vmem [shape: f32[8,128], index: 4, kind: output, shape index: {}]  }
   0x1   :  { %v57_v0 = vld [vmem:[%s7247_s3 + $0x78] sm:$0xff]  ;;  %v56_v1 = vld [vmem:[%s7247_s3 + $0x70] sm:$0xff]  ;;  %v55_v2 = vld [vmem:[%s7247_s3 + $0x68] sm:$0xff] }
   0x2   :  { %128 = vmatpush.msra.mxu0 %v57_v0  ;;  %v54_v3 = vld [vmem:[%s7247_s3 + $0x60] sm:$0xff]  ;;  %v73_v4 = vld [vmem:[%s7247_s3 + $0xf8] sm:$0xff]  ;;  %v72_v6 = vld [vmem:[%s7247_s3 + $0xf0] sm:$0xff] }
   0x3   :  { %v53_v5 = vld [vmem:[%s7247_s3 + $0x58] sm:$0xff]  ;;  %149 = vmatpush.msra.mxu3 %v73_v4  ;;  %v71_v7 = vld [vmem:[%s7247_s3 + $0xe8] sm:$0xff]  ;;  %v52_v8 = vld [vmem:[%s7247_s3 + $0x50] sm:$0xff] }
   0x4   :  { %129 = vmatpush.msra.mxu0 %v56_v1  ;;  %v70_v9 = vld [vmem:[%s7247_s3 + $0xe0] sm:$0xff]  ;;  %v51_v10 = vld [vmem:[%s7247_s3 + $0x48] sm:$0xff]  ;;  %v69_v11 = vld [vmem:[%s7247_s3 + $0xd8] sm:$0xff] }
   0x5   :  { %150 = vmatpush.msra.mxu3 %v72_v6  ;;  %v50_v12 = vld [vmem:[%s7247_s3 + $0x40] sm:$0xff]  ;;  %v68_v13 = vld [vmem:[%s7247_s3 + $0xd0] sm:$0xff]  ;;  %v49_v14 = vld [vmem:[%s7247_s3 + $0x38] sm:$0xff] }
   0x6   :  { %130 = vmatpush.msra.mxu0 %v55_v2  ;;  %v67_v15 = vld [vmem:[%s7247_s3 + $0xc8] sm:$0xff]  ;;  %v48_v16 = vld [vmem:[%s7247_s3 + $0x30] sm:$0xff]  ;;  %v66_v17 = vld [vmem:[%s7247_s3 + $0xc0] sm:$0xff] }
   0x7   :  { %151 = vmatpush.msra.mxu3 %v71_v7  ;;  %v47_v18 = vld [vmem:[%s7247_s3 + $0x28] sm:$0xff]  ;;  %v65_v19 = vld [vmem:[%s7247_s3 + $0xb8] sm:$0xff]  ;;  %v46_v20 = vld [vmem:[%s7247_s3 + $0x20] sm:$0xff] }
   0x8   :  { %131 = vmatpush.msra.mxu0 %v54_v3  ;;  %v64_v21 = vld [vmem:[%s7247_s3 + $0xb0] sm:$0xff]  ;;  %v45_v22 = vld [vmem:[%s7247_s3 + $0x18] sm:$0xff]  ;;  %v63_v23 = vld [vmem:[%s7247_s3 + $0xa8] sm:$0xff] }
   0x9   :  { %152 = vmatpush.msra.mxu3 %v70_v9  ;;  %v44_v24 = vld [vmem:[%s7247_s3 + $0x10] sm:$0xff]  ;;  %v62_v25 = vld [vmem:[%s7247_s3 + $0xa0] sm:$0xff]  ;;  %v43_v26 = vld [vmem:[%s7247_s3 + $0x8] sm:$0xff] }
   0xa   :  { %132 = vmatpush.msra.mxu0 %v53_v5  ;;  %v61_v27 = vld [vmem:[%s7247_s3 + $0x98] sm:$0xff]  ;;  %v42_v28 = vld [vmem:[%s7247_s3] sm:$0xff]  ;;  %v60_v30 = vld [vmem:[%s7247_s3 + $0x90] sm:$0xff] }
   0xb   :  { %153 = vmatpush.msra.mxu3 %v69_v11  ;;  %v17_v29 = vld [vmem:[%s7248_s0] sm:$0xff]  ;;  %v59_v31 = vld [vmem:[%s7247_s3 + $0x88] sm:$0xff]  ;;  %v89_v33 = vld [vmem:[%s7247_s3 + $0x178] sm:$0xff] }
   0xc   :  { %133 = vmatpush.msra.mxu0 %v52_v8  ;;  %v58_v32 = vld [vmem:[%s7247_s3 + $0x80] sm:$0xff]  ;;  %v88_v34 = vld [vmem:[%s7247_s3 + $0x170] sm:$0xff]  ;;  %171 = vmatpush.msra.mxu2 %v89_v33  ;;  %v87_v35 = vld [vmem:[%s7247_s3 + $0x168] sm:$0xff] }
   0xd   :  { %154 = vmatpush.msra.mxu3 %v68_v13  ;;  %v86_v36 = vld [vmem:[%s7247_s3 + $0x160] sm:$0xff]  ;;  %v85_v37 = vld [vmem:[%s7247_s3 + $0x158] sm:$0xff]  ;;  %v84_v38 = vld [vmem:[%s7247_s3 + $0x150] sm:$0xff] }
   0xe   :  { %134 = vmatpush.msra.mxu0 %v51_v10  ;;  %172 = vmatpush.msra.mxu2 %v88_v34  ;;  %v83_v39 = vld [vmem:[%s7247_s3 + $0x148] sm:$0xff]  ;;  %v82_v40 = vld [vmem:[%s7247_s3 + $0x140] sm:$0xff]  ;;  %v81_v41 = vld [vmem:[%s7247_s3 + $0x138] sm:$0xff] }
   0xf   :  { %155 = vmatpush.msra.mxu3 %v67_v15  ;;  %v80_v42 = vld [vmem:[%s7247_s3 + $0x130] sm:$0xff]  ;;  %v79_v43 = vld [vmem:[%s7247_s3 + $0x128] sm:$0xff]  ;;  %v78_v44 = vld [vmem:[%s7247_s3 + $0x120] sm:$0xff] }
  0x10   :  { %135 = vmatpush.msra.mxu0 %v50_v12  ;;  %173 = vmatpush.msra.mxu2 %v87_v35  ;;  %v77_v45 = vld [vmem:[%s7247_s3 + $0x118] sm:$0xff]  ;;  %v4019_v46 = vld [vmem:[%s7247_s3 + $0x280] ss:$0 sm:$0xff]  ;;  %v76_v49 = vld [vmem:[%s7247_s3 + $0x110] sm:$0xff] }
  0x11   :  { %156 = vmatpush.msra.mxu3 %v66_v17  ;;  %v75_v50 = vld [vmem:[%s7247_s3 + $0x108] sm:$0xff]  ;;  %v74_v51 = vld [vmem:[%s7247_s3 + $0x100] sm:$0xff]  ;;  %v105_v52 = vld [vmem:[%s7247_s3 + $0x1f8] sm:$0xff] }
  0x12   :  { %136 = vmatpush.msra.mxu0 %v49_v14  ;;  %174 = vmatpush.msra.mxu2 %v86_v36  ;;  %v104_v53 = vld [vmem:[%s7247_s3 + $0x1f0] sm:$0xff]  ;;  %v103_v54 = vld [vmem:[%s7247_s3 + $0x1e8] sm:$0xff]  ;;  %v102_v55 = vld [vmem:[%s7247_s3 + $0x1e0] sm:$0xff] }
  0x13   :  { %157 = vmatpush.msra.mxu3 %v65_v19  ;;  %3099 = vmatpush.msra.mxu1 %v105_v52  ;;  %v101_v56 = vld [vmem:[%s7247_s3 + $0x1d8] sm:$0xff]  ;;  %v100_v57 = vld [vmem:[%s7247_s3 + $0x1d0] sm:$0xff]  ;;  %v99_v58 = vld [vmem:[%s7247_s3 + $0x1c8] sm:$0xff] }
  0x14   :  { %137 = vmatpush.msra.mxu0 %v48_v16  ;;  %175 = vmatpush.msra.mxu2 %v85_v37  ;;  %v98_v59 = vld [vmem:[%s7247_s3 + $0x1c0] sm:$0xff]  ;;  %v97_v60 = vld [vmem:[%s7247_s3 + $0x1b8] sm:$0xff]  ;;  %v96_v61 = vld [vmem:[%s7247_s3 + $0x1b0] sm:$0xff] }
  0x15   :  { %158 = vmatpush.msra.mxu3 %v64_v21  ;;  %3100 = vmatpush.msra.mxu1 %v104_v53  ;;  %v4380_v62 = vld [vmem:[%s7249_s1 + $0x78] sm:$0xff]  ;;  %v4385_v63 = vld [vmem:[%s7249_s1 + $0x70] sm:$0xff]  ;;  %v95_v0 = vld [vmem:[%s7247_s3 + $0x1a8] sm:$0xff] }
  0x16   :  { %138 = vmatpush.msra.mxu0 %v47_v18  ;;  %176 = vmatpush.msra.mxu2 %v84_v38  ;;  %v94_v1 = vld [vmem:[%s7247_s3 + $0x1a0] sm:$0xff]  ;;  %v93_v2 = vld [vmem:[%s7247_s3 + $0x198] sm:$0xff]  ;;  %v92_v4 = vld [vmem:[%s7247_s3 + $0x190] sm:$0xff] }
  0x17   :  { %159 = vmatpush.msra.mxu3 %v63_v23  ;;  %3101 = vmatpush.msra.mxu1 %v103_v54  ;;  %v4020_v3 = vld [vmem:[%s7247_s3 + $0x281] ss:$0 sm:$0xff]  ;;  %v4407_v5 = vld [vmem:[%s7249_s1 + $0x68] sm:$0xff]  ;;  %v4421_v8 = vld [vmem:[%s7249_s1 + $0x58] sm:$0xff] }
  0x18   :  { %139 = vmatpush.msra.mxu0 %v46_v20  ;;  %177 = vmatpush.msra.mxu2 %v83_v39  ;;  %v4412_v6 = vld [vmem:[%s7249_s1 + $0x60] sm:$0xff]  ;;  %v91_v7 = vld [vmem:[%s7247_s3 + $0x188] sm:$0xff]  ;;  %v4430_v12 = vld [vmem:[%s7249_s1 + $0x50] sm:$0xff] }
  0x19   :  { %160 = vmatpush.msra.mxu3 %v62_v25  ;;  %3102 = vmatpush.msra.mxu1 %v102_v55  ;;  %v90_v11 = vld [vmem:[%s7247_s3 + $0x180] sm:$0xff]  ;;  %v27_v15 = vld [vmem:[%s7249_s1 + $0x48] sm:$0xff]  ;;  %v25_v17 = vld [vmem:[%s7249_s1 + $0x38] sm:$0xff] }
  0x1a   :  { %140 = vmatpush.msra.mxu0 %v45_v22  ;;  %178 = vmatpush.msra.mxu2 %v82_v40  ;;  %v34_v13 = vld [vmem:[%s7250_s2] sm:$0xff]  ;;  %v24_v18 = vld [vmem:[%s7249_s1 + $0x30] sm:$0xff]  ;;  %v35_v19 = vld [vmem:[%s7250_s2 + $0x8] sm:$0xff] }
  0x1b   :  { %161 = vmatpush.msra.mxu3 %v61_v27  ;;  %3103 = vmatpush.msra.mxu1 %v101_v56  ;;  %v26_v16 = vld [vmem:[%s7249_s1 + $0x40] sm:$0xff]  ;;  %v23_v20 = vld [vmem:[%s7249_s1 + $0x28] sm:$0xff]  ;;  %v21_v22 = vld [vmem:[%s7249_s1 + $0x18] sm:$0xff] }
  0x1c   :  { %141 = vmatpush.msra.mxu0 %v44_v24  ;;  %179 = vmatpush.msra.mxu2 %v81_v41  ;;  %v22_v21 = vld [vmem:[%s7249_s1 + $0x20] sm:$0xff]  ;;  %v20_v23 = vld [vmem:[%s7249_s1 + $0x10] sm:$0xff]  ;;  %v37_v25 = vld [vmem:[%s7250_s2 + $0x18] sm:$0xff]  ;;  %v197_v33 = vmul.f32 %v21_v22, %v21_v22  ;;  %v199_v40 = vmul.f32 %v23_v20, %v23_v20 }
  0x1d   :  { %162 = vmatpush.msra.mxu3 %v60_v30  ;;  %3104 = vmatpush.msra.mxu1 %v100_v57  ;;  %v36_v24 = vld [vmem:[%s7250_s2 + $0x10] sm:$0xff]  ;;  %v39_v27 = vld [vmem:[%s7250_s2 + $0x28] sm:$0xff]  ;;  %v196_v30 = vmul.f32 %v20_v23, %v20_v23  ;;  %v198_v36 = vmul.f32 %v22_v21, %v22_v21 }
  0x1e   :  { %142 = vmatpush.msra.mxu0 %v43_v26  ;;  %180 = vmatpush.msra.mxu2 %v80_v42  ;;  %v38_v26 = vld [vmem:[%s7250_s2 + $0x20] sm:$0xff]  ;;  %v216_v41 = vsel %vm210_vm0, %v197_v33, 0.0  ;;  %v41_v42 = vld [vmem:[%s7250_s2 + $0x38] sm:$0xff] }
  0x1f   :  { %163 = vmatpush.msra.mxu3 %v59_v31  ;;  %3105 = vmatpush.msra.mxu1 %v99_v58  ;;  %v18_v31 = vld [vmem:[%s7249_s1] sm:$0xff]  ;;  %v214_v37 = vsel %vm210_vm0, %v196_v30, 0.0 }
  0x20   :  { %143 = vmatpush.msra.mxu0 %v42_v28  ;;  %181 = vmatpush.msra.mxu2 %v79_v43  ;;  %v40_v28 = vld [vmem:[%s7250_s2 + $0x30] sm:$0xff]  ;;  %v194_v34 = vmul.f32 %v18_v31, %v18_v31 }
  0x21   :  { %144 = vmatmul.f32.vlgmr.msra.gmra.mxu0 %v17_v29  ;;  %164 = vmatpush.msra.mxu3 %v58_v32  ;;  %v19_v29 = vld [vmem:[%s7249_s1 + $0x8] sm:$0xff] }
  0x22   :  { %182 = vmatpush.msra.mxu2 %v78_v44  ;;  %3079 = vmatpush.msrb.mxu0 %v105_v52  ;;  %v195_v32 = vmul.f32 %v19_v29, %v19_v29  ;;  %v211_v38 = vsel %vm210_vm0, %v194_v34, 0.0  ;;  %v200_v44 = vmul.f32 %v24_v18, %v24_v18 }
  0x23   :  { %3106 = vmatpush.msra.mxu1 %v98_v59  ;;  %248 = vmatpush.msrb.mxu3 %v4380_v62 }
  0x24   :  { %183 = vmatpush.msra.mxu2 %v77_v45  ;;  %3080 = vmatpush.msrb.mxu0 %v104_v53  ;;  %v212_v35 = vsel %vm210_vm0, %v195_v32, 0.0  ;;  %v218_v45 = vsel %vm210_vm0, %v198_v36, 0.0  ;;  %v203_v53 = vmul.f32 %v27_v15, %v27_v15 }
  0x25   :  { %3107 = vmatpush.msra.mxu1 %v97_v60  ;;  %249 = vmatpush.msrb.mxu3 %v4385_v63  ;;  %v213_v39 = vadd.f32 %v212_v35, %v211_v38 }
  0x26   :  { %184 = vmatpush.msra.mxu2 %v76_v49  ;;  %3081 = vmatpush.msrb.mxu0 %v103_v54 }
  0x27   :  { %3108 = vmatpush.msra.mxu1 %v96_v61  ;;  %250 = vmatpush.msrb.mxu3 %v4407_v5  ;;  %v215_v43 = vadd.f32 %v214_v37, %v213_v39 }
  0x28   :  { %185 = vmatpush.msra.mxu2 %v75_v50  ;;  %3082 = vmatpush.msrb.mxu0 %v102_v55  ;;  %v202_v50 = vmul.f32 %v26_v16, %v26_v16 }
  0x29   :  { %3109 = vmatpush.msra.mxu1 %v95_v0  ;;  %251 = vmatpush.msrb.mxu3 %v4412_v6 }
  0x2a   :  { %186 = vmatpush.msra.mxu2 %v74_v51  ;;  %3083 = vmatpush.msrb.mxu0 %v101_v56  ;;  %v222_v51 = vsel %vm210_vm0, %v200_v44, 0.0  ;;  %v204_v56 = vmul.f32 %v4430_v12, %v4430_v12 }
  0x2b   :  { %3110 = vmatpush.msra.mxu1 %v94_v1  ;;  %252 = vmatpush.msrb.mxu3 %v4421_v8 }
  0x2c   :  { %3084 = vmatpush.msrb.mxu0 %v100_v57  ;;  %v226_v57 = vsel %vm210_vm0, %v202_v50, 0.0 }
  0x2d   :  { %3111 = vmatpush.msra.mxu1 %v93_v2  ;;  %253 = vmatpush.msrb.mxu3 %v4430_v12 }
  0x2e   :  { %3085 = vmatpush.msrb.mxu0 %v99_v58 }
  0x2f   :  { %3112 = vmatpush.msra.mxu1 %v92_v4  ;;  %254 = vmatpush.msrb.mxu3 %v27_v15 }
  0x30   :  { %3086 = vmatpush.msrb.mxu0 %v98_v59  ;;  %v205_v59 = vmul.f32 %v4421_v8, %v4421_v8 }
  0x31   :  { %3113 = vmatpush.msra.mxu1 %v91_v7  ;;  %255 = vmatpush.msrb.mxu3 %v26_v16 }
  0x32   :  { %3087 = vmatpush.msrb.mxu0 %v97_v60  ;;  %v228_v60 = vsel %vm210_vm0, %v203_v53, 0.0 }
  0x33   :  { %3114 = vmatpush.msra.mxu1 %v90_v11  ;;  %256 = vmatpush.msrb.mxu3 %v25_v17 }
  0x34   :  { %3088 = vmatpush.msrb.mxu0 %v96_v61  ;;  %3115 = vmatmul.f32.vlgmr.msra.gmra.mxu1 %v34_v13 }
  0x35   :  { %257 = vmatpush.msrb.mxu3 %v24_v18 }
  0x36   :  { %3089 = vmatpush.msrb.mxu0 %v95_v0  ;;  %v206_v0 = vmul.f32 %v4412_v6, %v4412_v6 }
  0x37   :  { %258 = vmatpush.msrb.mxu3 %v23_v20 }
  0x38   :  { %3090 = vmatpush.msrb.mxu0 %v94_v1  ;;  %v230_v1 = vsel %vm210_vm0, %v204_v56, 0.0  ;;  %v234_v8 = vsel %vm210_vm0, %v206_v0, 0.0 }
  0x39   :  { %259 = vmatpush.msrb.mxu3 %v22_v21 }
  0x3a   :  { %3091 = vmatpush.msrb.mxu0 %v93_v2 }
  0x3b   :  { %260 = vmatpush.msrb.mxu3 %v21_v22 }
  0x3c   :  { %3092 = vmatpush.msrb.mxu0 %v92_v4  ;;  %3118 = vmatmul.f32.gmra.mxu1 %v35_v19  ;;  %v232_v4 = vsel %vm210_vm0, %v205_v59, 0.0 }
  0x3d   :  { %261 = vmatpush.msrb.mxu3 %v20_v23 }
  0x3e   :  { %3093 = vmatpush.msrb.mxu0 %v91_v7 }
  0x3f   :  { %262 = vmatpush.msrb.mxu3 %v19_v29 }
  0x40   :  { %3094 = vmatpush.msrb.mxu0 %v90_v11  ;;  %v209_v11 = vmul.f32 %v4380_v62, %v4380_v62  ;;  %v272_v62 = vlaneseq }
  0x41   :  { %263 = vmatpush.msrb.mxu3 %v18_v31 }
  0x42   :  { %v240_v15 = vsel %vm210_vm0, %v209_v11, 0.0  ;;  %v4520_v20 = vshrl.u32 %v272_v62, 7 }
  0x44   :  { %3121 = vmatmul.f32.gmra.mxu1 %v36_v24  ;;  %3888 = vset.pattern.permute.xlu0 %v4520_v20  ;;  %v4524_v21 = vadd.s32 24, %v4520_v20  ;;  %v4527_v22 = vadd.s32 8, %v4520_v20  ;;  %v4540_v35 = vadd.s32 32, %v4520_v20  ;;  %v4543_v36 = vadd.s32 16, %v4520_v20 }
  0x45   :  { %v4546_v37 = vadd.s32 40, %v4520_v20  ;;  %v4555_v39 = vadd.s32 48, %v4520_v20 }
  0x46   :  { %3891 = vset.pattern.permute.xlu2 %v4524_v21  ;;  %3889 = vset.pattern.permute.xlu1 %v4527_v22 }
  0x4c   :  { %3124 = vmatmul.f32.gmra.mxu1 %v37_v25 }
  0x54   :  { %3127 = vmatmul.f32.gmra.mxu1 %v38_v26 }
  0x5c   :  { %3130 = vmatmul.f32.gmra.mxu1 %v39_v27 }
  0x64   :  { %3133 = vmatmul.f32.gmra.mxu1 %v40_v28 }
  0x6c   :  { %3136 = vmatmul.f32.gmra.mxu1 %v41_v42 }
  0x9e   :  { %v145_v47 = vpop.f32.mrf.mxu0 }
  0x9f   :  { %v146_v48 = vadd.f32 %v4019_v46, %v145_v47  ;;  %v217_v46 = vadd.f32 %v216_v41, %v215_v43  ;;  %v201_v47 = vmul.f32 %v25_v17, %v25_v17  ;;  %v4564_v41 = vadd.s32 56, %v4520_v20 }
  0xa1   :  { %165 = vmatmul.f32.vlgmr.msra.gmra.mxu3 %v146_v48  ;;  %v220_v48 = vsel %vm210_vm0, %v199_v40, 0.0  ;;  %v219_v49 = vadd.f32 %v218_v45, %v217_v46  ;;  %v224_v54 = vsel %vm210_vm0, %v201_v47, 0.0 }
  0xa3   :  { %v221_v52 = vadd.f32 %v220_v48, %v219_v49 }
  0xa5   :  { %v223_v55 = vadd.f32 %v222_v51, %v221_v52 }
  0xa7   :  { %v225_v58 = vadd.f32 %v224_v54, %v223_v55 }
  0xa9   :  { %v227_v61 = vadd.f32 %v226_v57, %v225_v58 }
  0xab   :  { %v229_v2 = vadd.f32 %v228_v60, %v227_v61 }
  0xad   :  { %v231_v7 = vadd.f32 %v230_v1, %v229_v2 }
 0x124   :  { %v166_v9 = vpop.f32.mrf.mxu3 }
 0x125   :  { %v167_v10 = vadd.f32 %v4020_v3, %v166_v9  ;;  %v207_v3 = vmul.f32 %v4407_v5, %v4407_v5  ;;  %v208_v9 = vmul.f32 %v4385_v63, %v4385_v63  ;;  %v4021_v5 = vld [vmem:[%s7247_s3 + $0x282] ss:$0 sm:$0xff] }
 0x127   :  { %v169_v14 = vmax.f32 %v167_v10, 0.0  ;;  %v233_v10 = vadd.f32 %v232_v4, %v231_v7  ;;  %v236_v6 = vsel %vm210_vm0, %v207_v3, 0.0  ;;  %v238_v13 = vsel %vm210_vm0, %v208_v9, 0.0 }
 0x129   :  { %187 = vmatmul.f32.vlgmr.msra.gmra.mxu2 %v169_v14  ;;  %v235_v12 = vadd.f32 %v234_v8, %v233_v10 }
 0x12b   :  { %v237_v14 = vadd.f32 %v236_v6, %v235_v12 }
 0x12d   :  { %v239_v16 = vadd.f32 %v238_v13, %v237_v14 }
 0x12f   :  { %v241_v18 = vadd.f32 %v240_v15, %v239_v16 }
 0x131   :  { %v242_v23 = vrot.slane %v241_v18, 4 }
 0x133   :  { %v243_v24 = vadd.f32 %v242_v23, %v241_v18  ;;  %v4753_v18 = vand.u32 127, %v272_v62 }
 0x135   :  { %v244_v25 = vrot.slane %v243_v24, 2  ;;  %7382 = vst [vmem:[#allocation2_spill] sm:$0xff] %v4753_v18  ;;  %vm4758_vm4 = vcmp.lt.s32.totalorder %v4753_v18, %v4543_v36  ;;  %vm4776_vm9 = vcmp.lt.s32.totalorder %v4753_v18, %v4520_v20  ;;  %vm4792_vm14 = vcmp.lt.s32.totalorder %v4753_v18, %v4524_v21 }
 0x137   :  { %v245_v26 = vadd.f32 %v244_v25, %v243_v24 }
 0x139   :  { %v246_v27 = vrot.slane %v245_v26, 1 }
 0x13b   :  { %v247_v28 = vadd.f32 %v246_v27, %v245_v26  ;;  %v7262_v26 = vmov 0.0  }
 0x1ac   :  { %v188_v63 = vpop.f32.mrf.mxu2 }
 0x1ad   :  { %v189_v17 = vadd.f32 %v4021_v5, %v188_v63 }
 0x1af   :  { %264 = vmatmul.f32.vlgmr.msrb.gmra.mxu3 %v189_v17  ;;  %3095 = vmatmul.f32.vlgmr.msrb.gmra.mxu0 %v189_v17  ;;  %v191_v19 = vmul.f32 %v189_v17, %v189_v17 }
 0x1b1   :  { %192 = vadd.xlane.f32.xlu0 %v191_v19  ;;  %v7383_v19 = vmov 0 }
 0x1b2   :  { %v7384_v19 = vsel %vm4758_vm4, 4294967295, %v7383_v19 }
 0x224   :  { %v193_v29 = vpop.xlane.xlu0 %192 }
 0x225   :  { %v268_v31 = vadd.f32 %v247_v28, %v193_v29  ;;  %v7385_v28 = vmov 0 }
 0x226   :  { %v7386_v28 = vsel %vm4776_vm9, 4294967295, %v7385_v28 }
 0x232   :  { %v265_v30 = vpop.f32.mrf.mxu3 }
 0x233   :  { %v269_v32 = vmul.f32 2.0, %v265_v30 }
 0x235   :  { %v4531_v33 = vsub.f32 %v268_v31, %v269_v32 }
 0x237   :  { %v4534_v34 = vperm.slane %v4531_v33, 0  ;;  %v320_v38 = vperm.slane %v4531_v33, 1  ;;  %v369_v40 = vperm.slane %v4531_v33, 2  ;;  %v4574_v42 = vperm.slane %v4531_v33, 3 }
 0x238   :  { %v4581_v43 = vperm.slane %v4531_v33, 4  ;;  %v4592_v44 = vperm.slane %v4531_v33, 5  ;;  %v4599_v45 = vperm.slane %v4531_v33, 6  ;;  %v1346_v46 = vmax.f32 %v4531_v33, 0.0 }
 0x239   :  { %294 = vperm.xlu2 %3891, %v4534_v34   ;;  %282 = vperm.xlu1 %3889, %v4534_v34   ;;  %v4611_v49 = vperm.slane %v4531_v33, 7  ;;  %v664_v23 = vrot.slane %v4531_v33, 1 }
 0x23a   :  { %276 = vperm.xlu0 %3888, %v4534_v34   ;;  %4024 = vrsqrt.f32 %v1346_v46  ;;  %vm1354_vm1 = vcmp.eq.f32.partialorder %v1346_v46, inf  ;;  %v1357_v56 = vand.u32 2147483648, %v1346_v46  ;;  %vm1356_vm2 = vcmp.eq.f32.partialorder %v1346_v46, 0.0 }
 0x23b   :  { %v4770_v25 = vperm.slane %v664_v23, 0 }
 0x240   :  { %v4025_v47 = vpop.eup %4024 }
 0x241   :  { %3892 = vset.pattern.permute.xlu2 %v4540_v35  ;;  %3890 = vset.pattern.permute.xlu1 %v4543_v36  ;;  %v1348_v48 = vmul.f32 %v4025_v47, %v1346_v46 }
 0x242   :  { %3901 = vset.pattern.permute.xlu0 %v4546_v37 }
 0x243   :  { %v1349_v50 = vmul.f32 %v4025_v47, %v1348_v48 }
 0x245   :  { %v1350_v51 = vmul.f32 0.5, %v1349_v50 }
 0x247   :  { %v1351_v52 = vsub.f32 1.5, %v1350_v51 }
 0x249   :  { %300 = vperm.xlu2 %3892, %v4534_v34   ;;  %288 = vperm.xlu1 %3890, %v4534_v34   ;;  %v1352_v53 = vmul.f32 %v4025_v47, %v1351_v52 }
 0x24a   :  { %355 = vperm.xlu0 %3901, %v320_v38  }
 0x24b   :  { %v1353_v54 = vmul.f32 %v1352_v53, %v1346_v46 }
 0x24d   :  { %v1355_v55 = vsel %vm1354_vm1, %v1346_v46, %v1353_v54  ;;  %v665_v46 = vrot.slane %v4531_v33, 2 }
 0x24e   :  { %v1358_v57 = vsel %vm1356_vm2, %v1357_v56, %v1355_v55 }
 0x24f   :  { %v4625_v58 = vsub.f32 0.0, %v1358_v57  ;;  %v4829_v52 = vperm.slane %v665_v46, 0 }
 0x251   :  { %3894 = vset.pattern.permute.xlu2 %v4555_v39  ;;  %3893 = vset.pattern.permute.xlu1 %v4546_v37  ;;  %v4628_v59 = vperm.slane %v4625_v58, 0  ;;  %v4637_v60 = vperm.slane %v4625_v58, 1  ;;  %v4652_v61 = vperm.slane %v4625_v58, 2  ;;  %v4667_v0 = vperm.slane %v4625_v58, 3 }
 0x252   :  { %3906 = vset.pattern.permute.xlu0 %v4543_v36  ;;  %v4676_v1 = vperm.slane %v4625_v58, 4  ;;  %v4691_v2 = vperm.slane %v4625_v58, 5  ;;  %v4700_v3 = vperm.slane %v4625_v58, 6  ;;  %v4719_v9 = vperm.slane %v4625_v58, 7 }
 0x259   :  { %312 = vperm.xlu2 %3894, %v4534_v34   ;;  %306 = vperm.xlu1 %3893, %v4534_v34  }
 0x25a   :  { %386 = vperm.xlu0 %3906, %v369_v40  }
 0x261   :  { %3896 = vset.pattern.permute.xlu2 %v4520_v20  ;;  %3895 = vset.pattern.permute.xlu1 %v4564_v41 }
 0x262   :  { %3911 = vset.pattern.permute.xlu0 %v4564_v41 }
 0x269   :  { %325 = vperm.xlu2 %3896, %v320_v38   ;;  %318 = vperm.xlu1 %3895, %v4534_v34  }
 0x26a   :  { %416 = vperm.xlu0 %3911, %v369_v40  }
 0x271   :  { %3898 = vset.pattern.permute.xlu2 %v4543_v36  ;;  %3897 = vset.pattern.permute.xlu1 %v4527_v22 }
 0x272   :  { %3916 = vset.pattern.permute.xlu0 %v4540_v35 }
 0x279   :  { %337 = vperm.xlu2 %3898, %v320_v38   ;;  %331 = vperm.xlu1 %3897, %v320_v38  }
 0x27a   :  { %447 = vperm.xlu0 %3916, %v4574_v42  }
 0x281   :  { %3900 = vset.pattern.permute.xlu2 %v4540_v35  ;;  %3899 = vset.pattern.permute.xlu1 %v4524_v21 }
 0x282   :  { %3921 = vset.pattern.permute.xlu0 %v4527_v22 }
 0x289   :  { %349 = vperm.xlu2 %3900, %v320_v38   ;;  %343 = vperm.xlu1 %3899, %v320_v38  }
 0x28a   :  { %478 = vperm.xlu0 %3921, %v4581_v43  }
 0x291   :  { %3903 = vset.pattern.permute.xlu2 %v4564_v41  ;;  %3902 = vset.pattern.permute.xlu1 %v4555_v39 }
 0x292   :  { %3926 = vset.pattern.permute.xlu0 %v4555_v39 }
 0x293   :  { %v4714_v4 = vpop.permute.xlu2 %294 }
 0x299   :  { %367 = vperm.xlu2 %3903, %v320_v38   ;;  %361 = vperm.xlu1 %3902, %v320_v38  }
 0x29a   :  { %508 = vperm.xlu0 %3926, %v4581_v43  }
 0x2a1   :  { %3905 = vset.pattern.permute.xlu2 %v4527_v22  ;;  %3904 = vset.pattern.permute.xlu1 %v4520_v20 }
 0x2a2   :  { %3931 = vset.pattern.permute.xlu0 %v4524_v21 }
 0x2a3   :  { %v4724_v8 = vpop.permute.xlu2 %300 }
 0x2a9   :  { %380 = vperm.xlu2 %3905, %v369_v40   ;;  %374 = vperm.xlu1 %3904, %v369_v40  }
 0x2aa   :  { %539 = vperm.xlu0 %3931, %v4592_v44  }
 0x2ab   :  { %v4716_v7 = vpop.permute.xlu1 %282 }
 0x2b1   :  { %3908 = vset.pattern.permute.xlu2 %v4540_v35  ;;  %3907 = vset.pattern.permute.xlu1 %v4524_v21 }
 0x2b2   :  { %3936 = vset.pattern.permute.xlu0 %v4520_v20 }
 0x2b3   :  { %v4729_v11 = vpop.permute.xlu2 %312 }
 0x2b9   :  { %398 = vperm.xlu2 %3908, %v369_v40   ;;  %392 = vperm.xlu1 %3907, %v369_v40  }
 0x2ba   :  { %570 = vperm.xlu0 %3936, %v4599_v45  }
 0x2bb   :  { %v289_v10 = vpop.permute.xlu1 %288 }
 0x2bc   :  { %vm764_vm3 = vcmp.eq.f32.partialorder %v4534_v34, %v289_v10  ;;  %vm700_vm5 = vcmp.lt.f32.partialorder %v4534_v34, %v289_v10 }
 0x2bd   :  { %vm836_vm6 = vmand %vm764_vm3, %vm4758_vm4 }
 0x2be   :  { %vm900_vm7 = vmor %vm700_vm5, %vm836_vm6  ;;  %vm4813_vm5 = vcmp.lt.s32.totalorder %v4753_v18, %v4555_v39 }
 0x2bf   :  { %v3824_v27 = vsel %vm900_vm7, 1.0, %v7262_v26 }
 0x2c0   :  { %v1096_v29 = vsel %vm210_vm0, %v3824_v27, 0.0  ;;  %v7395_v27 = vmov 0 }
 0x2c1   :  { %3910 = vset.pattern.permute.xlu2 %v4555_v39  ;;  %3909 = vset.pattern.permute.xlu1 %v4546_v37 }
 0x2c2   :  { %3941 = vset.pattern.permute.xlu0 %v4546_v37 }
 0x2c3   :  { %v326_v12 = vpop.permute.xlu2 %325 }
 0x2c4   :  { %vm770_vm8 = vcmp.eq.f32.partialorder %v4770_v25, %v326_v12  ;;  %vm706_vm10 = vcmp.lt.f32.partialorder %v4770_v25, %v326_v12  ;;  %v7393_v12 = vmov 0 }
 0x2c5   :  { %vm842_vm11 = vmand %vm770_vm8, %vm4776_vm9 }
 0x2c6   :  { %vm906_vm12 = vmor %vm706_vm10, %vm842_vm11  ;;  %vm4835_vm11 = vcmp.lt.s32.totalorder %v4753_v18, %v4527_v22 }
 0x2c7   :  { %v3830_v32 = vsel %vm906_vm12, 1.0, %v7262_v26 }
 0x2c9   :  { %410 = vperm.xlu2 %3910, %v369_v40   ;;  %404 = vperm.xlu1 %3909, %v369_v40   ;;  %v4801_v40 = vpop.permute.xlu0 %276 }
 0x2ca   :  { %600 = vperm.xlu0 %3941, %v4599_v45  }
 0x2cb   :  { %v4731_v6 = vpop.permute.xlu1 %306 }
 0x2d1   :  { %3913 = vset.pattern.permute.xlu2 %v4527_v22  ;;  %3912 = vset.pattern.permute.xlu1 %v4520_v20  ;;  %v4822_v48 = vpop.permute.xlu0 %355 }
 0x2d2   :  { %3946 = vset.pattern.permute.xlu0 %v4543_v36 }
 0x2d3   :  { %v4740_v5 = vpop.permute.xlu2 %337 }
 0x2d9   :  { %429 = vperm.xlu2 %3913, %v4574_v42   ;;  %423 = vperm.xlu1 %3912, %v4574_v42   ;;  %v4844_v55 = vpop.permute.xlu0 %386 }
 0x2da   :  { %631 = vperm.xlu0 %3946, %v4611_v49  }
 0x2db   :  { %v4736_v13 = vpop.permute.xlu1 %318 }
 0x2e1   :  { %3915 = vset.pattern.permute.xlu2 %v4524_v21  ;;  %3914 = vset.pattern.permute.xlu1 %v4543_v36 }
 0x2e2   :  { %3951 = vset.pattern.permute.xlu0 %v4564_v41 }
 0x2e3   :  { %v4746_v15 = vpop.permute.xlu2 %349 }
 0x2e9   :  { %441 = vperm.xlu2 %3915, %v4574_v42   ;;  %435 = vperm.xlu1 %3914, %v4574_v42  }
 0x2ea   :  { %661 = vperm.xlu0 %3951, %v4611_v49  }
 0x2eb   :  { %v4742_v14 = vpop.permute.xlu1 %331 }
 0x2f1   :  { %3918 = vset.pattern.permute.xlu2 %v4555_v39  ;;  %3917 = vset.pattern.permute.xlu1 %v4546_v37 }
 0x2f2   :  { %3953 = vset.pattern.permute.xlu0 %v4527_v22 }
 0x2f3   :  { %v4750_v63 = vpop.permute.xlu2 %367 }
 0x2f9   :  { %459 = vperm.xlu2 %3918, %v4574_v42   ;;  %453 = vperm.xlu1 %3917, %v4574_v42  }
 0x2fa   :  { %1372 = vperm.xlu0 %3953, %v4628_v59  }
 0x2fb   :  { %v344_v16 = vpop.permute.xlu1 %343 }
 0x2fc   :  { %vm773_vm13 = vcmp.eq.f32.partialorder %v4770_v25, %v344_v16  ;;  %vm709_vm15 = vcmp.lt.f32.partialorder %v4770_v25, %v344_v16  ;;  %v417_v16 = vpop.permute.xlu0 %416 }
 0x2fd   :  { %vm845_vm1 = vmand %vm773_vm13, %vm4792_vm14 }
 0x2fe   :  { %vm909_vm2 = vmor %vm709_vm15, %vm845_vm1 }
 0x301   :  { %3920 = vset.pattern.permute.xlu2 %v4520_v20  ;;  %3919 = vset.pattern.permute.xlu1 %v4564_v41 }
 0x302   :  { %3960 = vset.pattern.permute.xlu0 %v4520_v20 }
 0x303   :  { %v381_v62 = vpop.permute.xlu2 %380 }
 0x304   :  { %vm779_vm10 = vcmp.eq.f32.partialorder %v4829_v52, %v381_v62  ;;  %vm715_vm12 = vcmp.lt.f32.partialorder %v4829_v52, %v381_v62 }
 0x305   :  { %vm851_vm13 = vmand %vm779_vm10, %vm4835_vm11  ;;  %vm785_vm10 = vcmp.eq.f32.partialorder %v4829_v52, %v417_v16 }
 0x306   :  { %vm915_vm15 = vmor %vm715_vm12, %vm851_vm13  ;;  %vm721_vm12 = vcmp.lt.f32.partialorder %v4829_v52, %v417_v16  ;;  %v667_v16 = vrot.slane %v4531_v33, 4 }
 0x307   :  { %v3839_v10 = vsel %vm915_vm15, 1.0, %v7262_v26 }
 0x309   :  { %472 = vperm.xlu2 %3920, %v4581_v43   ;;  %465 = vperm.xlu1 %3919, %v4574_v42   ;;  %v1114_v42 = vsel %vm210_vm0, %v3830_v32, 0.0 }
 0x30a   :  { %1415 = vperm.xlu0 %3960, %v4637_v60  }
 0x30b   :  { %v362_v17 = vpop.permute.xlu1 %361 }
 0x30c   :  { %vm776_vm3 = vcmp.eq.f32.partialorder %v4770_v25, %v362_v17  ;;  %vm712_vm6 = vcmp.lt.f32.partialorder %v4770_v25, %v362_v17  ;;  %v1141_v17 = vsel %vm210_vm0, %v3839_v10, 0.0 }
 0x30d   :  { %vm848_vm7 = vmand %vm776_vm3, %vm4813_vm5 }
 0x30e   :  { %vm912_vm8 = vmor %vm712_vm6, %vm848_vm7 }
 0x30f   :  { %v3836_v53 = vsel %vm912_vm8, 1.0, %v7262_v26  ;;  %vm4867_vm8 = vcmp.lt.s32.totalorder %v4753_v18, %v4564_v41 }
 0x310   :  { %v1132_v56 = vsel %vm210_vm0, %v3836_v53, 0.0  ;;  %v7396_v27 = vsel %vm4867_vm8, 4294967295, %v7395_v27  ;;  %vm857_vm13 = vmand %vm785_vm10, %vm4867_vm8 }
 0x311   :  { %3923 = vset.pattern.permute.xlu2 %v4524_v21  ;;  %3922 = vset.pattern.permute.xlu1 %v4543_v36  ;;  %vm921_vm15 = vmor %vm721_vm12, %vm857_vm13  ;;  %vm4899_vm12 = vcmp.lt.s32.totalorder %v4753_v18, %v4546_v37 }
 0x312   :  { %3965 = vset.pattern.permute.xlu0 %v4546_v37 }
 0x313   :  { %v399_v30 = vpop.permute.xlu2 %398 }
 0x314   :  { %vm782_vm1 = vcmp.eq.f32.partialorder %v4829_v52, %v399_v30  ;;  %vm718_vm3 = vcmp.lt.f32.partialorder %v4829_v52, %v399_v30  ;;  %v666_v30 = vrot.slane %v4531_v33, 3 }
 0x316   :  { %v4882_v46 = vperm.slane %v666_v30, 0 }
 0x319   :  { %490 = vperm.xlu2 %3923, %v4581_v43   ;;  %484 = vperm.xlu1 %3922, %v4581_v43  }
 0x31a   :  { %1445 = vperm.xlu0 %3965, %v4637_v60  }
 0x31b   :  { %v4768_v24 = vpop.permute.xlu1 %374 }
 0x321   :  { %3925 = vset.pattern.permute.xlu2 %v4546_v37  ;;  %3924 = vset.pattern.permute.xlu1 %v4540_v35 }
 0x322   :  { %3970 = vset.pattern.permute.xlu0 %v4543_v36 }
 0x329   :  { %502 = vperm.xlu2 %3925, %v4581_v43   ;;  %496 = vperm.xlu1 %3924, %v4581_v43  }
 0x32a   :  { %1476 = vperm.xlu0 %3970, %v4652_v61  }
 0x32b   :  { %v4786_v31 = vpop.permute.xlu1 %392 }
 0x331   :  { %3928 = vset.pattern.permute.xlu2 %v4520_v20  ;;  %3927 = vset.pattern.permute.xlu1 %v4564_v41 }
 0x332   :  { %3975 = vset.pattern.permute.xlu0 %v4564_v41 }
 0x339   :  { %521 = vperm.xlu2 %3928, %v4592_v44   ;;  %514 = vperm.xlu1 %3927, %v4581_v43   ;;  %v4804_v43 = vpop.permute.xlu2 %410 }
 0x33a   :  { %1506 = vperm.xlu0 %3975, %v4652_v61  }
 0x341   :  { %3930 = vset.pattern.permute.xlu2 %v4543_v36  ;;  %3929 = vset.pattern.permute.xlu1 %v4527_v22  ;;  %v4825_v50 = vpop.permute.xlu2 %429 }
 0x342   :  { %3980 = vset.pattern.permute.xlu0 %v4540_v35 }
 0x349   :  { %533 = vperm.xlu2 %3930, %v4592_v44   ;;  %527 = vperm.xlu1 %3929, %v4592_v44   ;;  %v4847_v57 = vpop.permute.xlu2 %441 }
 0x34a   :  { %1537 = vperm.xlu0 %3980, %v4667_v0  }
 0x351   :  { %3933 = vset.pattern.permute.xlu2 %v4546_v37  ;;  %3932 = vset.pattern.permute.xlu1 %v4540_v35 }
 0x352   :  { %3985 = vset.pattern.permute.xlu0 %v4527_v22 }
 0x353   :  { %v4863_v23 = vpop.permute.xlu2 %459 }
 0x359   :  { %551 = vperm.xlu2 %3933, %v4592_v44   ;;  %545 = vperm.xlu1 %3932, %v4592_v44  }
 0x35a   :  { %1568 = vperm.xlu0 %3985, %v4676_v1  }
 0x361   :  { %3935 = vset.pattern.permute.xlu2 %v4564_v41  ;;  %3934 = vset.pattern.permute.xlu1 %v4555_v39 }
 0x362   :  { %3990 = vset.pattern.permute.xlu0 %v4555_v39 }
 0x369   :  { %563 = vperm.xlu2 %3935, %v4592_v44   ;;  %557 = vperm.xlu1 %3934, %v4592_v44   ;;  %v4806_v44 = vpop.permute.xlu1 %404 }
 0x36a   :  { %1598 = vperm.xlu0 %3990, %v4676_v1  }
 0x371   :  { %3938 = vset.pattern.permute.xlu2 %v4543_v36  ;;  %3937 = vset.pattern.permute.xlu1 %v4527_v22  ;;  %v4827_v51 = vpop.permute.xlu1 %423 }
 0x372   :  { %3995 = vset.pattern.permute.xlu0 %v4524_v21 }
 0x379   :  { %582 = vperm.xlu2 %3938, %v4599_v45   ;;  %576 = vperm.xlu1 %3937, %v4599_v45   ;;  %v436_v58 = vpop.permute.xlu1 %435 }
 0x37a   :  { %1629 = vperm.xlu0 %3995, %v4691_v2  }
 0x381   :  { %3940 = vset.pattern.permute.xlu2 %v4540_v35  ;;  %3939 = vset.pattern.permute.xlu1 %v4524_v21  ;;  %v454_v62 = vpop.permute.xlu1 %453 }
 0x382   :  { %4000 = vset.pattern.permute.xlu0 %v4520_v20  ;;  %vm791_vm10 = vcmp.eq.f32.partialorder %v4882_v46, %v454_v62  ;;  %vm727_vm13 = vcmp.lt.f32.partialorder %v4882_v46, %v454_v62 }
 0x389   :  { %594 = vperm.xlu2 %3940, %v4599_v45   ;;  %588 = vperm.xlu1 %3939, %v4599_v45  }
 0x38a   :  { %1660 = vperm.xlu0 %4000, %v4700_v3  }
 0x391   :  { %3943 = vset.pattern.permute.xlu2 %v4564_v41  ;;  %3942 = vset.pattern.permute.xlu1 %v4555_v39 }
 0x392   :  { %4005 = vset.pattern.permute.xlu0 %v4546_v37 }
 0x399   :  { %612 = vperm.xlu2 %3943, %v4599_v45   ;;  %606 = vperm.xlu1 %3942, %v4599_v45   ;;  %v3833_v45 = vsel %vm909_vm2, 1.0, %v7262_v26  ;;  %vm4853_vm2 = vcmp.lt.s32.totalorder %v4753_v18, %v4540_v35 }
 0x39a   :  { %1690 = vperm.xlu0 %4005, %v4700_v3   ;;  %v7394_v12 = vsel %vm4853_vm2, 4294967295, %v7393_v12  ;;  %vm854_vm6 = vmand %vm782_vm1, %vm4853_vm2  ;;  %vm788_vm1 = vcmp.eq.f32.partialorder %v4882_v46, %v436_v58 }
 0x39b   :  { %vm918_vm7 = vmor %vm718_vm3, %vm854_vm6  ;;  %vm724_vm3 = vcmp.lt.f32.partialorder %v4882_v46, %v436_v58  ;;  %v7399_v58 = vmov 0 }
 0x39c   :  { %vm860_vm6 = vmand %vm788_vm1, %vm4758_vm4  ;;  %v7400_v58 = vsel %vm4899_vm12, 4294967295, %v7399_v58 }
 0x3a1   :  { %3945 = vset.pattern.permute.xlu2 %v4527_v22  ;;  %3944 = vset.pattern.permute.xlu1 %v4520_v20 }
 0x3a2   :  { %4010 = vset.pattern.permute.xlu0 %v4543_v36 }
 0x3a9   :  { %625 = vperm.xlu2 %3945, %v4611_v49   ;;  %619 = vperm.xlu1 %3944, %v4611_v49  }
 0x3aa   :  { %1721 = vperm.xlu0 %4010, %v4719_v9  }
 0x3b1   :  { %3948 = vset.pattern.permute.xlu2 %v4540_v35  ;;  %3947 = vset.pattern.permute.xlu1 %v4524_v21 }
 0x3b2   :  { %4015 = vset.pattern.permute.xlu0 %v4564_v41 }
 0x3b9   :  { %643 = vperm.xlu2 %3948, %v4611_v49   ;;  %637 = vperm.xlu1 %3947, %v4611_v49  }
 0x3ba   :  { %1751 = vperm.xlu0 %4015, %v4719_v9  }
 0x3c1   :  { %3950 = vset.pattern.permute.xlu2 %v4555_v39  ;;  %3949 = vset.pattern.permute.xlu1 %v4546_v37 }
 0x3c9   :  { %655 = vperm.xlu2 %3950, %v4611_v49   ;;  %649 = vperm.xlu1 %3949, %v4611_v49   ;;  %v1123_v49 = vsel %vm210_vm0, %v3833_v45, 0.0  ;;  %v4880_v45 = vpop.permute.xlu1 %465 }
 0x3ca   :  { %7397 = vst [vmem:[#allocation3_spill] sm:$0xff] %v4880_v45 }
 0x3d1   :  { %3952 = vset.pattern.permute.xlu2 %v4520_v20  ;;  %3954 = vset.pattern.permute.xlu1 %v4543_v36 }
 0x3d9   :  { %1366 = vperm.xlu2 %3952, %v4628_v59   ;;  %1378 = vperm.xlu1 %3954, %v4628_v59  }
 0x3e1   :  { %3955 = vset.pattern.permute.xlu2 %v4524_v21  ;;  %3956 = vset.pattern.permute.xlu1 %v4540_v35 }
 0x3e4   :  { %1097 = vadd.xlane.f32.xlu0 %v1096_v29  ;;  %v3842_v29 = vsel %vm918_vm7, 1.0, %v7262_v26  ;;  %vm924_vm7 = vmor %vm724_vm3, %vm860_vm6 }
 0x3e5   :  { %v1150_v32 = vsel %vm210_vm0, %v3842_v29, 0.0  ;;  %v3848_v10 = vsel %vm924_vm7, 1.0, %v7262_v26 }
 0x3e6   :  { %v1168_v29 = vsel %vm210_vm0, %v3848_v10, 0.0 }
 0x3e9   :  { %1384 = vperm.xlu2 %3955, %v4628_v59   ;;  %1390 = vperm.xlu1 %3956, %v4628_v59  }
 0x3ec   :  { %1115 = vadd.xlane.f32.xlu0 %v1114_v42  ;;  %v473_v42 = vpop.permute.xlu2 %472 }
 0x3f1   :  { %3957 = vset.pattern.permute.xlu2 %v4546_v37  ;;  %3958 = vset.pattern.permute.xlu1 %v4555_v39 }
 0x3f4   :  { %1124 = vadd.xlane.f32.xlu0 %v1123_v49  ;;  %v491_v53 = vpop.permute.xlu2 %490 }
 0x3f9   :  { %1396 = vperm.xlu2 %3957, %v4628_v59   ;;  %1402 = vperm.xlu1 %3958, %v4628_v59  }
 0x3fc   :  { %1133 = vadd.xlane.f32.xlu0 %v1132_v56  ;;  %v4892_v56 = vpop.permute.xlu1 %484  ;;  %v4911_v30 = vpop.permute.xlu2 %502 }
 0x3fd   :  { %7398 = vst [vmem:[#allocation4_spill] sm:$0xff] %v4892_v56  ;;  %v668_v56 = vrot.slane %v4531_v33, 5 }
 0x3fe   :  { %7401 = vst [vmem:[#allocation5_spill] sm:$0xff] %v4911_v30 }
 0x401   :  { %3959 = vset.pattern.permute.xlu2 %v4564_v41  ;;  %3961 = vset.pattern.permute.xlu1 %v4527_v22 }
 0x404   :  { %1142 = vadd.xlane.f32.xlu0 %v1141_v17  ;;  %v4908_v17 = vpop.permute.xlu0 %447 }
 0x409   :  { %1408 = vperm.xlu2 %3959, %v4628_v59   ;;  %1421 = vperm.xlu1 %3961, %v4637_v60   ;;  %v3845_v59 = vsel %vm921_vm15, 1.0, %v7262_v26  ;;  %vm863_vm15 = vmand %vm791_vm10, %vm4899_vm12 }
 0x40a   :  { %v1159_v49 = vsel %vm210_vm0, %v3845_v59, 0.0  ;;  %v4915_v59 = vperm.slane %v667_v16, 0  ;;  %vm927_vm1 = vmor %vm727_vm13, %vm863_vm15  ;;  %v4927_v16 = vpop.permute.xlu2 %521 }
 0x40b   :  { %7402 = vst [vmem:[#allocation6_spill] sm:$0xff] %v4927_v16 }
 0x40c   :  { %1151 = vadd.xlane.f32.xlu0 %v1150_v32  ;;  %v4913_v32 = vpop.permute.xlu1 %496  ;;  %vm794_vm3 = vcmp.eq.f32.partialorder %v4915_v59, %v473_v42  ;;  %vm730_vm6 = vcmp.lt.f32.partialorder %v4915_v59, %v473_v42  ;;  %v4924_v62 = vpop.permute.xlu0 %478  ;;  %vm797_vm13 = vcmp.eq.f32.partialorder %v4915_v59, %v491_v53  ;;  %vm733_vm15 = vcmp.lt.f32.partialorder %v4915_v59, %v491_v53 }
 0x40d   :  { %vm866_vm7 = vmand %vm794_vm3, %vm4776_vm9 }
 0x40e   :  { %vm930_vm10 = vmor %vm730_vm6, %vm866_vm7 }
 0x40f   :  { %v3854_v18 = vsel %vm930_vm10, 1.0, %v7262_v26 }
 0x411   :  { %3962 = vset.pattern.permute.xlu2 %v4543_v36  ;;  %3963 = vset.pattern.permute.xlu1 %v4524_v21 }
 0x412   :  { %v4939_v16 = vpop.permute.xlu2 %533 }
 0x413   :  { %7404 = vst [vmem:[#allocation8_spill] sm:$0xff] %v4939_v16  ;;  %v4952_v16 = vperm.slane %v668_v56, 0 }
 0x414   :  { %1160 = vadd.xlane.f32.xlu0 %v1159_v49  ;;  %v3851_v49 = vsel %vm927_vm1, 1.0, %v7262_v26  ;;  %vm869_vm1 = vmand %vm797_vm13, %vm4792_vm14  ;;  %v509_v42 = vpop.permute.xlu0 %508 }
 0x415   :  { %v1177_v10 = vsel %vm210_vm0, %v3851_v49, 0.0  ;;  %v1186_v49 = vsel %vm210_vm0, %v3854_v18, 0.0  ;;  %vm933_vm3 = vmor %vm733_vm15, %vm869_vm1  ;;  %vm800_vm6 = vcmp.eq.f32.partialorder %v4915_v59, %v509_v42  ;;  %vm736_vm7 = vcmp.lt.f32.partialorder %v4915_v59, %v509_v42 }
 0x416   :  { %v3857_v30 = vsel %vm933_vm3, 1.0, %v7262_v26  ;;  %vm872_vm10 = vmand %vm800_vm6, %vm4813_vm5 }
 0x417   :  { %v1195_v18 = vsel %vm210_vm0, %v3857_v30, 0.0  ;;  %vm936_vm13 = vmor %vm736_vm7, %vm872_vm10 }
 0x419   :  { %1427 = vperm.xlu2 %3962, %v4637_v60   ;;  %1433 = vperm.xlu1 %3963, %v4637_v60  }
 0x41a   :  { %v4950_v53 = vpop.permute.xlu2 %551 }
 0x41b   :  { %7405 = vst [vmem:[#allocation9_spill] sm:$0xff] %v4950_v53  ;;  %v669_v53 = vrot.slane %v4531_v33, 6 }
 0x41c   :  { %1169 = vadd.xlane.f32.xlu0 %v1168_v29  ;;  %v4929_v29 = vpop.permute.xlu1 %514 }
 0x41d   :  { %7403 = vst [vmem:[#allocation7_spill] sm:$0xff] %v4929_v29  ;;  %v3860_v29 = vsel %vm936_vm13, 1.0, %v7262_v26 }
 0x41e   :  { %v1204_v30 = vsel %vm210_vm0, %v3860_v29, 0.0 }
 0x421   :  { %3964 = vset.pattern.permute.xlu2 %v4540_v35  ;;  %3966 = vset.pattern.permute.xlu1 %v4555_v39 }
 0x422   :  { %v564_v42 = vpop.permute.xlu2 %563 }
 0x424   :  { %1178 = vadd.xlane.f32.xlu0 %v1177_v10  ;;  %v528_v10 = vpop.permute.xlu1 %527 }
 0x425   :  { %vm803_vm15 = vcmp.eq.f32.partialorder %v4952_v16, %v528_v10  ;;  %vm739_vm1 = vcmp.lt.f32.partialorder %v4952_v16, %v528_v10 }
 0x426   :  { %vm875_vm3 = vmand %vm803_vm15, %vm4835_vm11 }
 0x427   :  { %vm939_vm6 = vmor %vm739_vm1, %vm875_vm3  ;;  %vm809_vm1 = vcmp.eq.f32.partialorder %v4952_v16, %v564_v42  ;;  %vm745_vm3 = vcmp.lt.f32.partialorder %v4952_v16, %v564_v42 }
 0x428   :  { %v3863_v56 = vsel %vm939_vm6, 1.0, %v7262_v26  ;;  %vm881_vm6 = vmand %vm809_vm1, %vm4867_vm8 }
 0x429   :  { %1439 = vperm.xlu2 %3964, %v4637_v60   ;;  %1451 = vperm.xlu1 %3966, %v4637_v60   ;;  %v1213_v29 = vsel %vm210_vm0, %v3863_v56, 0.0 }
 0x42a   :  { %v583_v10 = vpop.permute.xlu2 %582 }
 0x42c   :  { %1187 = vadd.xlane.f32.xlu0 %v1186_v49  ;;  %v546_v49 = vpop.permute.xlu1 %545 }
 0x42d   :  { %vm806_vm7 = vcmp.eq.f32.partialorder %v4952_v16, %v546_v49  ;;  %vm742_vm10 = vcmp.lt.f32.partialorder %v4952_v16, %v546_v49 }
 0x42e   :  { %vm878_vm13 = vmand %vm806_vm7, %vm4853_vm2 }
 0x42f   :  { %vm942_vm15 = vmor %vm742_vm10, %vm878_vm13 }
 0x430   :  { %vm945_vm7 = vmor %vm745_vm3, %vm881_vm6 }
 0x431   :  { %3967 = vset.pattern.permute.xlu2 %v4564_v41  ;;  %3968 = vset.pattern.permute.xlu1 %v4520_v20 }
 0x434   :  { %1196 = vadd.xlane.f32.xlu0 %v1195_v18  ;;  %v4962_v18 = vpop.permute.xlu1 %557 }
 0x435   :  { %7406 = vst [vmem:[#allocation10_spill] sm:$0xff] %v4962_v18  ;;  %v3866_v18 = vsel %vm942_vm15, 1.0, %v7262_v26  ;;  %v4991_v26 = vperm.slane %v669_v53, 0 }
 0x436   :  { %v1222_v56 = vsel %vm210_vm0, %v3866_v18, 0.0 }
 0x437   :  { %vm812_vm10 = vcmp.eq.f32.partialorder %v4991_v26, %v583_v10  ;;  %vm748_vm13 = vcmp.lt.f32.partialorder %v4991_v26, %v583_v10 }
 0x438   :  { %vm884_vm15 = vmand %vm812_vm10, %vm4758_vm4 }
 0x439   :  { %1457 = vperm.xlu2 %3967, %v4637_v60   ;;  %1464 = vperm.xlu1 %3968, %v4652_v61   ;;  %v4971_v60 = vpop.permute.xlu0 %539  ;;  %vm948_vm1 = vmor %vm748_vm13, %vm884_vm15 }
 0x43a   :  { %7407 = vst [vmem:[#allocation11_spill] sm:$0xff] %v4971_v60  ;;  %v7411_v60 = vmov 0.0  }
 0x43b   :  { %v3869_v45 = vsel %vm945_vm7, 1.0, %v7411_v60 }
 0x43c   :  { %1205 = vadd.xlane.f32.xlu0 %v1204_v30  ;;  %v4974_v30 = vpop.permute.xlu1 %576  ;;  %v1231_v18 = vsel %vm210_vm0, %v3869_v45, 0.0 }
 0x43d   :  { %7408 = vst [vmem:[#allocation12_spill] sm:$0xff] %v4974_v30 }
 0x441   :  { %3969 = vset.pattern.permute.xlu2 %v4527_v22  ;;  %3971 = vset.pattern.permute.xlu1 %v4524_v21  ;;  %v4984_v49 = vpop.permute.xlu0 %570 }
 0x444   :  { %1214 = vadd.xlane.f32.xlu0 %v1213_v29  ;;  %v4987_v29 = vpop.permute.xlu2 %594  ;;  %v4989_v30 = vpop.permute.xlu1 %588 }
 0x445   :  { %7409 = vst [vmem:[#allocation13_spill] sm:$0xff] %v4987_v29  ;;  %v3872_v29 = vsel %vm948_vm1, 1.0, %v7411_v60 }
 0x446   :  { %7410 = vst [vmem:[#allocation14_spill] sm:$0xff] %v4989_v30  ;;  %v670_v30 = vrot.slane %v4531_v33, 7  ;;  %v1240_v45 = vsel %vm210_vm0, %v3872_v29, 0.0 }
 0x449   :  { %1470 = vperm.xlu2 %3969, %v4652_v61   ;;  %1482 = vperm.xlu1 %3971, %v4652_v61   ;;  %v601_v42 = vpop.permute.xlu0 %600 }
 0x44a   :  { %vm815_vm3 = vcmp.eq.f32.partialorder %v4991_v26, %v601_v42  ;;  %vm751_vm6 = vcmp.lt.f32.partialorder %v4991_v26, %v601_v42 }
 0x44b   :  { %vm887_vm7 = vmand %vm815_vm3, %vm4899_vm12 }
 0x44c   :  { %1223 = vadd.xlane.f32.xlu0 %v1222_v56  ;;  %v5001_v56 = vpop.permute.xlu2 %612  ;;  %v5003_v53 = vpop.permute.xlu1 %606  ;;  %vm951_vm10 = vmor %vm751_vm6, %vm887_vm7 }
 0x44d   :  { %7412 = vst [vmem:[#allocation15_spill] sm:$0xff] %v5001_v56  ;;  %v5016_v56 = vperm.slane %v670_v30, 0  ;;  %v3875_v33 = vsel %vm951_vm10, 1.0, %v7411_v60 }
 0x44e   :  { %v1249_v29 = vsel %vm210_vm0, %v3875_v33, 0.0 }
 0x451   :  { %3972 = vset.pattern.permute.xlu2 %v4540_v35  ;;  %3973 = vset.pattern.permute.xlu1 %v4546_v37 }
 0x454   :  { %1232 = vadd.xlane.f32.xlu0 %v1231_v18  ;;  %v5014_v10 = vpop.permute.xlu2 %625  ;;  %v620_v18 = vpop.permute.xlu1 %619 }
 0x455   :  { %vm818_vm13 = vcmp.eq.f32.partialorder %v5016_v56, %v620_v18  ;;  %vm754_vm15 = vcmp.lt.f32.partialorder %v5016_v56, %v620_v18 }
 0x456   :  { %vm890_vm1 = vmand %vm818_vm13, %vm4776_vm9 }
 0x457   :  { %vm954_vm3 = vmor %vm754_vm15, %vm890_vm1 }
 0x459   :  { %1488 = vperm.xlu2 %3972, %v4652_v61   ;;  %1494 = vperm.xlu1 %3973, %v4652_v61  }
 0x45c   :  { %1241 = vadd.xlane.f32.xlu0 %v1240_v45  ;;  %v5026_v42 = vpop.permute.xlu2 %643  ;;  %v638_v30 = vpop.permute.xlu1 %637  ;;  %v3878_v45 = vsel %vm954_vm3, 1.0, %v7411_v60 }
 0x45d   :  { %vm821_vm6 = vcmp.eq.f32.partialorder %v5016_v56, %v638_v30  ;;  %vm757_vm7 = vcmp.lt.f32.partialorder %v5016_v56, %v638_v30  ;;  %v1258_v18 = vsel %vm210_vm0, %v3878_v45, 0.0 }
 0x45e   :  { %vm893_vm10 = vmand %vm821_vm6, %vm4792_vm14 }
 0x45f   :  { %vm957_vm13 = vmor %vm757_vm7, %vm893_vm10  ;;  %vm762_vm7 = vcmp.eq.f32.partialorder %v4534_v34, %v4801_v40  ;;  %vm698_vm10 = vcmp.lt.f32.partialorder %v4534_v34, %v4801_v40 }
 0x461   :  { %3974 = vset.pattern.permute.xlu2 %v4555_v39  ;;  %3976 = vset.pattern.permute.xlu1 %v4520_v20 }
 0x464   :  { %1250 = vadd.xlane.f32.xlu0 %v1249_v29  ;;  %v656_v33 = vpop.permute.xlu2 %655  ;;  %v3881_v29 = vsel %vm957_vm13, 1.0, %v7411_v60  ;;  %vm834_vm13 = vmand %vm762_vm7, %vm4776_vm9 }
 0x465   :  { %vm824_vm15 = vcmp.eq.f32.partialorder %v5016_v56, %v656_v33  ;;  %vm760_vm1 = vcmp.lt.f32.partialorder %v5016_v56, %v656_v33 }
 0x466   :  { %vm896_vm3 = vmand %vm824_vm15, %vm4813_vm5 }
 0x467   :  { %vm960_vm6 = vmor %vm760_vm1, %vm896_vm3  ;;  %vm766_vm1 = vcmp.eq.f32.partialorder %v4534_v34, %v4724_v8  ;;  %vm702_vm3 = vcmp.lt.f32.partialorder %v4534_v34, %v4724_v8 }
 0x468   :  { %v3884_v30 = vsel %vm960_vm6, 1.0, %v7411_v60  ;;  %vm898_vm15 = vmor %vm698_vm10, %vm834_vm13  ;;  %vm763_vm10 = vcmp.eq.f32.partialorder %v4534_v34, %v4716_v7  ;;  %vm768_vm13 = vcmp.eq.f32.partialorder %v4534_v34, %v4729_v11 }
 0x469   :  { %1500 = vperm.xlu2 %3974, %v4652_v61   ;;  %1513 = vperm.xlu1 %3976, %v4667_v0   ;;  %v1267_v61 = vsel %vm210_vm0, %v3881_v29, 0.0  ;;  %v1276_v45 = vsel %vm210_vm0, %v3884_v30, 0.0  ;;  %vm838_vm6 = vmand %vm766_vm1, %vm4853_vm2 }
 0x46a   :  { %vm902_vm7 = vmor %vm702_vm3, %vm838_vm6  ;;  %vm704_vm3 = vcmp.lt.f32.partialorder %v4534_v34, %v4729_v11 }
 0x46b   :  { %v3826_v8 = vsel %vm902_vm7, 1.0, %v7411_v60  ;;  %vm835_vm1 = vmand %vm763_vm10, %vm4835_vm11  ;;  %vm765_vm7 = vcmp.eq.f32.partialorder %v4534_v34, %v4714_v4  ;;  %vm771_vm10 = vcmp.eq.f32.partialorder %v4770_v25, %v4742_v14 }
 0x46c   :  { %1259 = vadd.xlane.f32.xlu0 %v1258_v18  ;;  %vm840_vm6 = vmand %vm768_vm13, %vm4813_vm5  ;;  %vm701_vm13 = vcmp.lt.f32.partialorder %v4534_v34, %v4714_v4 }
 0x46d   :  { %vm904_vm4 = vmor %vm704_vm3, %vm840_vm6  ;;  %vm767_vm6 = vcmp.eq.f32.partialorder %v4534_v34, %v4731_v6 }
 0x46e   :  { %vm843_vm3 = vmand %vm771_vm10, %vm4835_vm11  ;;  %vm703_vm10 = vcmp.lt.f32.partialorder %v4534_v34, %v4731_v6 }
 0x471   :  { %3977 = vset.pattern.permute.xlu2 %v4527_v22  ;;  %3978 = vset.pattern.permute.xlu1 %v4543_v36 }
 0x474   :  { %1268 = vadd.xlane.f32.xlu0 %v1267_v61 }
 0x479   :  { %1519 = vperm.xlu2 %3977, %v4667_v0   ;;  %1525 = vperm.xlu1 %3978, %v4667_v0  }
 0x47c   :  { %1277 = vadd.xlane.f32.xlu0 %v1276_v45  ;;  %v5133_v45 = vpop.permute.xlu0 %631 }
 0x481   :  { %3979 = vset.pattern.permute.xlu2 %v4524_v21  ;;  %3981 = vset.pattern.permute.xlu1 %v4546_v37 }
 0x489   :  { %1531 = vperm.xlu2 %3979, %v4667_v0   ;;  %1543 = vperm.xlu1 %3981, %v4667_v0  }
 0x491   :  { %3982 = vset.pattern.permute.xlu2 %v4555_v39  ;;  %3983 = vset.pattern.permute.xlu1 %v4564_v41 }
 0x499   :  { %1549 = vperm.xlu2 %3982, %v4667_v0   ;;  %1555 = vperm.xlu1 %3983, %v4667_v0   ;;  %v5090_v0 = vpop.permute.xlu1 %649 }
 0x4a1   :  { %3984 = vset.pattern.permute.xlu2 %v4520_v20  ;;  %3986 = vset.pattern.permute.xlu1 %v4543_v36 }
 0x4a9   :  { %1562 = vperm.xlu2 %3984, %v4676_v1   ;;  %1574 = vperm.xlu1 %3986, %v4676_v1  }
 0x4b1   :  { %3987 = vset.pattern.permute.xlu2 %v4524_v21  ;;  %3988 = vset.pattern.permute.xlu1 %v4540_v35 }
 0x4b9   :  { %1580 = vperm.xlu2 %3987, %v4676_v1   ;;  %1586 = vperm.xlu1 %3988, %v4676_v1  }
 0x4c1   :  { %3989 = vset.pattern.permute.xlu2 %v4546_v37  ;;  %3991 = vset.pattern.permute.xlu1 %v4564_v41 }
 0x4c9   :  { %1592 = vperm.xlu2 %3989, %v4676_v1   ;;  %1604 = vperm.xlu1 %3991, %v4676_v1   ;;  %v5094_v1 = vpop.permute.xlu1 %1378 }
 0x4d1   :  { %3992 = vset.pattern.permute.xlu2 %v4520_v20  ;;  %3993 = vset.pattern.permute.xlu1 %v4527_v22 }
 0x4d9   :  { %1611 = vperm.xlu2 %3992, %v4691_v2   ;;  %1617 = vperm.xlu1 %3993, %v4691_v2  }
 0x4e1   :  { %3994 = vset.pattern.permute.xlu2 %v4543_v36  ;;  %3996 = vset.pattern.permute.xlu1 %v4540_v35 }
 0x4e9   :  { %1623 = vperm.xlu2 %3994, %v4691_v2   ;;  %1635 = vperm.xlu1 %3996, %v4691_v2  }
 0x4f1   :  { %3997 = vset.pattern.permute.xlu2 %v4546_v37  ;;  %3998 = vset.pattern.permute.xlu1 %v4555_v39 }
 0x4f9   :  { %1641 = vperm.xlu2 %3997, %v4691_v2   ;;  %1647 = vperm.xlu1 %3998, %v4691_v2  }
 0x501   :  { %3999 = vset.pattern.permute.xlu2 %v4564_v41  ;;  %4001 = vset.pattern.permute.xlu1 %v4527_v22 }
 0x509   :  { %1653 = vperm.xlu2 %3999, %v4691_v2   ;;  %1666 = vperm.xlu1 %4001, %v4700_v3   ;;  %v5100_v2 = vpop.permute.xlu1 %1390 }
 0x511   :  { %4002 = vset.pattern.permute.xlu2 %v4543_v36  ;;  %4003 = vset.pattern.permute.xlu1 %v4524_v21  ;;  %v5098_v36 = vpop.permute.xlu2 %1366  ;;  %v5106_v33 = vpop.permute.xlu1 %1402 }
 0x512   :  { %7413 = vst [vmem:[#allocation16_spill] sm:$0xff] %v5106_v33 }
 0x519   :  { %1672 = vperm.xlu2 %4002, %v4700_v3   ;;  %1678 = vperm.xlu1 %4003, %v4700_v3   ;;  %v5104_v18 = vpop.permute.xlu2 %1384 }
 0x521   :  { %4004 = vset.pattern.permute.xlu2 %v4540_v35  ;;  %4006 = vset.pattern.permute.xlu1 %v4555_v39  ;;  %v5110_v29 = vpop.permute.xlu2 %1396 }
 0x529   :  { %1684 = vperm.xlu2 %4004, %v4700_v3   ;;  %1696 = vperm.xlu1 %4006, %v4700_v3  }
 0x531   :  { %4007 = vset.pattern.permute.xlu2 %v4564_v41  ;;  %4008 = vset.pattern.permute.xlu1 %v4520_v20  ;;  %v5112_v41 = vpop.permute.xlu1 %1421  ;;  %v5116_v20 = vpop.permute.xlu2 %1408 }
 0x532   :  { %7414 = vst [vmem:[#allocation17_spill] sm:$0xff] %v5116_v20 }
 0x539   :  { %1702 = vperm.xlu2 %4007, %v4700_v3   ;;  %1709 = vperm.xlu1 %4008, %v4719_v9   ;;  %v5118_v3 = vpop.permute.xlu1 %1433  ;;  %v5122_v61 = vpop.permute.xlu2 %1427 }
 0x53a   :  { %7415 = vst [vmem:[#allocation18_spill] sm:$0xff] %v5118_v3 }
 0x53b   :  { %7416 = vst [vmem:[#allocation19_spill] sm:$0xff] %v5122_v61 }
 0x541   :  { %4009 = vset.pattern.permute.xlu2 %v4527_v22  ;;  %4011 = vset.pattern.permute.xlu1 %v4524_v21  ;;  %v5124_v22 = vpop.permute.xlu1 %1451  ;;  %v5128_v21 = vpop.permute.xlu2 %1439 }
 0x542   :  { %7417 = vst [vmem:[#allocation20_spill] sm:$0xff] %v5124_v22 }
 0x549   :  { %1715 = vperm.xlu2 %4009, %v4719_v9   ;;  %1727 = vperm.xlu1 %4011, %v4719_v9   ;;  %v5130_v30 = vpop.permute.xlu1 %1464  ;;  %v5135_v3 = vpop.permute.xlu2 %1457 }
 0x54a   :  { %7418 = vst [vmem:[#allocation21_spill] sm:$0xff] %v5130_v30 }
 0x551   :  { %4012 = vset.pattern.permute.xlu2 %v4540_v35  ;;  %4013 = vset.pattern.permute.xlu1 %v4546_v37  ;;  %v5137_v35 = vpop.permute.xlu1 %1482  ;;  %v5140_v37 = vpop.permute.xlu0 %661 }
 0x552   :  { %7419 = vst [vmem:[#allocation22_spill] sm:$0xff] %v5137_v35  ;;  %v5142_v22 = vpop.permute.xlu2 %1470  ;;  %v3822_v35 = vsel %vm898_vm15, 1.0, %v7411_v60  ;;  %vm699_vm15 = vcmp.lt.f32.partialorder %v4534_v34, %v4716_v7 }
 0x553   :  { %7420 = vst [vmem:[#allocation23_spill] sm:$0xff] %v5142_v22  ;;  %v1090_v40 = vsel %vm210_vm0, %v3822_v35, 0.0  ;;  %v1102_v35 = vsel %vm210_vm0, %v3826_v8, 0.0  ;;  %vm899_vm9 = vmor %vm699_vm15, %vm835_vm1  ;;  %vm707_vm1 = vcmp.lt.f32.partialorder %v4770_v25, %v4742_v14 }
 0x554   :  { %v3823_v11 = vsel %vm899_vm9, 1.0, %v7411_v60  ;;  %vm837_vm15 = vmand %vm765_vm7, %vm4792_vm14  ;;  %vm774_vm7 = vcmp.eq.f32.partialorder %v4770_v25, %v4746_v15 }
 0x555   :  { %v1093_v8 = vsel %vm210_vm0, %v3823_v11, 0.0  ;;  %vm901_vm9 = vmor %vm701_vm13, %vm837_vm15  ;;  %vm710_vm15 = vcmp.lt.f32.partialorder %v4770_v25, %v4746_v15 }
 0x556   :  { %v3825_v11 = vsel %vm901_vm9, 1.0, %v7411_v60  ;;  %vm839_vm13 = vmand %vm767_vm6, %vm4899_vm12  ;;  %vm777_vm6 = vcmp.eq.f32.partialorder %v4770_v25, %v4750_v63 }
 0x559   :  { %1733 = vperm.xlu2 %4012, %v4719_v9   ;;  %1739 = vperm.xlu1 %4013, %v4719_v9   ;;  %v5144_v61 = vpop.permute.xlu1 %1494  ;;  %v5146_v33 = vpop.permute.xlu0 %1372 }
 0x55a   :  { %v5148_v20 = vpop.permute.xlu2 %1488 }
 0x55b   :  { %7421 = vst [vmem:[#allocation24_spill] sm:$0xff] %v5148_v20 }
 0x561   :  { %4014 = vset.pattern.permute.xlu2 %v4555_v39  ;;  %v5152_v39 = vpop.permute.xlu1 %1513 }
 0x562   :  { %v5160_v22 = vpop.permute.xlu2 %1500 }
 0x563   :  { %7422 = vst [vmem:[#allocation25_spill] sm:$0xff] %v5160_v22 }
 0x569   :  { %1745 = vperm.xlu2 %4014, %v4719_v9   ;;  %v5158_v9 = vpop.permute.xlu0 %1415  ;;  %v5164_v20 = vpop.permute.xlu1 %1525 }
 0x56a   :  { %7423 = vst [vmem:[#allocation26_spill] sm:$0xff] %v5164_v20  ;;  %v5176_v22 = vpop.permute.xlu2 %1519 }
 0x56b   :  { %7424 = vst [vmem:[#allocation27_spill] sm:$0xff] %v5176_v22  ;;  %v3828_v22 = vsel %vm904_vm4, 1.0, %v7411_v60  ;;  %vm907_vm4 = vmor %vm707_vm1, %vm843_vm3 }
 0x56c   :  { %vm846_vm1 = vmand %vm774_vm7, %vm4853_vm2  ;;  %vm705_vm7 = vcmp.lt.f32.partialorder %v4534_v34, %v4736_v13 }
 0x56d   :  { %vm903_vm3 = vmor %vm703_vm10, %vm839_vm13  ;;  %vm713_vm13 = vcmp.lt.f32.partialorder %v4770_v25, %v4750_v63 }
 0x56e   :  { %vm910_vm9 = vmor %vm710_vm15, %vm846_vm1 }
 0x56f   :  { %vm849_vm15 = vmand %vm777_vm6, %vm4867_vm8  ;;  %vm708_vm6 = vcmp.lt.f32.partialorder %v4770_v25, %v4740_v5 }
 0x571   :  { %v5172_v30 = vpop.permute.xlu0 %1445  ;;  %v5180_v20 = vpop.permute.xlu1 %1543 }
 0x572   :  { %7425 = vst [vmem:[#allocation28_spill] sm:$0xff] %v5180_v20  ;;  %v5196_v7 = vpop.permute.xlu2 %1531 }
 0x579   :  { %v5200_v20 = vpop.permute.xlu1 %1555 }
 0x57a   :  { %7426 = vst [vmem:[#allocation29_spill] sm:$0xff] %v5200_v20  ;;  %v5218_v4 = vpop.permute.xlu2 %1549 }
 0x581   :  { %v5222_v14 = vpop.permute.xlu1 %1574 }
 0x582   :  { %7427 = vst [vmem:[#allocation30_spill] sm:$0xff] %v5222_v14  ;;  %v5240_v6 = vpop.permute.xlu2 %1562 }
 0x583   :  { %1091 = vadd.xlane.f32.xlu1 %v1090_v40  ;;  %v5192_v40 = vpop.permute.xlu0 %1476  ;;  %7428 = vst [vmem:[#allocation31_spill] sm:$0xff] %v5240_v6 }
 0x589   :  { %v5244_v15 = vpop.permute.xlu1 %1586 }
 0x58b   :  { %1103 = vadd.xlane.f32.xlu1 %v1102_v35  ;;  %v1108_v35 = vsel %vm210_vm0, %v3828_v22, 0.0  ;;  %v5214_v20 = vpop.permute.xlu0 %1506  ;;  %v1099_v22 = vsel %vm210_vm0, %v3825_v11, 0.0  ;;  %v3827_v11 = vsel %vm903_vm3, 1.0, %v7411_v60  ;;  %vm913_vm3 = vmor %vm713_vm13, %vm849_vm15  ;;  %vm716_vm13 = vcmp.lt.f32.partialorder %v4829_v52, %v4844_v55 }
 0x592   :  { %1094 = vadd.xlane.f32.xlu2 %v1093_v8  ;;  %v3831_v8 = vsel %vm907_vm4, 1.0, %v7411_v60  ;;  %vm769_vm4 = vcmp.eq.f32.partialorder %v4534_v34, %v4736_v13  ;;  %v5262_v34 = vpop.permute.xlu2 %1580  ;;  %v5266_v13 = vpop.permute.xlu1 %1604 }
 0x593   :  { %1109 = vadd.xlane.f32.xlu1 %v1108_v35  ;;  %v1117_v35 = vsel %vm210_vm0, %v3831_v8, 0.0  ;;  %v5236_v14 = vpop.permute.xlu0 %1537  ;;  %vm841_vm10 = vmand %vm769_vm4, %vm4867_vm8  ;;  %v1105_v8 = vsel %vm210_vm0, %v3827_v11, 0.0  ;;  %vm780_vm4 = vcmp.eq.f32.partialorder %v4829_v52, %v4844_v55  ;;  %v3837_v11 = vsel %vm913_vm3, 1.0, %v7411_v60 }
 0x594   :  { %vm905_vm1 = vmor %vm705_vm7, %vm841_vm10  ;;  %vm7429_vm7 = vnez %v7384_v19  ;;  %vm775_vm8 = vcmp.eq.f32.partialorder %v4770_v25, %v4822_v48 }
 0x595   :  { %v3829_v63 = vsel %vm905_vm1, 1.0, %v7411_v60  ;;  %vm852_vm15 = vmand %vm780_vm4, %vm7429_vm7  ;;  %vm711_vm4 = vcmp.lt.f32.partialorder %v4770_v25, %v4822_v48 }
 0x596   :  { %vm916_vm3 = vmor %vm716_vm13, %vm852_vm15 }
 0x59a   :  { %1100 = vadd.xlane.f32.xlu2 %v1099_v22  ;;  %v3834_v22 = vsel %vm910_vm9, 1.0, %v7411_v60  ;;  %vm772_vm9 = vcmp.eq.f32.partialorder %v4770_v25, %v4740_v5  ;;  %v5284_v5 = vpop.permute.xlu2 %1592  ;;  %v5288_v55 = vpop.permute.xlu1 %1617 }
 0x59b   :  { %1118 = vadd.xlane.f32.xlu1 %v1117_v35  ;;  %v1126_v35 = vsel %vm210_vm0, %v3834_v22, 0.0  ;;  %v5258_v6 = vpop.permute.xlu0 %1568  ;;  %vm844_vm10 = vmand %vm772_vm9, %vm7429_vm7  ;;  %v1111_v22 = vsel %vm210_vm0, %v3829_v63, 0.0  ;;  %vm783_vm9 = vcmp.eq.f32.partialorder %v4829_v52, %v4806_v44  ;;  %7430 = vst [vmem:[#allocation32_spill] sm:$0xff] %v5288_v55 }
 0x59c   :  { %vm908_vm1 = vmor %vm708_vm6, %vm844_vm10  ;;  %vm719_vm10 = vcmp.lt.f32.partialorder %v4829_v52, %v4806_v44 }
 0x59d   :  { %v3832_v63 = vsel %vm908_vm1, 1.0, %v7411_v60  ;;  %vm847_vm6 = vmand %vm775_vm8, %vm4899_vm12  ;;  %vm786_vm8 = vcmp.eq.f32.partialorder %v4882_v46, %v4827_v51 }
 0x59e   :  { %vm855_vm13 = vmand %vm783_vm9, %vm4899_vm12  ;;  %vm714_vm9 = vcmp.lt.f32.partialorder %v4829_v52, %v4768_v24  ;;  %vm781_vm12 = vcmp.eq.f32.partialorder %v4829_v52, %v4786_v31 }
 0x59f   :  { %vm911_vm15 = vmor %vm711_vm4, %vm847_vm6  ;;  %vm7433_vm4 = vnez %v7386_v28 }
 0x5a0   :  { %vm919_vm1 = vmor %vm719_vm10, %vm855_vm13  ;;  %v3835_v48 = vsel %vm911_vm15, 1.0, %v7411_v60  ;;  %vm722_vm10 = vcmp.lt.f32.partialorder %v4882_v46, %v4827_v51 }
 0x5a1   :  { %vm858_vm13 = vmand %vm786_vm8, %vm7433_vm4  ;;  %vm717_vm8 = vcmp.lt.f32.partialorder %v4829_v52, %v4786_v31 }
 0x5a2   :  { %1106 = vadd.xlane.f32.xlu2 %v1105_v8  ;;  %v1135_v8 = vsel %vm210_vm0, %v3837_v11, 0.0  ;;  %v1120_v11 = vsel %vm210_vm0, %v3832_v63, 0.0  ;;  %v5306_v25 = vpop.permute.xlu2 %1611  ;;  %v5310_v44 = vpop.permute.xlu1 %1635  ;;  %v3843_v63 = vsel %vm919_vm1, 1.0, %v7411_v60  ;;  %vm922_vm1 = vmor %vm722_vm10, %vm858_vm13 }
 0x5a3   :  { %1127 = vadd.xlane.f32.xlu1 %v1126_v35  ;;  %v5280_v35 = vpop.permute.xlu0 %1598  ;;  %7432 = vst [vmem:[#allocation34_spill] sm:$0xff] %v5310_v44 }
 0x5aa   :  { %1112 = vadd.xlane.f32.xlu2 %v1111_v22  ;;  %v3840_v22 = vsel %vm916_vm3, 1.0, %v7411_v60  ;;  %vm778_vm3 = vcmp.eq.f32.partialorder %v4829_v52, %v4768_v24  ;;  %v5328_v24 = vpop.permute.xlu2 %1623  ;;  %v5332_v51 = vpop.permute.xlu1 %1647 }
 0x5ab   :  { %1136 = vadd.xlane.f32.xlu1 %v1135_v8  ;;  %v1144_v8 = vsel %vm210_vm0, %v3840_v22, 0.0  ;;  %v5302_v55 = vpop.permute.xlu0 %1629  ;;  %vm850_vm6 = vmand %vm778_vm3, %vm7433_vm4  ;;  %v1129_v22 = vsel %vm210_vm0, %v3835_v48, 0.0  ;;  %vm789_vm3 = vcmp.eq.f32.partialorder %v4882_v46, %v4847_v57  ;;  %7434 = vst [vmem:[#allocation35_spill] sm:$0xff] %v5332_v51 }
 0x5ac   :  { %7431 = vst [vmem:[#allocation33_spill] sm:$0xff] %v5302_v55  ;;  %vm914_vm15 = vmor %vm714_vm9, %vm850_vm6  ;;  %vm725_vm6 = vcmp.lt.f32.partialorder %v4882_v46, %v4847_v57  ;;  %v7455_v55 = vld [vmem:[#allocation14_spill] sm:$0xff] }
 0x5ad   :  { %v3838_v48 = vsel %vm914_vm15, 1.0, %v7411_v60  ;;  %vm853_vm9 = vmand %vm781_vm12, %vm4792_vm14  ;;  %vm792_vm12 = vcmp.eq.f32.partialorder %v4882_v46, %v4863_v23 }
 0x5ae   :  { %vm861_vm10 = vmand %vm789_vm3, %vm4792_vm14  ;;  %vm720_vm3 = vcmp.lt.f32.partialorder %v4829_v52, %v4804_v43 }
 0x5af   :  { %vm917_vm13 = vmor %vm717_vm8, %vm853_vm9  ;;  %vm728_vm9 = vcmp.lt.f32.partialorder %v4882_v46, %v4863_v23 }
 0x5b0   :  { %vm925_vm15 = vmor %vm725_vm6, %vm861_vm10 }
 0x5b1   :  { %vm864_vm6 = vmand %vm792_vm12, %vm4813_vm5  ;;  %vm723_vm12 = vcmp.lt.f32.partialorder %v4882_v46, %v4825_v50 }
 0x5b2   :  { %1121 = vadd.xlane.f32.xlu2 %v1120_v11  ;;  %v1153_v11 = vsel %vm210_vm0, %v3843_v63, 0.0  ;;  %v1138_v63 = vsel %vm210_vm0, %v3838_v48, 0.0  ;;  %v5350_v31 = vpop.permute.xlu2 %1641  ;;  %v5354_v57 = vpop.permute.xlu1 %1666  ;;  %v3841_v48 = vsel %vm917_vm13, 1.0, %v7411_v60  ;;  %vm928_vm13 = vmor %vm728_vm9, %vm864_vm6 }
 0x5b3   :  { %1145 = vadd.xlane.f32.xlu1 %v1144_v8  ;;  %v5324_v8 = vpop.permute.xlu0 %1660  ;;  %7436 = vst [vmem:[#allocation37_spill] sm:$0xff] %v5354_v57 }
 0x5ba   :  { %1130 = vadd.xlane.f32.xlu2 %v1129_v22  ;;  %v3846_v22 = vsel %vm922_vm1, 1.0, %v7411_v60  ;;  %vm784_vm1 = vcmp.eq.f32.partialorder %v4829_v52, %v4804_v43  ;;  %v5372_v43 = vpop.permute.xlu2 %1653  ;;  %v5376_v52 = vpop.permute.xlu1 %1678 }
 0x5bb   :  { %1154 = vadd.xlane.f32.xlu1 %v1153_v11  ;;  %v1162_v11 = vsel %vm210_vm0, %v3846_v22, 0.0  ;;  %v5346_v44 = vpop.permute.xlu0 %1690  ;;  %vm856_vm8 = vmand %vm784_vm1, %vm4813_vm5  ;;  %v1147_v22 = vsel %vm210_vm0, %v3841_v48, 0.0  ;;  %7438 = vst [vmem:[#allocation39_spill] sm:$0xff] %v5372_v43  ;;  %vm795_vm1 = vcmp.eq.f32.partialorder %v4915_v59, %v4924_v62  ;;  %v3852_v48 = vsel %vm928_vm13, 1.0, %v7411_v60  ;;  %v7442_v43 = vld [vmem:[#allocation7_spill] sm:$0xff] }
 0x5bc   :  { %7435 = vst [vmem:[#allocation36_spill] sm:$0xff] %v5346_v44  ;;  %vm920_vm10 = vmor %vm720_vm3, %vm856_vm8  ;;  %vm731_vm8 = vcmp.lt.f32.partialorder %v4915_v59, %v4924_v62  ;;  %vm790_vm13 = vcmp.eq.f32.partialorder %v4882_v46, %v4908_v17 }
 0x5bd   :  { %v3844_v23 = vsel %vm920_vm10, 1.0, %v7411_v60  ;;  %vm867_vm9 = vmand %vm795_vm1, %vm4835_vm11  ;;  %vm726_vm1 = vcmp.lt.f32.partialorder %v4882_v46, %v4908_v17  ;;  %v7440_v17 = vld [vmem:[#allocation3_spill] sm:$0xff] }
 0x5be   :  { %vm931_vm10 = vmor %vm731_vm8, %vm867_vm9 }
 0x5c2   :  { %1139 = vadd.xlane.f32.xlu2 %v1138_v63  ;;  %v3849_v63 = vsel %vm925_vm15, 1.0, %v7411_v60  ;;  %vm787_vm15 = vcmp.eq.f32.partialorder %v4882_v46, %v4825_v50  ;;  %v5394_v50 = vpop.permute.xlu2 %1672  ;;  %v5398_v62 = vpop.permute.xlu1 %1696 }
 0x5c3   :  { %1163 = vadd.xlane.f32.xlu1 %v1162_v11  ;;  %v1171_v11 = vsel %vm210_vm0, %v3849_v63, 0.0  ;;  %v5368_v44 = vpop.permute.xlu0 %1721  ;;  %vm859_vm3 = vmand %vm787_vm15, %vm4835_vm11  ;;  %v1156_v63 = vsel %vm210_vm0, %v3844_v23, 0.0  ;;  %7439 = vst [vmem:[#allocation40_spill] sm:$0xff] %v5394_v50  ;;  %vm798_vm15 = vcmp.eq.f32.partialorder %v4915_v59, %v4913_v32 }
 0x5c4   :  { %7437 = vst [vmem:[#allocation38_spill] sm:$0xff] %v5368_v44  ;;  %vm923_vm6 = vmor %vm723_vm12, %vm859_vm3  ;;  %vm734_vm3 = vcmp.lt.f32.partialorder %v4915_v59, %v4913_v32 }
 0x5c5   :  { %v3847_v23 = vsel %vm923_vm6, 1.0, %v7411_v60  ;;  %vm862_vm12 = vmand %vm790_vm13, %vm4853_vm2  ;;  %vm801_vm13 = vcmp.eq.f32.partialorder %v4915_v59, %v7442_v43 }
 0x5c6   :  { %vm870_vm8 = vmand %vm798_vm15, %vm4853_vm2  ;;  %vm729_vm15 = vcmp.lt.f32.partialorder %v4882_v46, %v7440_v17 }
 0x5c7   :  { %vm926_vm9 = vmor %vm726_vm1, %vm862_vm12  ;;  %vm7444_vm1 = vnez %v7396_v27 }
 0x5c8   :  { %vm934_vm6 = vmor %vm734_vm3, %vm870_vm8  ;;  %vm737_vm3 = vcmp.lt.f32.partialorder %v4915_v59, %v7442_v43 }
 0x5c9   :  { %vm873_vm8 = vmand %vm801_vm13, %vm7444_vm1 }
 0x5ca   :  { %1148 = vadd.xlane.f32.xlu2 %v1147_v22  ;;  %v1180_v22 = vsel %vm210_vm0, %v3852_v48, 0.0  ;;  %v1165_v48 = vsel %vm210_vm0, %v3847_v23, 0.0  ;;  %v5416_v50 = vpop.permute.xlu2 %1684  ;;  %v5420_v32 = vpop.permute.xlu1 %1709  ;;  %v3850_v23 = vsel %vm926_vm9, 1.0, %v7411_v60 }
 0x5cb   :  { %1172 = vadd.xlane.f32.xlu1 %v1171_v11  ;;  %v5390_v11 = vpop.permute.xlu0 %1751  ;;  %7441 = vst [vmem:[#allocation3_spill] sm:$0xff] %v5416_v50  ;;  %v7447_v50 = vld [vmem:[#allocation8_spill] sm:$0xff] }
 0x5cc   :  { %7443 = vst [vmem:[#allocation7_spill] sm:$0xff] %v5420_v32  ;;  %vm804_vm2 = vcmp.eq.f32.partialorder %v4952_v16, %v7447_v50 }
 0x5d2   :  { %1157 = vadd.xlane.f32.xlu2 %v1156_v63  ;;  %v3855_v63 = vsel %vm931_vm10, 1.0, %v7411_v60  ;;  %vm793_vm10 = vcmp.eq.f32.partialorder %v4882_v46, %v7440_v17  ;;  %v7445_v46 = vld [vmem:[#allocation4_spill] sm:$0xff]  ;;  %v5436_v17 = vpop.permute.xlu2 %1702  ;;  %v5442_v57 = vpop.permute.xlu1 %1727 }
 0x5d3   :  { %1181 = vadd.xlane.f32.xlu1 %v1180_v22  ;;  %v1189_v22 = vsel %vm210_vm0, %v3855_v63, 0.0  ;;  %v5412_v44 = vpop.xlane.xlu0 %1097  ;;  %vm865_vm12 = vmand %vm793_vm10, %vm7444_vm1  ;;  %v4171_v63 = vmov 0   ;;  %vm796_vm10 = vcmp.eq.f32.partialorder %v4915_v59, %v7445_v46  ;;  %7446 = vst [vmem:[#allocation4_spill] sm:$0xff] %v5436_v17  ;;  %vm732_vm13 = vcmp.lt.f32.partialorder %v4915_v59, %v7445_v46 }
 0x5d4   :  { %4018 = vset.pattern.permute.xlu0 %v4171_v63  ;;  %4016 = vset.pattern.permute.xlu1 %v4171_v63  ;;  %vm929_vm9 = vmor %vm729_vm15, %vm865_vm12  ;;  %7448 = vst [vmem:[#allocation8_spill] sm:$0xff] %v5442_v57  ;;  %vm740_vm12 = vcmp.lt.f32.partialorder %v4952_v16, %v7447_v50  ;;  %v7450_v57 = vld [vmem:[#allocation9_spill] sm:$0xff] }
 0x5d5   :  { %4017 = vset.pattern.permute.xlu2 %v4171_v63  ;;  %vm868_vm15 = vmand %vm796_vm10, %vm7429_vm7  ;;  %vm807_vm10 = vcmp.eq.f32.partialorder %v4952_v16, %v7450_v57 }
 0x5da   :  { %1166 = vadd.xlane.f32.xlu2 %v1165_v48  ;;  %v3858_v48 = vsel %vm934_vm6, 1.0, %v7411_v60  ;;  %vm937_vm6 = vmor %vm737_vm3, %vm873_vm8  ;;  %v5458_v46 = vpop.permute.xlu2 %1715  ;;  %v5462_v50 = vpop.permute.xlu1 %1739 }
 0x5db   :  { %1190 = vadd.xlane.f32.xlu1 %v1189_v22  ;;  %v1174_v22 = vsel %vm210_vm0, %v3850_v23, 0.0  ;;  %v1198_v32 = vsel %vm210_vm0, %v3858_v48, 0.0  ;;  %v5440_v43 = vpop.xlane.xlu0 %1115  ;;  %v3853_v23 = vsel %vm929_vm9, 1.0, %v7411_v60  ;;  %v3861_v63 = vsel %vm937_vm6, 1.0, %v7411_v60  ;;  %vm876_vm3 = vmand %vm804_vm2, %vm7429_vm7 }
 0x5dc   :  { %v1207_v48 = vsel %vm210_vm0, %v3861_v63, 0.0  ;;  %vm932_vm8 = vmor %vm732_vm13, %vm868_vm15  ;;  %vm7452_vm13 = vnez %v7400_v58 }
 0x5dd   :  { %vm940_vm9 = vmor %vm740_vm12, %vm876_vm3  ;;  %v3856_v17 = vsel %vm932_vm8, 1.0, %v7411_v60  ;;  %vm743_vm12 = vcmp.lt.f32.partialorder %v4952_v16, %v7450_v57 }
 0x5de   :  { %vm879_vm3 = vmand %vm807_vm10, %vm7452_vm13 }
 0x5e2   :  { %1175 = vadd.xlane.f32.xlu2 %v1174_v22  ;;  %v7449_v22 = vld [vmem:[#allocation5_spill] sm:$0xff] }
 0x5e3   :  { %1199 = vadd.xlane.f32.xlu1 %v1198_v32  ;;  %v1183_v32 = vsel %vm210_vm0, %v3853_v23, 0.0  ;;  %vm799_vm6 = vcmp.eq.f32.partialorder %v4915_v59, %v7449_v22  ;;  %7451 = vst [vmem:[#allocation5_spill] sm:$0xff] %v5462_v50  ;;  %v3864_v23 = vsel %vm940_vm9, 1.0, %v7411_v60  ;;  %vm735_vm2 = vcmp.lt.f32.partialorder %v4915_v59, %v7449_v22  ;;  %v5470_v63 = vpop.xlane.xlu0 %1124  ;;  %vm943_vm9 = vmor %vm743_vm12, %vm879_vm3  ;;  %v7453_v59 = vld [vmem:[#allocation6_spill] sm:$0xff]  ;;  %v5480_v22 = vpop.permute.xlu2 %1733 }
 0x5e4   :  { %vm871_vm15 = vmand %vm799_vm6, %vm7452_vm13  ;;  %vm802_vm7 = vcmp.eq.f32.partialorder %v4952_v16, %v7453_v59  ;;  %vm810_vm6 = vcmp.eq.f32.partialorder %v4991_v26, %v4984_v49  ;;  %vm738_vm10 = vcmp.lt.f32.partialorder %v4952_v16, %v7453_v59  ;;  %v7454_v59 = vld [vmem:[#allocation11_spill] sm:$0xff] }
 0x5e5   :  { %vm935_vm8 = vmor %vm735_vm2, %vm871_vm15  ;;  %vm746_vm15 = vcmp.lt.f32.partialorder %v4991_v26, %v4984_v49 }
 0x5e6   :  { %v3859_v50 = vsel %vm935_vm8, 1.0, %v7411_v60  ;;  %vm874_vm2 = vmand %vm802_vm7, %vm7433_vm4  ;;  %vm813_vm7 = vcmp.eq.f32.partialorder %v4991_v26, %v7455_v55 }
 0x5e7   :  { %vm882_vm12 = vmand %vm810_vm6, %vm7433_vm4  ;;  %vm741_vm6 = vcmp.lt.f32.partialorder %v4952_v16, %v7454_v59 }
 0x5e8   :  { %vm938_vm3 = vmor %vm738_vm10, %vm874_vm2  ;;  %vm749_vm2 = vcmp.lt.f32.partialorder %v4991_v26, %v7455_v55 }
 0x5e9   :  { %vm946_vm8 = vmor %vm746_vm15, %vm882_vm12  ;;  %v3862_v49 = vsel %vm938_vm3, 1.0, %v7411_v60 }
 0x5ea   :  { %1184 = vadd.xlane.f32.xlu2 %v1183_v32  ;;  %v1192_v32 = vsel %vm210_vm0, %v3856_v17, 0.0  ;;  %v3867_v17 = vsel %vm943_vm9, 1.0, %v7411_v60  ;;  %vm805_vm9 = vcmp.eq.f32.partialorder %v4952_v16, %v7454_v59  ;;  %vm885_vm15 = vmand %vm813_vm7, %vm4792_vm14 }
 0x5eb   :  { %1208 = vadd.xlane.f32.xlu1 %v1207_v48  ;;  %v1216_v48 = vsel %vm210_vm0, %v3864_v23, 0.0  ;;  %v1201_v23 = vsel %vm210_vm0, %v3859_v50, 0.0  ;;  %v5502_v51 = vpop.permute.xlu2 %1745  ;;  %v3870_v50 = vsel %vm946_vm8, 1.0, %v7411_v60  ;;  %vm877_vm10 = vmand %vm805_vm9, %vm4792_vm14  ;;  %vm816_vm14 = vcmp.eq.f32.partialorder %v4991_v26, %v5003_v53 }
 0x5ec   :  { %vm941_vm12 = vmor %vm741_vm6, %vm877_vm10 }
 0x5ed   :  { %vm949_vm3 = vmor %vm749_vm2, %vm885_vm15  ;;  %v3865_v55 = vsel %vm941_vm12, 1.0, %v7411_v60  ;;  %vm819_vm12 = vcmp.eq.f32.partialorder %v5016_v56, %v5014_v10 }
 0x5ee   :  { %vm888_vm6 = vmand %vm816_vm14, %vm4813_vm5  ;;  %vm755_vm14 = vcmp.lt.f32.partialorder %v5016_v56, %v5014_v10 }
 0x5f2   :  { %1193 = vadd.xlane.f32.xlu2 %v1192_v32  ;;  %v5497_v32 = vpop.xlane.xlu0 %1133 }
 0x5f3   :  { %1217 = vadd.xlane.f32.xlu1 %v1216_v48  ;;  %v1225_v48 = vsel %vm210_vm0, %v3867_v17, 0.0 }
 0x5f6   :  { %v5484_v57 = vpop.xlane.xlu1 %1091 }
 0x5fa   :  { %1202 = vadd.xlane.f32.xlu2 %v1201_v23  ;;  %v1210_v23 = vsel %vm210_vm0, %v3862_v49, 0.0  ;;  %v5522_v59 = vpop.xlane.xlu0 %1142  ;;  %v3873_v49 = vsel %vm949_vm3, 1.0, %v7411_v60 }
 0x5fb   :  { %1226 = vadd.xlane.f32.xlu1 %v1225_v48  ;;  %v1234_v48 = vsel %vm210_vm0, %v3870_v50, 0.0  ;;  %v1219_v50 = vsel %vm210_vm0, %v3865_v55, 0.0 }
 0x5fe   :  { %v1104_v28 = vpop.xlane.xlu1 %1103 }
 0x5ff   :  { %vm1286_vm4 = vcmp.lt.f32.partialorder %v1104_v28, 8.0 }
 0x600   :  { %v5513_v17 = vsel %vm1286_vm4, %v5100_v2, -1e+30  ;;  %v7457_v2 = vld [vmem:[#allocation10_spill] sm:$0xff]  ;;  %vm752_vm4 = vcmp.lt.f32.partialorder %v4991_v26, %v5003_v53 }
 0x601   :  { %7456 = vst [vmem:[#allocation9_spill] sm:$0xff] %v5513_v17  ;;  %1958 = vperm.xlu0 %4018, %v5513_v17   ;;  %vm808_vm8 = vcmp.eq.f32.partialorder %v4952_v16, %v7457_v2  ;;  %vm744_vm9 = vcmp.lt.f32.partialorder %v4952_v16, %v7457_v2  ;;  %vm952_vm2 = vmor %vm752_vm4, %vm888_vm6 }
 0x602   :  { %1211 = vadd.xlane.f32.xlu2 %v1210_v23  ;;  %vm880_vm7 = vmand %vm808_vm8, %vm4813_vm5  ;;  %v1243_v23 = vsel %vm210_vm0, %v3873_v49, 0.0  ;;  %v5550_v53 = vpop.xlane.xlu0 %1151  ;;  %v3876_v55 = vsel %vm952_vm2, 1.0, %v7411_v60 }
 0x603   :  { %1235 = vadd.xlane.f32.xlu1 %v1234_v48  ;;  %vm944_vm10 = vmor %vm744_vm9, %vm880_vm7  ;;  %v7458_v48 = vld [vmem:[#allocation12_spill] sm:$0xff] }
 0x604   :  { %vm811_vm15 = vcmp.eq.f32.partialorder %v4991_v26, %v7458_v48  ;;  %v3868_v2 = vsel %vm944_vm10, 1.0, %v7411_v60  ;;  %vm747_vm3 = vcmp.lt.f32.partialorder %v4991_v26, %v7458_v48  ;;  %vm891_vm9 = vmand %vm819_vm12, %vm4835_vm11  ;;  %v7460_v48 = vld [vmem:[#allocation13_spill] sm:$0xff]  ;;  %vm822_vm10 = vcmp.eq.f32.partialorder %v5016_v56, %v5026_v42 }
 0x605   :  { %v5526_v28 = vpop.xlane.xlu2 %1094  ;;  %vm883_vm8 = vmand %vm811_vm15, %vm4835_vm11  ;;  %vm814_vm6 = vcmp.eq.f32.partialorder %v4991_v26, %v7460_v48  ;;  %vm750_vm2 = vcmp.lt.f32.partialorder %v4991_v26, %v7460_v48  ;;  %vm7461_vm15 = vnez %v7394_v12  ;;  %v7463_v48 = vld [vmem:[#allocation15_spill] sm:$0xff] }
 0x606   :  { %v5530_v38 = vpop.xlane.xlu1 %1109  ;;  %vm947_vm7 = vmor %vm747_vm3, %vm883_vm8 }
 0x607   :  { %vm955_vm4 = vmor %vm755_vm14, %vm891_vm9  ;;  %v3871_v10 = vsel %vm947_vm7, 1.0, %v7411_v60  ;;  %vm817_vm9 = vcmp.eq.f32.partialorder %v4991_v26, %v7463_v48  ;;  %vm825_vm7 = vcmp.eq.f32.partialorder %v5016_v56, %v5140_v37 }
 0x608   :  { %vm886_vm12 = vmand %vm814_vm6, %vm7461_vm15  ;;  %vm753_vm6 = vcmp.lt.f32.partialorder %v4991_v26, %v7463_v48 }
 0x609   :  { %vm894_vm3 = vmand %vm822_vm10, %vm7461_vm15 }
 0x60a   :  { %1220 = vadd.xlane.f32.xlu2 %v1219_v50  ;;  %v1228_v50 = vsel %vm210_vm0, %v3868_v2, 0.0  ;;  %v5580_v2 = vpop.xlane.xlu0 %1160  ;;  %vm950_vm8 = vmor %vm750_vm2, %vm886_vm12 }
 0x60b   :  { %1244 = vadd.xlane.f32.xlu1 %v1243_v23  ;;  %v1252_v23 = vsel %vm210_vm0, %v3876_v55, 0.0  ;;  %vm889_vm10 = vmand %vm817_vm9, %vm7444_vm1 }
 0x60c   :  { %vm897_vm2 = vmand %vm825_vm7, %vm7444_vm1  ;;  %vm823_vm7 = vcmp.eq.f32.partialorder %v5016_v56, %v5090_v0 }
 0x60d   :  { %v5546_v16 = vpop.xlane.xlu2 %1100  ;;  %vm953_vm15 = vmor %vm753_vm6, %vm889_vm10  ;;  %vm759_vm6 = vcmp.lt.f32.partialorder %v5016_v56, %v5090_v0 }
 0x60e   :  { %v1119_v47 = vpop.xlane.xlu1 %1118  ;;  %v3877_v27 = vsel %vm953_vm15, 1.0, %v7411_v60  ;;  %vm895_vm10 = vmand %vm823_vm7, %vm7452_vm13  ;;  %vm1282_vm15 = vcmp.lt.f32.partialorder %v5484_v57, 8.0 }
 0x60f   :  { %vm1291_vm5 = vcmp.lt.f32.partialorder %v1119_v47, 8.0  ;;  %v3879_v47 = vsel %vm955_vm4, 1.0, %v7411_v60 }
 0x610   :  { %v5559_v49 = vsel %vm1291_vm5, %v5112_v41, -1e+30  ;;  %vm758_vm5 = vcmp.lt.f32.partialorder %v5016_v56, %v5026_v42  ;;  %v3874_v42 = vsel %vm950_vm8, 1.0, %v7411_v60  ;;  %vm7465_vm8 = vnez %v7384_v19 }
 0x611   :  { %7459 = vst [vmem:[#allocation6_spill] sm:$0xff] %v5559_v49  ;;  %1973 = vperm.xlu0 %4018, %v5559_v49   ;;  %vm958_vm14 = vmor %vm758_vm5, %vm894_vm3  ;;  %vm820_vm5 = vcmp.eq.f32.partialorder %v5016_v56, %v5133_v45  ;;  %vm756_vm3 = vcmp.lt.f32.partialorder %v5016_v56, %v5133_v45  ;;  %v7557_v49 = vld [vmem:[#allocation2_spill] sm:$0xff] }
 0x612   :  { %1229 = vadd.xlane.f32.xlu2 %v1228_v50  ;;  %v1237_v50 = vsel %vm210_vm0, %v3871_v10, 0.0 }
 0x613   :  { %1253 = vadd.xlane.f32.xlu1 %v1252_v23  ;;  %v1261_v23 = vsel %vm210_vm0, %v3879_v47, 0.0  ;;  %v1246_v47 = vsel %vm210_vm0, %v3874_v42, 0.0 }
 0x615   :  { %v5570_v41 = vpop.xlane.xlu2 %1106 }
 0x616   :  { %v1128_v54 = vpop.xlane.xlu1 %1127 }
 0x617   :  { %vm1294_vm11 = vcmp.lt.f32.partialorder %v1128_v54, 8.0  ;;  %v3882_v54 = vsel %vm958_vm14, 1.0, %v7411_v60  ;;  %vm892_vm14 = vmand %vm820_vm5, %vm7465_vm8  ;;  %vm1284_vm5 = vcmp.lt.f32.partialorder %v5412_v44, 8.0  ;;  %vm1287_vm8 = vcmp.lt.f32.partialorder %v5570_v41, 8.0 }
 0x618   :  { %v5583_v55 = vsel %vm1294_vm11, %v5128_v21, -1e+30  ;;  %vm761_vm11 = vcmp.lt.f32.partialorder %v5016_v56, %v5140_v37  ;;  %v1270_v26 = vsel %vm210_vm0, %v3882_v54, 0.0  ;;  %vm956_vm9 = vmor %vm756_vm3, %vm892_vm14  ;;  %v5681_v57 = vsel %vm1284_vm5, %v5094_v1, -1e+30 }
 0x619   :  { %7462 = vst [vmem:[#allocation11_spill] sm:$0xff] %v5583_v55  ;;  %1982 = vperm.xlu0 %4018, %v5583_v55   ;;  %vm961_vm12 = vmor %vm761_vm11, %vm897_vm2  ;;  %v5697_v1 = vsel %vm1287_vm8, %v5110_v29, -1e+30  ;;  %vm1285_vm14 = vcmp.lt.f32.partialorder %v5546_v16, 8.0  ;;  %v7478_v29 = vld [vmem:[#allocation17_spill] sm:$0xff] }
 0x61a   :  { %1238 = vadd.xlane.f32.xlu2 %v1237_v50  ;;  %v5613_v50 = vpop.xlane.xlu0 %1169  ;;  %vm959_vm11 = vmor %vm759_vm6, %vm895_vm10  ;;  %7472 = vst [vmem:[#allocation43_spill] sm:$0xff] %v5681_v57  ;;  %v5710_v41 = vsel %vm1285_vm14, %v5104_v18, -1e+30 }
 0x61b   :  { %1262 = vadd.xlane.f32.xlu1 %v1261_v23  ;;  %v3885_v23 = vsel %vm961_vm12, 1.0, %v7411_v60  ;;  %7475 = vst [vmem:[#allocation46_spill] sm:$0xff] %v5697_v1 }
 0x61c   :  { %v1279_v42 = vsel %vm210_vm0, %v3885_v23, 0.0  ;;  %7477 = vst [vmem:[#allocation48_spill] sm:$0xff] %v5710_v41 }
 0x61d   :  { %v5594_v21 = vpop.xlane.xlu2 %1112 }
 0x61e   :  { %v1137_v12 = vpop.xlane.xlu1 %1136  ;;  %vm1289_vm7 = vcmp.lt.f32.partialorder %v5594_v21, 8.0  ;;  %v7481_v21 = vld [vmem:[#allocation16_spill] sm:$0xff] }
 0x61f   :  { %vm1297_vm4 = vcmp.lt.f32.partialorder %v1137_v12, 8.0  ;;  %v1255_v12 = vsel %vm210_vm0, %v3877_v27, 0.0 }
 0x620   :  { %v5605_v10 = vsel %vm1297_vm4, %v5135_v3, -1e+30 }
 0x621   :  { %7464 = vst [vmem:[#allocation14_spill] sm:$0xff] %v5605_v10  ;;  %1991 = vperm.xlu0 %4018, %v5605_v10  }
 0x622   :  { %1247 = vadd.xlane.f32.xlu2 %v1246_v47  ;;  %v5632_v54 = vpop.xlane.xlu0 %1178 }
 0x623   :  { %1271 = vadd.xlane.f32.xlu1 %v1270_v26 }
 0x625   :  { %v5618_v3 = vpop.xlane.xlu2 %1121 }
 0x626   :  { %v1146_v37 = vpop.xlane.xlu1 %1145  ;;  %vm1292_vm10 = vcmp.lt.f32.partialorder %v5618_v3, 8.0 }
 0x627   :  { %vm1300_vm1 = vcmp.lt.f32.partialorder %v1146_v37, 8.0 }
 0x628   :  { %v5627_v48 = vsel %vm1300_vm1, %v5192_v40, -1e+30  ;;  %v3880_v40 = vsel %vm956_vm9, 1.0, %v7411_v60  ;;  %vm1283_vm1 = vcmp.lt.f32.partialorder %v5526_v28, 8.0 }
 0x629   :  { %7466 = vst [vmem:[#allocation10_spill] sm:$0xff] %v5627_v48  ;;  %2000 = vperm.xlu0 %4018, %v5627_v48   ;;  %v1264_v26 = vsel %vm210_vm0, %v3880_v40, 0.0  ;;  %v5692_v44 = vsel %vm1283_vm1, %v5146_v33, -1e+30 }
 0x62a   :  { %1256 = vadd.xlane.f32.xlu2 %v1255_v12  ;;  %v5650_v27 = vpop.xlane.xlu0 %1187  ;;  %v3883_v12 = vsel %vm959_vm11, 1.0, %v7411_v60  ;;  %v5668_v60 = vsel %vm1282_vm15, %v5098_v36, -1e+30  ;;  %7474 = vst [vmem:[#allocation45_spill] sm:$0xff] %v5692_v44  ;;  %vm1290_vm11 = vcmp.lt.f32.partialorder %v5440_v43, 8.0 }
 0x62b   :  { %1280 = vadd.xlane.f32.xlu1 %v1279_v42  ;;  %v1273_v56 = vsel %vm210_vm0, %v3883_v12, 0.0  ;;  %7470 = vst [vmem:[#allocation41_spill] sm:$0xff] %v5668_v60 }
 0x62d   :  { %v5636_v45 = vpop.xlane.xlu2 %1130 }
 0x62e   :  { %v1155_v19 = vpop.xlane.xlu1 %1154 }
 0x62f   :  { %vm1303_vm4 = vcmp.lt.f32.partialorder %v1155_v19, 8.0 }
 0x630   :  { %v5644_v47 = vsel %vm1303_vm4, %v5144_v61, -1e+30  ;;  %vm1288_vm4 = vcmp.lt.f32.partialorder %v5530_v38, 8.0 }
 0x631   :  { %7467 = vst [vmem:[#allocation12_spill] sm:$0xff] %v5644_v47  ;;  %2009 = vperm.xlu0 %4018, %v5644_v47  }
 0x632   :  { %1265 = vadd.xlane.f32.xlu2 %v1264_v26  ;;  %v5660_v42 = vpop.xlane.xlu0 %1196 }
 0x635   :  { %v5648_v37 = vpop.xlane.xlu2 %1139 }
 0x636   :  { %v1164_v23 = vpop.xlane.xlu1 %1163  ;;  %vm1298_vm5 = vcmp.lt.f32.partialorder %v5648_v37, 8.0 }
 0x637   :  { %vm1306_vm2 = vcmp.lt.f32.partialorder %v1164_v23, 8.0 }
 0x638   :  { %v5654_v58 = vsel %vm1306_vm2, %v5152_v39, -1e+30 }
 0x639   :  { %7468 = vst [vmem:[#allocation13_spill] sm:$0xff] %v5654_v58  ;;  %2018 = vperm.xlu0 %4018, %v5654_v58  }
 0x63a   :  { %1274 = vadd.xlane.f32.xlu2 %v1273_v56  ;;  %v5715_v56 = vsel %vm1289_vm7, %v7478_v29, -1e+30 }
 0x63b   :  { %7479 = vst [vmem:[#allocation17_spill] sm:$0xff] %v5715_v56 }
 0x63d   :  { %v5658_v0 = vpop.xlane.xlu2 %1148 }
 0x63e   :  { %v1173_v61 = vpop.xlane.xlu1 %1172  ;;  %vm1301_vm8 = vcmp.lt.f32.partialorder %v5658_v0, 8.0 }
 0x63f   :  { %vm1309_vm13 = vcmp.lt.f32.partialorder %v1173_v61, 8.0 }
 0x640   :  { %v5664_v19 = vsel %vm1309_vm13, %v5196_v7, -1e+30  ;;  %v5678_v7 = vpop.xlane.xlu0 %1205  ;;  %vm1295_vm13 = vcmp.lt.f32.partialorder %v5636_v45, 8.0 }
 0x641   :  { %7469 = vst [vmem:[#allocation15_spill] sm:$0xff] %v5664_v19  ;;  %2027 = vperm.xlu0 %4018, %v5664_v19   ;;  %v7539_v19 = vld [vmem:[#allocation3_spill] sm:$0xff] }
 0x644   :  { %1946 = vperm.xlu1 %4016, %v5668_v60  }
 0x645   :  { %v5671_v39 = vpop.xlane.xlu2 %1157 }
 0x646   :  { %v1182_v40 = vpop.xlane.xlu1 %1181  ;;  %vm1304_vm7 = vcmp.lt.f32.partialorder %v5671_v39, 8.0 }
 0x647   :  { %vm1312_vm12 = vcmp.lt.f32.partialorder %v1182_v40, 8.0  ;;  %v5728_v40 = vsel %vm1288_vm4, %v7481_v21, -1e+30  ;;  %v5751_v21 = vsel %vm1295_vm13, %v5172_v30, -1e+30 }
 0x648   :  { %v5675_v26 = vsel %vm1312_vm12, %v5218_v4, -1e+30  ;;  %v5699_v12 = vpop.xlane.xlu0 %1214  ;;  %7482 = vst [vmem:[#allocation16_spill] sm:$0xff] %v5728_v40  ;;  %vm1293_vm12 = vcmp.lt.f32.partialorder %v5470_v63, 8.0 }
 0x649   :  { %7471 = vst [vmem:[#allocation42_spill] sm:$0xff] %v5675_v26  ;;  %2036 = vperm.xlu0 %4018, %v5675_v26   ;;  %v7535_v26 = vld [vmem:[#allocation37_spill] sm:$0xff] }
 0x64a   :  { %7487 = vst [vmem:[#allocation52_spill] sm:$0xff] %v5751_v21 }
 0x64c   :  { %1952 = vperm.xlu1 %4016, %v5681_v57  }
 0x64d   :  { %v5684_v36 = vpop.xlane.xlu2 %1166 }
 0x64e   :  { %v1191_v23 = vpop.xlane.xlu1 %1190 }
 0x64f   :  { %vm1315_vm3 = vcmp.lt.f32.partialorder %v1191_v23, 8.0  ;;  %v7483_v23 = vld [vmem:[#allocation19_spill] sm:$0xff] }
 0x650   :  { %v5689_v4 = vsel %vm1315_vm3, %v5258_v6, -1e+30  ;;  %v5720_v61 = vpop.xlane.xlu0 %1223  ;;  %vm1296_vm3 = vcmp.lt.f32.partialorder %v5497_v32, 8.0 }
 0x651   :  { %7473 = vst [vmem:[#allocation44_spill] sm:$0xff] %v5689_v4  ;;  %2045 = vperm.xlu0 %4018, %v5689_v4  }
 0x652   :  { %1949 = vperm.xlu2 %4017, %v5692_v44   ;;  %v6114_v44 = vadd.s32 4294967240, %v7557_v49 }
 0x654   :  { %1961 = vperm.xlu1 %4016, %v5697_v1  }
 0x655   :  { %v5702_v28 = vpop.xlane.xlu2 %1175 }
 0x656   :  { %v1200_v6 = vpop.xlane.xlu1 %1199  ;;  %vm1310_vm13 = vcmp.lt.f32.partialorder %v5702_v28, 8.0 }
 0x657   :  { %vm1318_vm9 = vcmp.lt.f32.partialorder %v1200_v6, 8.0  ;;  %v5733_v6 = vsel %vm1292_vm10, %v7483_v23, -1e+30  ;;  %vm1307_vm10 = vcmp.lt.f32.partialorder %v5684_v36, 8.0 }
 0x658   :  { %v5707_v33 = vsel %vm1318_vm9, %v5244_v15, -1e+30  ;;  %7484 = vst [vmem:[#allocation19_spill] sm:$0xff] %v5733_v6  ;;  %vm1299_vm9 = vcmp.lt.f32.partialorder %v5522_v59, 8.0 }
 0x659   :  { %7476 = vst [vmem:[#allocation47_spill] sm:$0xff] %v5707_v33  ;;  %2054 = vperm.xlu0 %4018, %v5707_v33  }
 0x65a   :  { %1955 = vperm.xlu2 %4017, %v5710_v41  }
 0x65c   :  { %1967 = vperm.xlu1 %4016, %v5715_v56  }
 0x65d   :  { %v5718_v16 = vpop.xlane.xlu2 %1184 }
 0x65e   :  { %v1209_v15 = vpop.xlane.xlu1 %1208 }
 0x65f   :  { %vm1321_vm6 = vcmp.lt.f32.partialorder %v1209_v15, 8.0  ;;  %v5746_v15 = vsel %vm1290_vm11, %v5158_v9, -1e+30  ;;  %vm1305_vm11 = vcmp.lt.f32.partialorder %v5580_v2, 8.0 }
 0x660   :  { %v5725_v18 = vsel %vm1321_vm6, %v5266_v13, -1e+30  ;;  %v5739_v13 = vpop.xlane.xlu0 %1232  ;;  %7486 = vst [vmem:[#allocation51_spill] sm:$0xff] %v5746_v15  ;;  %vm1302_vm6 = vcmp.lt.f32.partialorder %v5550_v53, 8.0 }
 0x661   :  { %7480 = vst [vmem:[#allocation49_spill] sm:$0xff] %v5725_v18  ;;  %2063 = vperm.xlu0 %4018, %v5725_v18  }
 0x662   :  { %1964 = vperm.xlu2 %4017, %v5728_v40   ;;  %v6084_v40 = vadd.s32 4294967280, %v7557_v49 }
 0x664   :  { %1976 = vperm.xlu1 %4016, %v5733_v6  }
 0x665   :  { %v5736_v38 = vpop.xlane.xlu2 %1193 }
 0x666   :  { %v1218_v3 = vpop.xlane.xlu1 %1217 }
 0x667   :  { %vm1324_vm2 = vcmp.lt.f32.partialorder %v1218_v3, 8.0  ;;  %v7491_v3 = vld [vmem:[#allocation21_spill] sm:$0xff] }
 0x668   :  { %v5743_v29 = vsel %vm1324_vm2, %v5328_v24, -1e+30  ;;  %v7489_v24 = vld [vmem:[#allocation18_spill] sm:$0xff]  ;;  %v5765_v30 = vpop.xlane.xlu0 %1241 }
 0x669   :  { %7485 = vst [vmem:[#allocation50_spill] sm:$0xff] %v5743_v29  ;;  %2072 = vperm.xlu0 %4018, %v5743_v29   ;;  %v5762_v45 = vsel %vm1293_vm12, %v7489_v24, -1e+30  ;;  %v5769_v29 = vsel %vm1298_vm5, %v7491_v3, -1e+30  ;;  %v7496_v3 = vld [vmem:[#allocation22_spill] sm:$0xff] }
 0x66a   :  { %1970 = vperm.xlu2 %4017, %v5746_v15   ;;  %7490 = vst [vmem:[#allocation18_spill] sm:$0xff] %v5762_v45  ;;  %vm1308_vm12 = vcmp.lt.f32.partialorder %v5613_v50, 8.0  ;;  %vm1313_vm5 = vcmp.lt.f32.partialorder %v5718_v16, 8.0 }
 0x66b   :  { %7492 = vst [vmem:[#allocation21_spill] sm:$0xff] %v5769_v29 }
 0x66c   :  { %1985 = vperm.xlu1 %4016, %v5751_v21  }
 0x66d   :  { %v5754_v43 = vpop.xlane.xlu2 %1202 }
 0x66e   :  { %v1227_v23 = vpop.xlane.xlu1 %1226 }
 0x66f   :  { %vm1327_vm15 = vcmp.lt.f32.partialorder %v1227_v23, 8.0  ;;  %v7494_v23 = vld [vmem:[#allocation20_spill] sm:$0xff] }
 0x670   :  { %v5759_v9 = vsel %vm1327_vm15, %v5350_v31, -1e+30  ;;  %v5780_v24 = vsel %vm1296_vm3, %v7494_v23, -1e+30  ;;  %v5787_v18 = vpop.xlane.xlu0 %1250  ;;  %vm1311_vm3 = vcmp.lt.f32.partialorder %v5632_v54, 8.0 }
 0x671   :  { %7488 = vst [vmem:[#allocation53_spill] sm:$0xff] %v5759_v9  ;;  %2081 = vperm.xlu0 %4018, %v5759_v9   ;;  %v5785_v9 = vsel %vm1301_vm8, %v7496_v3, -1e+30  ;;  %v7501_v3 = vld [vmem:[#allocation25_spill] sm:$0xff]  ;;  %vm1316_vm8 = vcmp.lt.f32.partialorder %v5736_v38, 8.0 }
 0x672   :  { %1979 = vperm.xlu2 %4017, %v5762_v45   ;;  %7495 = vst [vmem:[#allocation20_spill] sm:$0xff] %v5780_v24 }
 0x673   :  { %7497 = vst [vmem:[#allocation22_spill] sm:$0xff] %v5785_v9 }
 0x674   :  { %1994 = vperm.xlu1 %4016, %v5769_v29  }
 0x675   :  { %v5772_v63 = vpop.xlane.xlu2 %1211 }
 0x676   :  { %v1236_v37 = vpop.xlane.xlu1 %1235 }
 0x677   :  { %vm1330_vm1 = vcmp.lt.f32.partialorder %v1236_v37, 8.0  ;;  %v7499_v37 = vld [vmem:[#allocation23_spill] sm:$0xff] }
 0x678   :  { %v5777_v31 = vsel %vm1330_vm1, %v5324_v8, -1e+30  ;;  %v5798_v23 = vsel %vm1299_vm9, %v7499_v37, -1e+30  ;;  %v5808_v59 = vpop.xlane.xlu0 %1259  ;;  %v7504_v37 = vld [vmem:[#allocation24_spill] sm:$0xff]  ;;  %vm1319_vm9 = vcmp.lt.f32.partialorder %v5754_v43, 8.0 }
 0x679   :  { %7493 = vst [vmem:[#allocation54_spill] sm:$0xff] %v5777_v31  ;;  %2090 = vperm.xlu0 %4018, %v5777_v31   ;;  %v5803_v31 = vsel %vm1304_vm7, %v7501_v3, -1e+30  ;;  %v7506_v3 = vld [vmem:[#allocation27_spill] sm:$0xff]  ;;  %vm1317_vm7 = vcmp.lt.f32.partialorder %v5660_v42, 8.0  ;;  %v7527_v42 = vld [vmem:[#allocation33_spill] sm:$0xff] }
 0x67a   :  { %1988 = vperm.xlu2 %4017, %v5780_v24   ;;  %7500 = vst [vmem:[#allocation23_spill] sm:$0xff] %v5798_v23  ;;  %v5821_v33 = vsel %vm1307_vm10, %v7506_v3, -1e+30  ;;  %v5839_v3 = vsel %vm1310_vm13, %v5236_v14, -1e+30  ;;  %vm1326_vm13 = vcmp.lt.f32.partialorder %v5720_v61, 8.0 }
 0x67b   :  { %7502 = vst [vmem:[#allocation25_spill] sm:$0xff] %v5803_v31  ;;  %v7537_v61 = vld [vmem:[#allocation39_spill] sm:$0xff] }
 0x67c   :  { %2003 = vperm.xlu1 %4016, %v5785_v9   ;;  %7507 = vst [vmem:[#allocation27_spill] sm:$0xff] %v5821_v33 }
 0x67d   :  { %v5790_v32 = vpop.xlane.xlu2 %1220  ;;  %7510 = vst [vmem:[#allocation59_spill] sm:$0xff] %v5839_v3 }
 0x67e   :  { %v1245_v0 = vpop.xlane.xlu1 %1244  ;;  %vm1325_vm10 = vcmp.lt.f32.partialorder %v5790_v32, 8.0  ;;  %v7531_v32 = vld [vmem:[#allocation35_spill] sm:$0xff] }
 0x67f   :  { %vm1333_vm14 = vcmp.lt.f32.partialorder %v1245_v0, 8.0 }
 0x680   :  { %v5795_v8 = vsel %vm1333_vm14, %v5376_v52, -1e+30  ;;  %vm1314_vm14 = vcmp.lt.f32.partialorder %v5650_v27, 8.0  ;;  %v5897_v27 = vsel %vm1317_vm7, %v5262_v34, -1e+30 }
 0x681   :  { %7498 = vst [vmem:[#allocation55_spill] sm:$0xff] %v5795_v8  ;;  %2099 = vperm.xlu0 %4018, %v5795_v8   ;;  %v5816_v8 = vsel %vm1302_vm6, %v7504_v37, -1e+30  ;;  %v5834_v37 = vsel %vm1305_vm11, %v5214_v20, -1e+30  ;;  %vm1320_vm6 = vcmp.lt.f32.partialorder %v5678_v7, 8.0 }
 0x682   :  { %1997 = vperm.xlu2 %4017, %v5798_v23   ;;  %7505 = vst [vmem:[#allocation24_spill] sm:$0xff] %v5816_v8  ;;  %v5913_v34 = vsel %vm1320_vm6, %v5280_v35, -1e+30  ;;  %vm1323_vm11 = vcmp.lt.f32.partialorder %v5699_v12, 8.0  ;;  %v7529_v7 = vld [vmem:[#allocation32_spill] sm:$0xff] }
 0x683   :  { %7509 = vst [vmem:[#allocation58_spill] sm:$0xff] %v5834_v37  ;;  %v5929_v35 = vsel %vm1323_vm11, %v7529_v7, -1e+30  ;;  %vm2144_vm11 = vcmask 195712  }
 0x684   :  { %2012 = vperm.xlu1 %4016, %v5803_v31   ;;  %7524 = vst [vmem:[#allocation63_spill] sm:$0xff] %v5897_v27 }
 0x685   :  { %v5806_v0 = vpop.xlane.xlu2 %1229  ;;  %7526 = vst [vmem:[#allocation65_spill] sm:$0xff] %v5913_v34 }
 0x686   :  { %v1254_v39 = vpop.xlane.xlu1 %1253  ;;  %7530 = vst [vmem:[#allocation32_spill] sm:$0xff] %v5929_v35 }
 0x687   :  { %vm1336_vm4 = vcmp.lt.f32.partialorder %v1254_v39, 8.0 }
 0x688   :  { %v5813_v52 = vsel %vm1336_vm4, %v5398_v62, -1e+30  ;;  %v5827_v62 = vpop.xlane.xlu0 %1268  ;;  %vm1322_vm4 = vcmp.lt.f32.partialorder %v5772_v63, 8.0 }
 0x689   :  { %7503 = vst [vmem:[#allocation56_spill] sm:$0xff] %v5813_v52  ;;  %2108 = vperm.xlu0 %4018, %v5813_v52   ;;  %v5901_v43 = vsel %vm1322_vm4, %v5306_v25, -1e+30  ;;  %v5917_v25 = vsel %vm1325_vm10, %v7527_v42, -1e+30  ;;  %vm1341_vm4 = vcmp.lt.f32.partialorder %v5827_v62, 8.0 }
 0x68a   :  { %2006 = vperm.xlu2 %4017, %v5816_v8   ;;  %7525 = vst [vmem:[#allocation64_spill] sm:$0xff] %v5901_v43  ;;  %vm2140_vm10 = vcmask 130112  }
 0x68b   :  { %7528 = vst [vmem:[#allocation33_spill] sm:$0xff] %v5917_v25 }
 0x68c   :  { %2021 = vperm.xlu1 %4016, %v5821_v33  }
 0x68d   :  { %v5824_v39 = vpop.xlane.xlu2 %1238 }
 0x68e   :  { %v1263_v53 = vpop.xlane.xlu1 %1262 }
 0x68f   :  { %vm1339_vm2 = vcmp.lt.f32.partialorder %v1263_v53, 8.0 }
 0x690   :  { %v5831_v36 = vsel %vm1339_vm2, %v5458_v46, -1e+30  ;;  %v7512_v46 = vld [vmem:[#allocation26_spill] sm:$0xff]  ;;  %v5853_v14 = vpop.xlane.xlu0 %1277  ;;  %vm1328_vm2 = vcmp.lt.f32.partialorder %v5806_v0, 8.0 }
 0x691   :  { %7508 = vst [vmem:[#allocation57_spill] sm:$0xff] %v5831_v36  ;;  %2117 = vperm.xlu0 %4018, %v5831_v36   ;;  %v5850_v28 = vsel %vm1308_vm12, %v7512_v46, -1e+30  ;;  %v7514_v36 = vld [vmem:[#allocation29_spill] sm:$0xff]  ;;  %v5933_v42 = vsel %vm1328_vm2, %v7531_v32, -1e+30 }
 0x692   :  { %2015 = vperm.xlu2 %4017, %v5834_v37   ;;  %7513 = vst [vmem:[#allocation26_spill] sm:$0xff] %v5850_v28  ;;  %v5857_v52 = vsel %vm1313_vm5, %v7514_v36, -1e+30  ;;  %v7533_v0 = vld [vmem:[#allocation34_spill] sm:$0xff]  ;;  %vm1329_vm12 = vcmp.lt.f32.partialorder %v5739_v13, 8.0  ;;  %v7541_v13 = vld [vmem:[#allocation40_spill] sm:$0xff] }
 0x693   :  { %7515 = vst [vmem:[#allocation29_spill] sm:$0xff] %v5857_v52  ;;  %v5945_v7 = vsel %vm1326_vm13, %v7533_v0, -1e+30  ;;  %vm1344_vm6 = vcmp.lt.f32.partialorder %v5853_v14, 8.0  ;;  %vm2148_vm2 = vcmask 261312   ;;  %vm2152_vm13 = vcmask 326912  }
 0x694   :  { %2030 = vperm.xlu1 %4016, %v5839_v3   ;;  %7532 = vst [vmem:[#allocation35_spill] sm:$0xff] %v5933_v42 }
 0x695   :  { %v5842_v2 = vpop.xlane.xlu2 %1247  ;;  %7534 = vst [vmem:[#allocation34_spill] sm:$0xff] %v5945_v7 }
 0x696   :  { %v1272_v53 = vpop.xlane.xlu1 %1271  ;;  %vm1334_vm5 = vcmp.lt.f32.partialorder %v5842_v2, 8.0 }
 0x697   :  { %vm1342_vm15 = vcmp.lt.f32.partialorder %v1272_v53, 8.0  ;;  %v7517_v53 = vld [vmem:[#allocation28_spill] sm:$0xff] }
 0x698   :  { %v5847_v20 = vsel %vm1342_vm15, %v5480_v22, -1e+30  ;;  %v5868_v46 = vsel %vm1311_vm3, %v7517_v53, -1e+30  ;;  %v5871_v36 = vpop.permute.xlu0 %1958  ;;  %v5889_v53 = vsel %vm1319_vm9, %v5284_v5, -1e+30 }
 0x699   :  { %7511 = vst [vmem:[#allocation60_spill] sm:$0xff] %v5847_v20  ;;  %2126 = vperm.xlu0 %4018, %v5847_v20   ;;  %v7519_v20 = vld [vmem:[#allocation30_spill] sm:$0xff]  ;;  %vm1331_vm15 = vcmp.lt.f32.partialorder %v5824_v39, 8.0  ;;  %v5959_v39 = vsel %vm1329_vm12, %v7537_v61, -1e+30  ;;  %v7543_v61 = vld [vmem:[#allocation4_spill] sm:$0xff] }
 0x69a   :  { %2024 = vperm.xlu2 %4017, %v5850_v28   ;;  %7518 = vst [vmem:[#allocation28_spill] sm:$0xff] %v5868_v46  ;;  %v5875_v4 = vsel %vm1316_vm8, %v7519_v20, -1e+30  ;;  %v5949_v32 = vsel %vm1331_vm15, %v7535_v26, -1e+30  ;;  %vm1335_vm8 = vcmp.lt.f32.partialorder %v5787_v18, 8.0 }
 0x69b   :  { %7520 = vst [vmem:[#allocation30_spill] sm:$0xff] %v5875_v4  ;;  %v5965_v26 = vsel %vm1334_vm5, %v7539_v19, -1e+30  ;;  %vm1338_vm9 = vcmp.lt.f32.partialorder %v5808_v59, 8.0  ;;  %v7549_v18 = vld [vmem:[#allocation7_spill] sm:$0xff]  ;;  %v7553_v59 = vld [vmem:[#allocation8_spill] sm:$0xff] }
 0x69c   :  { %2039 = vperm.xlu1 %4016, %v5857_v52   ;;  %7523 = vst [vmem:[#allocation62_spill] sm:$0xff] %v5889_v53  ;;  %v6081_v28 = vadd.s32 4294967288, %v7557_v49  ;;  %vm2156_vm15 = vcmask 392512   ;;  %vm2160_vm12 = vcmask 458112   ;;  %vm2164_vm5 = vcmask 523712  }
 0x69d   :  { %v5860_v50 = vpop.xlane.xlu2 %1256  ;;  %7536 = vst [vmem:[#allocation37_spill] sm:$0xff] %v5949_v32 }
 0x69e   :  { %v1281_v16 = vpop.xlane.xlu1 %1280  ;;  %7538 = vst [vmem:[#allocation39_spill] sm:$0xff] %v5959_v39  ;;  %vm1337_vm3 = vcmp.lt.f32.partialorder %v5860_v50, 8.0 }
 0x69f   :  { %vm1345_vm1 = vcmp.lt.f32.partialorder %v1281_v16, 8.0  ;;  %7540 = vst [vmem:[#allocation3_spill] sm:$0xff] %v5965_v26 }
 0x6a0   :  { %v5865_v22 = vsel %vm1345_vm1, %v5390_v11, -1e+30  ;;  %v7521_v11 = vld [vmem:[#allocation31_spill] sm:$0xff]  ;;  %v5885_v16 = vpop.permute.xlu0 %1973  ;;  %vm1332_vm1 = vcmp.lt.f32.partialorder %v5765_v30, 8.0  ;;  %v7545_v30 = vld [vmem:[#allocation36_spill] sm:$0xff] }
 0x6a1   :  { %7516 = vst [vmem:[#allocation61_spill] sm:$0xff] %v5865_v22  ;;  %2135 = vperm.xlu0 %4018, %v5865_v22   ;;  %v5883_v38 = vsel %vm1314_vm14, %v7521_v11, -1e+30  ;;  %v5975_v2 = vsel %vm1332_vm1, %v7541_v13, -1e+30  ;;  %v7547_v13 = vld [vmem:[#allocation38_spill] sm:$0xff] }
 0x6a2   :  { %2033 = vperm.xlu2 %4017, %v5868_v46   ;;  %7522 = vst [vmem:[#allocation31_spill] sm:$0xff] %v5883_v38  ;;  %v5991_v50 = vsel %vm1335_vm8, %v7545_v30, -1e+30  ;;  %v7551_v30 = vld [vmem:[#allocation5_spill] sm:$0xff]  ;;  %vm2271_vm1 = vcmask 1041409   ;;  %vm2275_vm8 = vcmask 1043459  }
 0x6a3   :  { %7542 = vst [vmem:[#allocation40_spill] sm:$0xff] %v5975_v2 }
 0x6a4   :  { %2048 = vperm.xlu1 %4016, %v5875_v4   ;;  %7546 = vst [vmem:[#allocation36_spill] sm:$0xff] %v5991_v50 }
 0x6a5   :  { %v5878_v54 = vpop.xlane.xlu2 %1265 }
 0x6a6   :  { %vm1340_vm14 = vcmp.lt.f32.partialorder %v5878_v54, 8.0  ;;  %v6007_v54 = vsel %vm1338_vm9, %v7549_v18, -1e+30  ;;  %vm2279_vm9 = vcmask 1045509  }
 0x6a7   :  { %7550 = vst [vmem:[#allocation7_spill] sm:$0xff] %v6007_v54 }
 0x6a8   :  { %v5903_v11 = vpop.permute.xlu0 %1982 }
 0x6aa   :  { %2042 = vperm.xlu2 %4017, %v5883_v38  }
 0x6ac   :  { %2057 = vperm.xlu1 %4016, %v5889_v53  }
 0x6ad   :  { %v5892_v20 = vpop.xlane.xlu2 %1274 }
 0x6ae   :  { %vm1343_vm7 = vcmp.lt.f32.partialorder %v5892_v20, 8.0  ;;  %v6022_v20 = vsel %vm1341_vm4, %v7553_v59, -1e+30  ;;  %vm2283_vm4 = vcmask 1047559  }
 0x6af   :  { %7554 = vst [vmem:[#allocation8_spill] sm:$0xff] %v6022_v20 }
 0x6b2   :  { %2051 = vperm.xlu2 %4017, %v5897_v27  }
 0x6b4   :  { %2066 = vperm.xlu1 %4016, %v5901_v43   ;;  %v5922_v43 = vpop.permute.xlu0 %1991 }
 0x6b5   :  { %v5906_v5 = vpop.permute.xlu2 %1949 }
 0x6b6   :  { %v5909_v22 = vpop.permute.xlu1 %1946  ;;  %v2139_v56 = vperm.slane %v5906_v5, %v6081_v28  ;;  %v2167_v5 = vperm.slane %v5885_v16, %v6081_v28  ;;  %v6117_v16 = vadd.s32 4294967256, %v7557_v49 }
 0x6b7   :  { %v2137_v37 = vperm.slane %v5909_v22, %v7557_v49  ;;  %v6103_v22 = vadd.s32 4294967272, %v7557_v49 }
 0x6b9   :  { %v2141_v23 = vsel %vm2140_vm10, %v2139_v56, %v2137_v37 }
 0x6ba   :  { %2060 = vperm.xlu2 %4017, %v5913_v34  }
 0x6bc   :  { %2075 = vperm.xlu1 %4016, %v5917_v25   ;;  %v5942_v12 = vpop.permute.xlu0 %2000 }
 0x6bd   :  { %v5920_v63 = vpop.permute.xlu2 %1955 }
 0x6be   :  { %v5924_v53 = vpop.permute.xlu1 %1952  ;;  %v2147_v6 = vperm.slane %v5920_v63, %v6103_v22 }
 0x6bf   :  { %v2143_v17 = vperm.slane %v5924_v53, %v6084_v40 }
 0x6c1   :  { %v2145_v60 = vsel %vm2144_vm11, %v2143_v17, %v2141_v23 }
 0x6c2   :  { %2069 = vperm.xlu2 %4017, %v5929_v35  }
 0x6c4   :  { %2084 = vperm.xlu1 %4016, %v5933_v42   ;;  %v5961_v0 = vpop.permute.xlu0 %2009 }
 0x6c5   :  { %v5936_v25 = vpop.permute.xlu2 %1964 }
 0x6c6   :  { %v5938_v4 = vpop.permute.xlu1 %1961 }
 0x6c7   :  { %v2155_v17 = vperm.slane %v5938_v4, %v6117_v16  ;;  %v2179_v4 = vperm.slane %v5922_v43, %v6114_v44 }
 0x6ca   :  { %2078 = vperm.xlu2 %4017, %v5945_v7  }
 0x6cc   :  { %2093 = vperm.xlu1 %4016, %v5949_v32   ;;  %v5981_v19 = vpop.permute.xlu0 %2018 }
 0x6cd   :  { %v5952_v42 = vpop.permute.xlu2 %1970 }
 0x6ce   :  { %v5954_v52 = vpop.permute.xlu1 %1967  ;;  %v2166_v1 = vperm.slane %v5952_v42, %v7557_v49  ;;  %v6109_v42 = vadd.s32 4294967264, %v7557_v49 }
 0x6d0   :  { %v2151_v63 = vperm.slane %v5871_v36, %v6109_v42  ;;  %v2184_v36 = vperm.slane %v5942_v12, %v6084_v40 }
 0x6d2   :  { %2087 = vperm.xlu2 %4017, %v5959_v39   ;;  %v5979_v39 = vsel %vm1337_vm3, %v7543_v61, -1e+30  ;;  %v5995_v61 = vsel %vm1340_vm14, %v7547_v13, -1e+30  ;;  %v6011_v13 = vsel %vm1343_vm7, %v7551_v30, -1e+30 }
 0x6d3   :  { %7544 = vst [vmem:[#allocation4_spill] sm:$0xff] %v5979_v39  ;;  %v6031_v30 = vsel %vm1344_vm6, %v5502_v51, -1e+30  ;;  %vm2273_vm3 = vcmask 1042434   ;;  %vm2277_vm14 = vcmask 1044484   ;;  %vm2281_vm7 = vcmask 1046534  }
 0x6d4   :  { %2102 = vperm.xlu1 %4016, %v5965_v26   ;;  %7548 = vst [vmem:[#allocation38_spill] sm:$0xff] %v5995_v61 }
 0x6d5   :  { %v5968_v32 = vpop.permute.xlu2 %1979  ;;  %7552 = vst [vmem:[#allocation5_spill] sm:$0xff] %v6011_v13 }
 0x6d6   :  { %v5970_v3 = vpop.permute.xlu1 %1976  ;;  %7555 = vst [vmem:[#allocation66_spill] sm:$0xff] %v6031_v30  ;;  %v2171_v37 = vperm.slane %v5968_v32, %v6103_v22 }
 0x6d7   :  { %v2169_v57 = vperm.slane %v5970_v3, %v6084_v40  ;;  %v2168_v3 = vsel %vm2140_vm10, %v2167_v5, %v2166_v1 }
 0x6d9   :  { %v2170_v56 = vsel %vm2144_vm11, %v2169_v57, %v2168_v3 }
 0x6da   :  { %2096 = vperm.xlu2 %4017, %v5975_v2   ;;  %v2172_v57 = vsel %vm2148_vm2, %v2171_v37, %v2170_v56  ;;  %v2196_v37 = vperm.slane %v5981_v19, %v7557_v49 }
 0x6dc   :  { %2111 = vperm.xlu1 %4016, %v5979_v39   ;;  %v6000_v39 = vpop.permute.xlu0 %2027 }
 0x6dd   :  { %v5984_v26 = vpop.permute.xlu2 %1988 }
 0x6de   :  { %v5987_v58 = vpop.permute.xlu1 %1985 }
 0x6df   :  { %v2175_v32 = vperm.slane %v5987_v58, %v6117_v16 }
 0x6e2   :  { %2105 = vperm.xlu2 %4017, %v5991_v50  }
 0x6e4   :  { %2120 = vperm.xlu1 %4016, %v5995_v61   ;;  %v6019_v7 = vpop.permute.xlu0 %2036 }
 0x6e5   :  { %v5998_v2 = vpop.permute.xlu2 %1997 }
 0x6e6   :  { %v6002_v33 = vpop.permute.xlu1 %1994  ;;  %v2182_v1 = vperm.slane %v5998_v2, %v6081_v28  ;;  %v2190_v2 = vperm.slane %v5961_v0, %v6117_v16 }
 0x6e7   :  { %v2181_v23 = vperm.slane %v6002_v33, %v7557_v49 }
 0x6e9   :  { %v2183_v43 = vsel %vm2140_vm10, %v2182_v1, %v2181_v23  ;;  %v2163_v1 = vperm.slane %v5954_v52, %v6114_v44 }
 0x6ea   :  { %2114 = vperm.xlu2 %4017, %v6007_v54  }
 0x6ec   :  { %2129 = vperm.xlu1 %4016, %v6011_v13   ;;  %v6033_v13 = vpop.permute.xlu0 %2045 }
 0x6ed   :  { %v6014_v61 = vpop.permute.xlu2 %2006  ;;  %v2212_v19 = vperm.slane %v6033_v13, %v6081_v28 }
 0x6ee   :  { %v6016_v50 = vpop.permute.xlu1 %2003  ;;  %v2188_v52 = vperm.slane %v6014_v61, %v6109_v42 }
 0x6ef   :  { %v2186_v56 = vperm.slane %v6016_v50, %v6103_v22 }
 0x6f2   :  { %2123 = vperm.xlu2 %4017, %v6022_v20  }
 0x6f4   :  { %v6040_v59 = vpop.permute.xlu0 %2054 }
 0x6f5   :  { %v6025_v18 = vpop.permute.xlu2 %2015  ;;  %v2218_v61 = vperm.slane %v6040_v59, %v6109_v42 }
 0x6f6   :  { %v6027_v54 = vpop.permute.xlu1 %2012 }
 0x6fa   :  { %2132 = vperm.xlu2 %4017, %v6031_v30  }
 0x6fc   :  { %v6048_v14 = vpop.permute.xlu0 %2063 }
 0x6fd   :  { %v6036_v62 = vpop.permute.xlu2 %2024 }
 0x6fe   :  { %v6038_v47 = vpop.permute.xlu1 %2021 }
 0x704   :  { %v6056_v30 = vpop.permute.xlu0 %2072 }
 0x705   :  { %v6042_v20 = vpop.permute.xlu2 %2033 }
 0x706   :  { %v6044_v31 = vpop.permute.xlu1 %2030 }
 0x70c   :  { %v6062_v29 = vpop.permute.xlu0 %2081 }
 0x70d   :  { %v6046_v35 = vpop.permute.xlu2 %2042 }
 0x70e   :  { %v6050_v51 = vpop.permute.xlu1 %2039 }
 0x714   :  { %v6068_v24 = vpop.permute.xlu0 %2090 }
 0x715   :  { %v6052_v48 = vpop.permute.xlu2 %2051 }
 0x716   :  { %v6054_v9 = vpop.permute.xlu1 %2048 }
 0x71c   :  { %v6076_v46 = vpop.permute.xlu0 %2099 }
 0x71d   :  { %v6058_v34 = vpop.permute.xlu2 %2060 }
 0x71e   :  { %v6060_v10 = vpop.permute.xlu1 %2057 }
 0x724   :  { %v6106_v53 = vpop.permute.xlu0 %2108 }
 0x725   :  { %v6064_v27 = vpop.permute.xlu2 %2069 }
 0x726   :  { %v6066_v21 = vpop.permute.xlu1 %2066  ;;  %v2227_v13 = vperm.slane %v6064_v27, %v6081_v28 }
 0x72c   :  { %v6170_v23 = vpop.permute.xlu0 %2117 }
 0x72d   :  { %v6070_v38 = vpop.permute.xlu2 %2078 }
 0x72e   :  { %v6072_v45 = vpop.permute.xlu1 %2075 }
 0x735   :  { %v6074_v55 = vpop.permute.xlu2 %2087 }
 0x736   :  { %7556 = vst [vmem:[#allocation67_spill] sm:$0xff] %v6074_v55  ;;  %v6078_v15 = vpop.permute.xlu1 %2084  ;;  %v2149_v55 = vsel %vm2148_vm2, %v2147_v6, %v2145_v60  ;;  %v2173_v60 = vperm.slane %v5903_v11, %v6109_v42  ;;  %v6143_v6 = vadd.s32 4294967248, %v7557_v49 }
 0x737   :  { %v2153_v58 = vsel %vm2152_vm13, %v2151_v63, %v2149_v55  ;;  %v2197_v55 = vperm.slane %v6038_v47, %v6081_v28  ;;  %v2185_v63 = vsel %vm2144_vm11, %v2184_v36, %v2183_v43  ;;  %v2226_v36 = vperm.slane %v6066_v21, %v7557_v49 }
 0x738   :  { %v2157_v3 = vsel %vm2156_vm15, %v2155_v17, %v2153_v58  ;;  %v2174_v11 = vsel %vm2152_vm13, %v2173_v60, %v2172_v57  ;;  %v2159_v12 = vperm.slane %v5936_v25, %v6143_v6  ;;  %v2201_v17 = vperm.slane %v6000_v39, %v6103_v22 }
 0x739   :  { %v2176_v0 = vsel %vm2156_vm15, %v2175_v32, %v2174_v11  ;;  %v2177_v50 = vperm.slane %v5984_v26, %v6143_v6  ;;  %v2207_v25 = vperm.slane %v6019_v7, %v6143_v6  ;;  %v2187_v57 = vsel %vm2148_vm2, %v2186_v56, %v2185_v63 }
 0x73a   :  { %v2161_v47 = vsel %vm2160_vm12, %v2159_v12, %v2157_v3  ;;  %v2211_v26 = vperm.slane %v6046_v35, %v7557_v49  ;;  %v2198_v32 = vsel %vm2140_vm10, %v2197_v55, %v2196_v37  ;;  %v2214_v60 = vperm.slane %v6054_v9, %v6084_v40 }
 0x73b   :  { %v2178_v39 = vsel %vm2160_vm12, %v2177_v50, %v2176_v0  ;;  %v2165_v3 = vsel %vm2164_vm5, %v2163_v1, %v2161_v47  ;;  %v2199_v35 = vperm.slane %v6036_v62, %v6084_v40  ;;  %v2224_v9 = vperm.slane %v6048_v14, %v6114_v44 }
 0x73c   :  { %v2229_v21 = vperm.slane %v6056_v30, %v6084_v40  ;;  %v2180_v27 = vsel %vm2164_vm5, %v2179_v4, %v2178_v39  ;;  %v2189_v59 = vsel %vm2152_vm13, %v2188_v52, %v2187_v57  ;;  %v2241_v56 = vperm.slane %v6068_v24, %v7557_v49 }
 0x73d   :  { %v6094_v8 = vpop.permute.xlu2 %2096  ;;  %v2200_v62 = vsel %vm2144_vm11, %v2199_v35, %v2198_v32  ;;  %v2213_v37 = vsel %vm2140_vm10, %v2212_v19, %v2211_v26  ;;  %v2235_v12 = vperm.slane %v6062_v29, %v6117_v16  ;;  %v2228_v4 = vsel %vm2140_vm10, %v2227_v13, %v2226_v36 }
 0x73e   :  { %v6098_v41 = vpop.permute.xlu1 %2093  ;;  %v2215_v30 = vsel %vm2144_vm11, %v2214_v60, %v2213_v37  ;;  %v2231_v0 = vperm.slane %v6072_v45, %v6103_v22  ;;  %v2191_v24 = vsel %vm2156_vm15, %v2190_v2, %v2189_v59  ;;  %v2192_v55 = vperm.slane %v6027_v54, %v6143_v6  ;;  %v2127_v54 = vpop.permute.xlu0 %2126 }
 0x73f   :  { %v2242_v11 = vperm.slane %v6098_v41, %v6081_v28  ;;  %v2203_v41 = vperm.slane %v6044_v31, %v6109_v42  ;;  %v2216_v31 = vperm.slane %v6052_v48, %v6103_v22  ;;  %v2246_v29 = vperm.slane %v6076_v46, %v6103_v22 }
 0x740   :  { %v2205_v50 = vperm.slane %v6042_v20, %v6117_v16  ;;  %v2202_v19 = vsel %vm2148_vm2, %v2201_v17, %v2200_v62  ;;  %v2244_v45 = vperm.slane %v6094_v8, %v6084_v40  ;;  %v2220_v48 = vperm.slane %v6060_v10, %v6117_v16 }
 0x741   :  { %v2243_v1 = vsel %vm2140_vm10, %v2242_v11, %v2241_v56  ;;  %v2204_v2 = vsel %vm2152_vm13, %v2203_v41, %v2202_v19  ;;  %v2217_v47 = vsel %vm2148_vm2, %v2216_v31, %v2215_v30  ;;  %v2230_v63 = vsel %vm2144_vm11, %v2229_v21, %v2228_v4 }
 0x742   :  { %v2232_v46 = vsel %vm2148_vm2, %v2231_v0, %v2230_v63  ;;  %v2245_v39 = vsel %vm2144_vm11, %v2244_v45, %v2243_v1  ;;  %v2194_v52 = vperm.slane %v6025_v18, %v6114_v44  ;;  %v2193_v57 = vsel %vm2160_vm12, %v2192_v55, %v2191_v24  ;;  %v7558_v0 = vld [vmem:[#allocation67_spill] sm:$0xff] }
 0x743   :  { %v2257_v10 = vperm.slane %v6170_v23, %v6081_v28  ;;  %v2233_v26 = vperm.slane %v6070_v38, %v6109_v42  ;;  %v2206_v60 = vsel %vm2156_vm15, %v2205_v50, %v2204_v2  ;;  %v2219_v13 = vsel %vm2152_vm13, %v2218_v61, %v2217_v47 }
 0x744   :  { %v2221_v18 = vsel %vm2156_vm15, %v2220_v48, %v2219_v13  ;;  %v2237_v23 = vperm.slane %v6078_v15, %v6143_v6  ;;  %v2247_v35 = vsel %vm2148_vm2, %v2246_v29, %v2245_v39  ;;  %v2222_v38 = vperm.slane %v6058_v34, %v6143_v6 }
 0x745   :  { %v6136_v5 = vpop.permute.xlu2 %2105  ;;  %v2195_v61 = vsel %vm2164_vm5, %v2194_v52, %v2193_v57  ;;  %v2208_v21 = vsel %vm2160_vm12, %v2207_v25, %v2206_v60  ;;  %v2272_v37 = vsel %vm2271_vm1, %v2180_v27, %v2165_v3  ;;  %v2239_v24 = vperm.slane %v7558_v0, %v6114_v44 }
 0x746   :  { %v6145_v33 = vpop.permute.xlu1 %2102  ;;  %v2250_v15 = vperm.slane %v6136_v5, %v6117_v16  ;;  %v2223_v34 = vsel %vm2160_vm12, %v2222_v38, %v2221_v18  ;;  %v2252_v5 = vperm.slane %v6106_v53, %v6143_v6  ;;  %v2274_v4 = vsel %vm2273_vm3, %v2195_v61, %v2272_v37  ;;  %v2136_v31 = vpop.permute.xlu0 %2135  ;;  %v7563_v38 = vld [vmem:[#allocation48_spill] sm:$0xff] }
 0x747   :  { %v2248_v20 = vperm.slane %v6145_v33, %v6109_v42  ;;  %v2209_v33 = vperm.slane %v6050_v51, %v6114_v44  ;;  %v2263_v3 = vperm.slane %v2127_v54, %v6109_v42  ;;  %v2269_v14 = vperm.slane %v2136_v31, %v6114_v44 }
 0x749   :  { %v2249_v11 = vsel %vm2152_vm13, %v2248_v20, %v2247_v35  ;;  %v2210_v56 = vsel %vm2164_vm5, %v2209_v33, %v2208_v21  ;;  %v7561_v33 = vld [vmem:[#allocation41_spill] sm:$0xff] }
 0x74a   :  { %v2251_v7 = vsel %vm2156_vm15, %v2250_v15, %v2249_v11  ;;  %v2276_v27 = vsel %vm2275_vm8, %v2210_v56, %v2274_v4 }
 0x74b   :  { %v2253_v29 = vsel %vm2160_vm12, %v2252_v5, %v2251_v7 }
 0x74d   :  { %v2115_v58 = vpop.permute.xlu2 %2114 }
 0x74e   :  { %v6198_v43 = vpop.permute.xlu1 %2111  ;;  %v2256_v17 = vperm.slane %v2115_v58, %v7557_v49  ;;  %v2234_v58 = vsel %vm2152_vm13, %v2233_v26, %v2232_v46 }
 0x74f   :  { %v2236_v62 = vsel %vm2156_vm15, %v2235_v12, %v2234_v58  ;;  %v2254_v25 = vperm.slane %v6198_v43, %v6114_v44  ;;  %v2225_v43 = vsel %vm2164_vm5, %v2224_v9, %v2223_v34 }
 0x750   :  { %v2258_v51 = vsel %vm2140_vm10, %v2257_v10, %v2256_v17  ;;  %v2238_v30 = vsel %vm2160_vm12, %v2237_v23, %v2236_v62  ;;  %v2278_v54 = vsel %vm2277_vm14, %v2225_v43, %v2276_v27  ;;  %v7559_v10 = vld [vmem:[#allocation19_spill] sm:$0xff]  ;;  %v7568_v27 = vld [vmem:[#allocation58_spill] sm:$0xff]  ;;  %v7569_v43 = vld [vmem:[#allocation17_spill] sm:$0xff] }
 0x751   :  { %v2240_v53 = vsel %vm2164_vm5, %v2239_v24, %v2238_v30  ;;  %v2255_v19 = vsel %vm2164_vm5, %v2254_v25, %v2253_v29  ;;  %v7562_v23 = vld [vmem:[#allocation23_spill] sm:$0xff]  ;;  %v7566_v30 = vld [vmem:[#allocation46_spill] sm:$0xff]  ;;  %v7567_v25 = vld [vmem:[#allocation9_spill] sm:$0xff] }
 0x752   :  { %v2280_v48 = vsel %vm2279_vm9, %v2240_v53, %v2278_v54  ;;  %v7570_v53 = vld [vmem:[#allocation16_spill] sm:$0xff] }
 0x753   :  { %v2282_v46 = vsel %vm2281_vm7, %v2255_v19, %v2280_v48 }
 0x755   :  { %v2124_v8 = vpop.permute.xlu2 %2123 }
 0x756   :  { %v2121_v32 = vpop.permute.xlu1 %2120  ;;  %v2261_v41 = vperm.slane %v2124_v8, %v6103_v22 }
 0x757   :  { %v2259_v36 = vperm.slane %v2121_v32, %v6084_v40  ;;  %v7560_v32 = vld [vmem:[#allocation45_spill] sm:$0xff] }
 0x759   :  { %v2260_v59 = vsel %vm2144_vm11, %v2259_v36, %v2258_v51  ;;  %v7564_v51 = vld [vmem:[#allocation43_spill] sm:$0xff] }
 0x75a   :  { %v2262_v12 = vsel %vm2148_vm2, %v2261_v41, %v2260_v59  ;;  %v7565_v41 = vld [vmem:[#allocation24_spill] sm:$0xff] }
 0x75b   :  { %v2264_v2 = vsel %vm2152_vm13, %v2263_v3, %v2262_v12 }
 0x75d   :  { %v2133_v55 = vpop.permute.xlu2 %2132 }
 0x75e   :  { %v2130_v1 = vpop.permute.xlu1 %2129  ;;  %v2267_v45 = vperm.slane %v2133_v55, %v6143_v6 }
 0x75f   :  { %v2265_v50 = vperm.slane %v2130_v1, %v6117_v16 }
 0x761   :  { %v2266_v9 = vsel %vm2156_vm15, %v2265_v50, %v2264_v2 }
 0x762   :  { %v2268_v47 = vsel %vm2160_vm12, %v2267_v45, %v2266_v9 }
 0x763   :  { %v2270_v63 = vsel %vm2164_vm5, %v2269_v14, %v2268_v47  ;;  %v7571_v47 = vld [vmem:[#allocation26_spill] sm:$0xff] }
 0x764   :  { %v2284_v39 = vsel %vm2283_vm4, %v2270_v63, %v2282_v46  ;;  %v7572_v63 = vld [vmem:[#allocation6_spill] sm:$0xff] }
 0x765   :  { %v2286_v20 = vsel %vm210_vm0, %v2284_v39, -inf  ;;  %v7573_v39 = vld [vmem:[#allocation51_spill] sm:$0xff] }
 0x766   :  { %2287 = vmax.xlane.f32.xlu1 %v2286_v20 }
 0x7d9   :  { %v6306_v17 = vpop.xlane.xlu1 %2287 }
 0x7da   :  { %v2290_v8 = vperm.slane %v6306_v17, 0  ;;  %v6310_v52 = vperm.slane %v6306_v17, 1  ;;  %v6313_v57 = vperm.slane %v6306_v17, 2  ;;  %v6350_v50 = vperm.slane %v6306_v17, 3 }
 0x7dc   :  { %v2316_v26 = vsub.f32 %v7559_v10, %v6310_v52  ;;  %v2307_v60 = vsub.f32 %v7560_v32, %v2290_v8  ;;  %v2306_v13 = vsub.f32 %v7561_v33, %v2290_v8  ;;  %v2323_v35 = vsub.f32 %v7562_v23, %v6313_v57  ;;  %v7577_v23 = vld [vmem:[#allocation18_spill] sm:$0xff] }
 0x7dd   :  { %v2309_v11 = vsub.f32 %v7563_v38, %v2290_v8  ;;  %v2308_v61 = vsub.f32 %v7564_v51, %v2290_v8  ;;  %v2326_v37 = vsub.f32 %v7565_v41, %v6313_v57  ;;  %v2311_v7 = vsub.f32 %v7566_v30, %v2290_v8  ;;  %v7579_v41 = vld [vmem:[#allocation31_spill] sm:$0xff]  ;;  %v7580_v30 = vld [vmem:[#allocation20_spill] sm:$0xff] }
 0x7de   :  { %v2390_v36 = vmul.f32 1.442695, %v2316_v26  ;;  %v2372_v18 = vmul.f32 1.442695, %v2307_v60  ;;  %v2370_v58 = vmul.f32 1.442695, %v2306_v13  ;;  %v2310_v5 = vsub.f32 %v7567_v25, %v2290_v8 }
 0x7df   :  { %v2404_v21 = vmul.f32 1.442695, %v2323_v35  ;;  %v2376_v15 = vmul.f32 1.442695, %v2309_v11  ;;  %v2374_v56 = vmul.f32 1.442695, %v2308_v61  ;;  %v2329_v31 = vsub.f32 %v7568_v27, %v6313_v57 }
 0x7e0   :  { %4026 = vpow2.f32 %v2390_v36  ;;  %v2410_v4 = vmul.f32 1.442695, %v2326_v37  ;;  %v2380_v0 = vmul.f32 1.442695, %v2311_v7  ;;  %v2378_v12 = vmul.f32 1.442695, %v2310_v5 }
 0x7e1   :  { %4028 = vpow2.f32 %v2372_v18  ;;  %v2313_v1 = vsub.f32 %v7569_v43, %v2290_v8  ;;  %v2312_v29 = vsub.f32 %v7570_v53, %v2290_v8  ;;  %v2416_v19 = vmul.f32 1.442695, %v2329_v31  ;;  %v7575_v13 = vld [vmem:[#allocation28_spill] sm:$0xff]  ;;  %v7576_v18 = vld [vmem:[#allocation11_spill] sm:$0xff] }
 0x7e2   :  { %4030 = vpow2.f32 %v2370_v58  ;;  %v2332_v48 = vsub.f32 %v7571_v47, %v6350_v50  ;;  %v2315_v46 = vsub.f32 %v7572_v63, %v6310_v52  ;;  %v2314_v20 = vsub.f32 %v7573_v39, %v6310_v52  ;;  %v7581_v25 = vld [vmem:[#allocation52_spill] sm:$0xff] }
 0x7e3   :  { %4032 = vpow2.f32 %v2404_v21  ;;  %v2384_v45 = vmul.f32 1.442695, %v2313_v1  ;;  %v2382_v14 = vmul.f32 1.442695, %v2312_v29  ;;  %v2335_v36 = vsub.f32 %v7575_v13, %v6350_v50  ;;  %v7583_v1 = vld [vmem:[#allocation63_spill] sm:$0xff]  ;;  %v7584_v29 = vld [vmem:[#allocation21_spill] sm:$0xff] }
 0x7e4   :  { %4034 = vpow2.f32 %v2376_v15  ;;  %v2422_v8 = vmul.f32 1.442695, %v2332_v48  ;;  %v2388_v10 = vmul.f32 1.442695, %v2315_v46  ;;  %v2386_v32 = vmul.f32 1.442695, %v2314_v20 }
 0x7e5   :  { %4036 = vpow2.f32 %v2374_v56  ;;  %v2318_v58 = vsub.f32 %v7576_v18, %v6310_v52  ;;  %v2317_v35 = vsub.f32 %v7577_v23, %v6310_v52  ;;  %v6383_v38 = vperm.slane %v6306_v17, 4  ;;  %v7589_v13 = vld [vmem:[#allocation10_spill] sm:$0xff] }
 0x7e6   :  { %v6323_v59 = vpop.eup %4026  ;;  %4038 = vpow2.f32 %v2410_v4  ;;  %v2428_v11 = vmul.f32 1.442695, %v2335_v36  ;;  %v2320_v7 = vsub.f32 %v7580_v30, %v6310_v52  ;;  %v2319_v5 = vsub.f32 %v7581_v25, %v6310_v52  ;;  %v7592_v30 = vld [vmem:[#allocation25_spill] sm:$0xff]  ;;  %v7593_v25 = vld [vmem:[#allocation12_spill] sm:$0xff] }
 0x7e7   :  { %v6325_v34 = vpop.eup %4028  ;;  %2593 = vperm.xlu1 %4016, %v6323_v59   ;;  %4040 = vpow2.f32 %v2380_v0  ;;  %v2394_v51 = vmul.f32 1.442695, %v2318_v58  ;;  %v2392_v21 = vmul.f32 1.442695, %v2317_v35  ;;  %v2338_v37 = vsub.f32 %v7579_v41, %v6383_v38  ;;  %v7591_v41 = vld [vmem:[#allocation32_spill] sm:$0xff] }
 0x7e8   :  { %v6328_v62 = vpop.eup %4030  ;;  %2566 = vperm.xlu0 %4018, %v6325_v34   ;;  %4042 = vpow2.f32 %v2378_v12  ;;  %v2398_v0 = vmul.f32 1.442695, %v2320_v7  ;;  %v2396_v27 = vmul.f32 1.442695, %v2319_v5  ;;  %v2341_v53 = vsub.f32 %v7583_v1, %v6383_v38 }
 0x7e9   :  { %2563 = vperm.xlu2 %4017, %v6328_v62   ;;  %v6336_v24 = vpop.eup %4032  ;;  %4044 = vpow2.f32 %v2416_v19  ;;  %v2434_v4 = vmul.f32 1.442695, %v2338_v37  ;;  %v2322_v19 = vsub.f32 %v7584_v29, %v6313_v57  ;;  %v2324_v36 = vsub.f32 %v7589_v13, %v6313_v57 }
 0x7ea   :  { %v6338_v55 = vpop.eup %4034  ;;  %4046 = vpow2.f32 %v2384_v45  ;;  %v7585_v45 = vld [vmem:[#allocation14_spill] sm:$0xff]  ;;  %v2440_v47 = vmul.f32 1.442695, %v2341_v53  ;;  %v6431_v18 = vperm.slane %v6306_v17, 5  ;;  %v2328_v7 = vsub.f32 %v7592_v30, %v6313_v57 }
 0x7eb   :  { %v6341_v3 = vpop.eup %4036  ;;  %4048 = vpow2.f32 %v2382_v14  ;;  %v2321_v14 = vsub.f32 %v7585_v45, %v6310_v52  ;;  %v2402_v48 = vmul.f32 1.442695, %v2322_v19  ;;  %v7588_v52 = vld [vmem:[#allocation22_spill] sm:$0xff]  ;;  %v2327_v5 = vsub.f32 %v7593_v25, %v6313_v57 }
 0x7ec   :  { %v6352_v2 = vpop.eup %4038  ;;  %4050 = vpow2.f32 %v2422_v8  ;;  %v7587_v8 = vld [vmem:[#allocation65_spill] sm:$0xff]  ;;  %v2347_v37 = vsub.f32 %v7591_v41, %v6431_v18  ;;  %v7595_v19 = vld [vmem:[#allocation34_spill] sm:$0xff]  ;;  %v7602_v41 = vld [vmem:[#allocation15_spill] sm:$0xff]  ;;  %v6479_v30 = vperm.slane %v6306_v17, 6 }
 0x7ed   :  { %v6354_v9 = vpop.eup %4040  ;;  %4052 = vpow2.f32 %v2388_v10  ;;  %v2400_v46 = vmul.f32 1.442695, %v2321_v14  ;;  %v2344_v10 = vsub.f32 %v7587_v8, %v6383_v38  ;;  %v2412_v1 = vmul.f32 1.442695, %v2327_v5 }
 0x7ee   :  { %v6357_v54 = vpop.eup %4042  ;;  %4054 = vpow2.f32 %v2386_v32  ;;  %v2325_v32 = vsub.f32 %v7588_v52, %v6313_v57  ;;  %v2350_v45 = vsub.f32 %v7595_v19, %v6431_v18  ;;  %v7596_v57 = vld [vmem:[#allocation27_spill] sm:$0xff]  ;;  %v7605_v19 = vld [vmem:[#allocation40_spill] sm:$0xff] }
 0x7ef   :  { %2614 = vperm.xlu1 %4016, %v6336_v24   ;;  %v6367_v26 = vpop.eup %4044  ;;  %4056 = vpow2.f32 %v2428_v11  ;;  %v2446_v58 = vmul.f32 1.442695, %v2344_v10  ;;  %v2406_v11 = vmul.f32 1.442695, %v2324_v36  ;;  %v2331_v14 = vsub.f32 %v7596_v57, %v6350_v50  ;;  %v7600_v36 = vld [vmem:[#allocation39_spill] sm:$0xff]  ;;  %v7606_v57 = vld [vmem:[#allocation29_spill] sm:$0xff] }
 0x7f0   :  { %2572 = vperm.xlu0 %4018, %v6338_v55   ;;  %7574 = vst [vmem:[#allocation2_spill] sm:$0xff] %v6367_v26  ;;  %v6369_v60 = vpop.eup %4046  ;;  %4058 = vpow2.f32 %v2394_v51  ;;  %v2408_v23 = vmul.f32 1.442695, %v2325_v32 }
 0x7f1   :  { %2569 = vperm.xlu2 %4017, %v6341_v3   ;;  %v6372_v33 = vpop.eup %4048  ;;  %4060 = vpow2.f32 %v2392_v21  ;;  %v2420_v8 = vmul.f32 1.442695, %v2331_v14  ;;  %v2337_v14 = vsub.f32 %v7606_v57, %v6350_v50 }
 0x7f2   :  { %v6385_v61 = vpop.eup %4050  ;;  %4062 = vpow2.f32 %v2434_v4  ;;  %v2452_v4 = vmul.f32 1.442695, %v2347_v37  ;;  %v2333_v37 = vsub.f32 %v7602_v41, %v6350_v50 }
 0x7f3   :  { %7578 = vst [vmem:[#allocation67_spill] sm:$0xff] %v6385_v61  ;;  %v6387_v15 = vpop.eup %4052  ;;  %4064 = vpow2.f32 %v2398_v0  ;;  %v2414_v0 = vmul.f32 1.442695, %v2328_v7 }
 0x7f4   :  { %v6390_v56 = vpop.eup %4054  ;;  %4066 = vpow2.f32 %v2396_v27 }
 0x7f5   :  { %v6400_v12 = vpop.eup %4056  ;;  %4068 = vpow2.f32 %v2440_v47  ;;  %v7597_v47 = vld [vmem:[#allocation13_spill] sm:$0xff] }
 0x7f6   :  { %7582 = vst [vmem:[#allocation19_spill] sm:$0xff] %v6400_v12  ;;  %v6402_v31 = vpop.eup %4058  ;;  %4070 = vpow2.f32 %v2402_v48  ;;  %v2330_v48 = vsub.f32 %v7597_v47, %v6350_v50  ;;  %v7607_v47 = vld [vmem:[#allocation42_spill] sm:$0xff] }
 0x7f7   :  { %2623 = vperm.xlu1 %4016, %v6352_v2   ;;  %v6405_v43 = vpop.eup %4060  ;;  %4072 = vpow2.f32 %v2400_v46  ;;  %v2458_v46 = vmul.f32 1.442695, %v2350_v45  ;;  %v2356_v45 = vsub.f32 %v7605_v19, %v6479_v30  ;;  %v6512_v19 = vperm.slane %v6306_v17, 7  ;;  %v7617_v17 = vld [vmem:[#allocation62_spill] sm:$0xff] }
 0x7f8   :  { %2578 = vperm.xlu0 %4018, %v6354_v9   ;;  %v6415_v63 = vpop.eup %4062  ;;  %4074 = vpow2.f32 %v2446_v58  ;;  %v2418_v52 = vmul.f32 1.442695, %v2330_v48  ;;  %v2353_v58 = vsub.f32 %v7600_v36, %v6431_v18  ;;  %v2336_v48 = vsub.f32 %v7607_v47, %v6350_v50 }
 0x7f9   :  { %2575 = vperm.xlu2 %4017, %v6357_v54   ;;  %7586 = vst [vmem:[#allocation45_spill] sm:$0xff] %v6415_v63  ;;  %v6417_v39 = vpop.eup %4064  ;;  %4076 = vpow2.f32 %v2408_v23  ;;  %v7601_v23 = vld [vmem:[#allocation59_spill] sm:$0xff] }
 0x7fa   :  { %v6420_v20 = vpop.eup %4066  ;;  %4078 = vpow2.f32 %v2406_v11  ;;  %v2334_v11 = vsub.f32 %v7601_v23, %v6350_v50  ;;  %v2464_v7 = vmul.f32 1.442695, %v2353_v58  ;;  %v2430_v36 = vmul.f32 1.442695, %v2336_v48  ;;  %v7611_v50 = vld [vmem:[#allocation30_spill] sm:$0xff] }
 0x7fb   :  { %v6433_v35 = vpop.eup %4068  ;;  %4080 = vpow2.f32 %v2452_v4  ;;  %v2424_v4 = vmul.f32 1.442695, %v2333_v37  ;;  %v2340_v37 = vsub.f32 %v7611_v50, %v6383_v38 }
 0x7fc   :  { %7590 = vst [vmem:[#allocation41_spill] sm:$0xff] %v6433_v35  ;;  %v6435_v51 = vpop.eup %4070  ;;  %4082 = vpow2.f32 %v2414_v0  ;;  %v2426_v25 = vmul.f32 1.442695, %v2334_v11  ;;  %v7610_v11 = vld [vmem:[#allocation36_spill] sm:$0xff] }
 0x7fd   :  { %v6438_v21 = vpop.eup %4072  ;;  %4084 = vpow2.f32 %v2412_v1  ;;  %v2359_v41 = vsub.f32 %v7610_v11, %v6479_v30  ;;  %v2438_v57 = vmul.f32 1.442695, %v2340_v37  ;;  %v2343_v11 = vsub.f32 %v7617_v17, %v6383_v38 }
 0x7fe   :  { %v6448_v27 = vpop.eup %4074  ;;  %4086 = vpow2.f32 %v2458_v46  ;;  %v2470_v46 = vmul.f32 1.442695, %v2356_v45 }
 0x7ff   :  { %2632 = vperm.xlu1 %4016, %v6367_v26   ;;  %7594 = vst [vmem:[#allocation23_spill] sm:$0xff] %v6448_v27  ;;  %v6450_v53 = vpop.eup %4076  ;;  %4088 = vpow2.f32 %v2420_v8  ;;  %v2432_v8 = vmul.f32 1.442695, %v2337_v14  ;;  %v2476_v45 = vmul.f32 1.442695, %v2359_v41  ;;  %v7618_v41 = vld [vmem:[#allocation47_spill] sm:$0xff] }
 0x800   :  { %2584 = vperm.xlu0 %4018, %v6369_v60   ;;  %v6453_v29 = vpop.eup %4078  ;;  %4090 = vpow2.f32 %v2418_v52  ;;  %v2342_v50 = vsub.f32 %v7618_v41, %v6383_v38 }
 0x801   :  { %2581 = vperm.xlu2 %4017, %v6372_v33   ;;  %v6463_v10 = vpop.eup %4080  ;;  %4092 = vpow2.f32 %v2464_v7  ;;  %v7612_v7 = vld [vmem:[#allocation44_spill] sm:$0xff] }
 0x802   :  { %7598 = vst [vmem:[#allocation48_spill] sm:$0xff] %v6463_v10  ;;  %v6465_v32 = vpop.eup %4082  ;;  %4094 = vpow2.f32 %v2426_v25  ;;  %v2339_v25 = vsub.f32 %v7612_v7, %v6383_v38 }
 0x803   :  { %v6468_v13 = vpop.eup %4084  ;;  %4096 = vpow2.f32 %v2424_v4 }
 0x804   :  { %7599 = vst [vmem:[#allocation43_spill] sm:$0xff] %v6468_v13  ;;  %v6481_v5 = vpop.eup %4086  ;;  %4098 = vpow2.f32 %v2470_v46  ;;  %v2436_v47 = vmul.f32 1.442695, %v2339_v25  ;;  %v2444_v25 = vmul.f32 1.442695, %v2343_v11  ;;  %v7622_v11 = vld [vmem:[#allocation49_spill] sm:$0xff] }
 0x805   :  { %7603 = vst [vmem:[#allocation24_spill] sm:$0xff] %v6481_v5  ;;  %v6483_v0 = vpop.eup %4088  ;;  %4100 = vpow2.f32 %v2432_v8  ;;  %v7616_v8 = vld [vmem:[#allocation7_spill] sm:$0xff]  ;;  %v2345_v41 = vsub.f32 %v7622_v11, %v6383_v38  ;;  %v7627_v38 = vld [vmem:[#allocation33_spill] sm:$0xff] }
 0x806   :  { %v6486_v1 = vpop.eup %4090  ;;  %4102 = vpow2.f32 %v2430_v36  ;;  %v2362_v36 = vsub.f32 %v7616_v8, %v6512_v19 }
 0x807   :  { %2641 = vperm.xlu1 %4016, %v6385_v61   ;;  %7604 = vst [vmem:[#allocation46_spill] sm:$0xff] %v6486_v1  ;;  %v6496_v52 = vpop.eup %4092  ;;  %4104 = vpow2.f32 %v2476_v45 }
 0x808   :  { %2590 = vperm.xlu0 %4018, %v6387_v15   ;;  %7608 = vst [vmem:[#allocation9_spill] sm:$0xff] %v6496_v52  ;;  %v6498_v58 = vpop.eup %4094  ;;  %4106 = vpow2.f32 %v2438_v57  ;;  %v2482_v7 = vmul.f32 1.442695, %v2362_v36  ;;  %v7620_v57 = vld [vmem:[#allocation8_spill] sm:$0xff] }
 0x809   :  { %2587 = vperm.xlu2 %4017, %v6390_v56   ;;  %v6501_v23 = vpop.eup %4096  ;;  %4108 = vpow2.f32 %v2436_v47  ;;  %v2365_v47 = vsub.f32 %v7620_v57, %v6512_v19  ;;  %v7621_v36 = vld [vmem:[#allocation64_spill] sm:$0xff] }
 0x80a   :  { %7609 = vst [vmem:[#allocation58_spill] sm:$0xff] %v6501_v23  ;;  %v6514_v14 = vpop.eup %4098  ;;  %4110 = vpow2.f32 %v2482_v7  ;;  %v2346_v17 = vsub.f32 %v7621_v36, %v6431_v18 }
 0x80b   :  { %7613 = vst [vmem:[#allocation17_spill] sm:$0xff] %v6514_v14  ;;  %v6516_v48 = vpop.eup %4100  ;;  %4112 = vpow2.f32 %v2444_v25 }
 0x80c   :  { %7614 = vst [vmem:[#allocation16_spill] sm:$0xff] %v6516_v48  ;;  %v6519_v46 = vpop.eup %4102 }
 0x80d   :  { %7615 = vst [vmem:[#allocation26_spill] sm:$0xff] %v6519_v46 }
 0x80f   :  { %2650 = vperm.xlu1 %4016, %v6400_v12  }
 0x810   :  { %2599 = vperm.xlu0 %4018, %v6402_v31  }
 0x811   :  { %2596 = vperm.xlu2 %4017, %v6405_v43  }
 0x817   :  { %2659 = vperm.xlu1 %4016, %v6415_v63  }
 0x818   :  { %2605 = vperm.xlu0 %4018, %v6417_v39  }
 0x819   :  { %2602 = vperm.xlu2 %4017, %v6420_v20  }
 0x81f   :  { %2668 = vperm.xlu1 %4016, %v6433_v35  }
 0x820   :  { %2611 = vperm.xlu0 %4018, %v6435_v51  }
 0x821   :  { %2608 = vperm.xlu2 %4017, %v6438_v21  }
 0x827   :  { %2677 = vperm.xlu1 %4016, %v6448_v27   ;;  %v2442_v27 = vmul.f32 1.442695, %v2342_v50 }
 0x828   :  { %2620 = vperm.xlu0 %4018, %v6450_v53  }
 0x829   :  { %2617 = vperm.xlu2 %4017, %v6453_v29   ;;  %4114 = vpow2.f32 %v2442_v27  ;;  %v7626_v27 = vld [vmem:[#allocation66_spill] sm:$0xff] }
 0x82a   :  { %v2368_v25 = vsub.f32 %v7626_v27, %v6512_v19 }
 0x82f   :  { %2686 = vperm.xlu1 %4016, %v6463_v10   ;;  %v2494_v10 = vmul.f32 1.442695, %v2368_v25  ;;  %v7633_v25 = vld [vmem:[#allocation53_spill] sm:$0xff] }
 0x830   :  { %2629 = vperm.xlu0 %4018, %v6465_v32  }
 0x831   :  { %2626 = vperm.xlu2 %4017, %v6468_v13  }
 0x837   :  { %2695 = vperm.xlu1 %4016, %v6481_v5  }
 0x838   :  { %2638 = vperm.xlu0 %4018, %v6483_v0  }
 0x839   :  { %2635 = vperm.xlu2 %4017, %v6486_v1  }
 0x83f   :  { %2704 = vperm.xlu1 %4016, %v6496_v52   ;;  %v6529_v52 = vpop.eup %4104 }
 0x840   :  { %2647 = vperm.xlu0 %4018, %v6498_v58   ;;  %7619 = vst [vmem:[#allocation6_spill] sm:$0xff] %v6529_v52  ;;  %v6531_v45 = vpop.eup %4106 }
 0x841   :  { %2644 = vperm.xlu2 %4017, %v6501_v23   ;;  %v6534_v8 = vpop.eup %4108 }
 0x843   :  { %v2564_v4 = vpop.permute.xlu2 %2563 }
 0x847   :  { %2713 = vperm.xlu1 %4016, %v6514_v14   ;;  %v6544_v14 = vpop.eup %4110 }
 0x848   :  { %2656 = vperm.xlu0 %4018, %v6516_v48   ;;  %7623 = vst [vmem:[#allocation51_spill] sm:$0xff] %v6544_v14  ;;  %v2448_v48 = vmul.f32 1.442695, %v2345_v41  ;;  %v6546_v7 = vpop.eup %4112  ;;  %v2754_v41 = vperm.slane %v2564_v4, %v7557_v49  ;;  %v7632_v4 = vld [vmem:[#allocation35_spill] sm:$0xff] }
 0x849   :  { %2653 = vperm.xlu2 %4017, %v6519_v46   ;;  %v2450_v46 = vmul.f32 1.442695, %v2346_v17  ;;  %7624 = vst [vmem:[#allocation28_spill] sm:$0xff] %v6546_v7  ;;  %v6549_v57 = vpop.eup %4114  ;;  %v7628_v17 = vld [vmem:[#allocation50_spill] sm:$0xff] }
 0x84a   :  { %7625 = vst [vmem:[#allocation11_spill] sm:$0xff] %v6549_v57  ;;  %v2348_v11 = vsub.f32 %v7628_v17, %v6431_v18 }
 0x84b   :  { %v2570_v37 = vpop.permute.xlu2 %2569 }
 0x84c   :  { %v2454_v63 = vmul.f32 1.442695, %v2348_v11 }
 0x84f   :  { %2722 = vperm.xlu1 %4016, %v6529_v52   ;;  %v2488_v52 = vmul.f32 1.442695, %v2365_v47  ;;  %v2349_v47 = vsub.f32 %v7627_v38, %v6431_v18 }
 0x850   :  { %2665 = vperm.xlu0 %4018, %v6531_v45  }
 0x851   :  { %2662 = vperm.xlu2 %4017, %v6534_v8   ;;  %4116 = vpow2.f32 %v2488_v52  ;;  %v2757_v52 = vperm.slane %v2570_v37, %v6084_v40 }
 0x852   :  { %4118 = vpow2.f32 %v2450_v46 }
 0x853   :  { %v2576_v50 = vpop.permute.xlu2 %2575  ;;  %4120 = vpow2.f32 %v2448_v48 }
 0x854   :  { %4122 = vpow2.f32 %v2494_v10 }
 0x857   :  { %2731 = vperm.xlu1 %4016, %v6544_v14   ;;  %v6563_v46 = vpop.eup %4116 }
 0x858   :  { %2674 = vperm.xlu0 %4018, %v6546_v7   ;;  %7629 = vst [vmem:[#allocation18_spill] sm:$0xff] %v6563_v46  ;;  %v6566_v48 = vpop.eup %4118 }
 0x859   :  { %2671 = vperm.xlu2 %4017, %v6549_v57   ;;  %v2456_v57 = vmul.f32 1.442695, %v2349_v47  ;;  %7630 = vst [vmem:[#allocation31_spill] sm:$0xff] %v6566_v48  ;;  %v6569_v17 = vpop.eup %4120  ;;  %v2351_v47 = vsub.f32 %v7633_v25, %v6431_v18 }
 0x85a   :  { %v2567_v36 = vpop.permute.xlu0 %2566  ;;  %7631 = vst [vmem:[#allocation20_spill] sm:$0xff] %v6569_v17  ;;  %v6580_v10 = vpop.eup %4122 }
 0x85b   :  { %v2755_v14 = vperm.slane %v2567_v36, %v6081_v28  ;;  %v2582_v7 = vpop.permute.xlu2 %2581  ;;  %4124 = vpow2.f32 %v2456_v57  ;;  %7634 = vst [vmem:[#allocation52_spill] sm:$0xff] %v6580_v10 }
 0x85c   :  { %4126 = vpow2.f32 %v2454_v63 }
 0x85d   :  { %v2756_v27 = vsel %vm2140_vm10, %v2755_v14, %v2754_v41  ;;  %v2352_v14 = vsub.f32 %v7632_v4, %v6431_v18  ;;  %v2761_v41 = vperm.slane %v2576_v50, %v6109_v42  ;;  %v2594_v18 = vpop.permute.xlu1 %2593  ;;  %v7637_v50 = vld [vmem:[#allocation37_spill] sm:$0xff] }
 0x85e   :  { %v2758_v38 = vsel %vm2144_vm11, %v2757_v52, %v2756_v27 }
 0x85f   :  { %2740 = vperm.xlu1 %4016, %v6563_v46   ;;  %v2462_v27 = vmul.f32 1.442695, %v2352_v14  ;;  %v2460_v46 = vmul.f32 1.442695, %v2351_v47  ;;  %v7638_v14 = vld [vmem:[#allocation54_spill] sm:$0xff] }
 0x860   :  { %2683 = vperm.xlu0 %4018, %v6566_v48  }
 0x861   :  { %2680 = vperm.xlu2 %4017, %v6569_v17   ;;  %v6583_v17 = vpop.eup %4124  ;;  %4128 = vpow2.f32 %v2462_v27 }
 0x862   :  { %v2573_v37 = vpop.permute.xlu0 %2572  ;;  %7635 = vst [vmem:[#allocation63_spill] sm:$0xff] %v6583_v17  ;;  %v6586_v63 = vpop.eup %4126  ;;  %4130 = vpow2.f32 %v2460_v46  ;;  %v7641_v46 = vld [vmem:[#allocation3_spill] sm:$0xff] }
 0x863   :  { %v2759_v36 = vperm.slane %v2573_v37, %v6103_v22  ;;  %v2588_v11 = vpop.permute.xlu2 %2587  ;;  %7636 = vst [vmem:[#allocation21_spill] sm:$0xff] %v6586_v63  ;;  %v2354_v37 = vsub.f32 %v7638_v14, %v6479_v30 }
 0x865   :  { %v2760_v52 = vsel %vm2148_vm2, %v2759_v36, %v2758_v38  ;;  %v2355_v38 = vsub.f32 %v7637_v50, %v6479_v30  ;;  %v2765_v36 = vperm.slane %v2582_v7, %v6143_v6  ;;  %v2358_v50 = vsub.f32 %v7641_v46, %v6479_v30  ;;  %v7642_v7 = vld [vmem:[#allocation55_spill] sm:$0xff] }
 0x866   :  { %v2762_v57 = vsel %vm2152_vm13, %v2761_v41, %v2760_v52 }
 0x867   :  { %2749 = vperm.xlu1 %4016, %v6580_v10   ;;  %v2468_v52 = vmul.f32 1.442695, %v2355_v38  ;;  %v6598_v27 = vpop.eup %4128  ;;  %v6608_v38 = vpop.permute.xlu1 %2614 }
 0x868   :  { %2692 = vperm.xlu0 %4018, %v6583_v17   ;;  %v2466_v17 = vmul.f32 1.442695, %v2354_v37  ;;  %7639 = vst [vmem:[#allocation14_spill] sm:$0xff] %v6598_v27  ;;  %v6600_v48 = vpop.eup %4130 }
 0x869   :  { %2689 = vperm.xlu2 %4017, %v6586_v63   ;;  %7640 = vst [vmem:[#allocation65_spill] sm:$0xff] %v6600_v48  ;;  %4132 = vpow2.f32 %v2468_v52 }
 0x86a   :  { %v2579_v4 = vpop.permute.xlu0 %2578  ;;  %4134 = vpow2.f32 %v2466_v17  ;;  %v7645_v17 = vld [vmem:[#allocation4_spill] sm:$0xff] }
 0x86b   :  { %v2763_v25 = vperm.slane %v2579_v4, %v6117_v16  ;;  %v2597_v47 = vpop.permute.xlu2 %2596  ;;  %v2361_v46 = vsub.f32 %v7645_v17, %v6479_v30 }
 0x86d   :  { %v2764_v41 = vsel %vm2156_vm15, %v2763_v25, %v2762_v57  ;;  %v2357_v57 = vsub.f32 %v7642_v7, %v6479_v30 }
 0x86e   :  { %v2766_v10 = vsel %vm2160_vm12, %v2765_v36, %v2764_v41  ;;  %v2474_v36 = vmul.f32 1.442695, %v2358_v50 }
 0x86f   :  { %v2472_v41 = vmul.f32 1.442695, %v2357_v57  ;;  %v6625_v5 = vpop.permute.xlu1 %2623 }
 0x870   :  { %2701 = vperm.xlu0 %4018, %v6598_v27   ;;  %v6612_v27 = vpop.eup %4132  ;;  %4136 = vpow2.f32 %v2474_v36 }
 0x871   :  { %2698 = vperm.xlu2 %4017, %v6600_v48   ;;  %7643 = vst [vmem:[#allocation22_spill] sm:$0xff] %v6612_v27  ;;  %v6614_v52 = vpop.eup %4134  ;;  %4138 = vpow2.f32 %v2472_v41 }
 0x872   :  { %v2585_v4 = vpop.permute.xlu0 %2584  ;;  %7644 = vst [vmem:[#allocation10_spill] sm:$0xff] %v6614_v52 }
 0x873   :  { %v2767_v14 = vperm.slane %v2585_v4, %v6114_v44  ;;  %v2603_v37 = vpop.permute.xlu2 %2602  ;;  %v7646_v4 = vld [vmem:[#allocation56_spill] sm:$0xff] }
 0x874   :  { %v2360_v48 = vsub.f32 %v7646_v4, %v6479_v30 }
 0x875   :  { %v2768_v25 = vsel %vm2164_vm5, %v2767_v14, %v2766_v10  ;;  %v2769_v10 = vperm.slane %v2588_v11, %v7557_v49  ;;  %v2772_v14 = vperm.slane %v2594_v18, %v6084_v40  ;;  %v7649_v18 = vld [vmem:[#allocation38_spill] sm:$0xff] }
 0x876   :  { %v2478_v41 = vmul.f32 1.442695, %v2360_v48  ;;  %v6630_v23 = vpop.eup %4136 }
 0x877   :  { %7647 = vst [vmem:[#allocation32_spill] sm:$0xff] %v6630_v23  ;;  %v6633_v11 = vpop.eup %4138 }
 0x878   :  { %2710 = vperm.xlu0 %4018, %v6612_v27   ;;  %v2774_v27 = vperm.slane %v2597_v47, %v6103_v22  ;;  %7648 = vst [vmem:[#allocation25_spill] sm:$0xff] %v6633_v11  ;;  %v2364_v47 = vsub.f32 %v7649_v18, %v6512_v19 }
 0x879   :  { %2707 = vperm.xlu2 %4017, %v6614_v52   ;;  %v2480_v52 = vmul.f32 1.442695, %v2361_v46  ;;  %v7650_v46 = vld [vmem:[#allocation57_spill] sm:$0xff] }
 0x87a   :  { %v2591_v7 = vpop.permute.xlu0 %2590  ;;  %v2363_v4 = vsub.f32 %v7650_v46, %v6512_v19 }
 0x87b   :  { %v2770_v50 = vperm.slane %v2591_v7, %v6081_v28  ;;  %v2609_v57 = vpop.permute.xlu2 %2608  ;;  %4140 = vpow2.f32 %v2480_v52 }
 0x87c   :  { %4142 = vpow2.f32 %v2478_v41  ;;  %v7653_v41 = vld [vmem:[#allocation5_spill] sm:$0xff] }
 0x87d   :  { %v2771_v36 = vsel %vm2140_vm10, %v2770_v50, %v2769_v10 }
 0x87e   :  { %v2773_v17 = vsel %vm2144_vm11, %v2772_v14, %v2771_v36  ;;  %v2486_v14 = vmul.f32 1.442695, %v2364_v47 }
 0x87f   :  { %v2775_v30 = vsel %vm2148_vm2, %v2774_v27, %v2773_v17  ;;  %v2778_v27 = vperm.slane %v2603_v37, %v6117_v16  ;;  %v2484_v17 = vmul.f32 1.442695, %v2363_v4 }
 0x880   :  { %2719 = vperm.xlu0 %4018, %v6630_v23   ;;  %4144 = vpow2.f32 %v2486_v14 }
 0x881   :  { %2716 = vperm.xlu2 %4017, %v6633_v11   ;;  %v6645_v52 = vpop.eup %4140  ;;  %v2633_v11 = vpop.permute.xlu1 %2632  ;;  %4146 = vpow2.f32 %v2484_v17 }
 0x882   :  { %v2600_v7 = vpop.permute.xlu0 %2599  ;;  %7651 = vst [vmem:[#allocation12_spill] sm:$0xff] %v6645_v52  ;;  %v6647_v18 = vpop.eup %4142 }
 0x883   :  { %v2776_v48 = vperm.slane %v2600_v7, %v6109_v42  ;;  %v2618_v10 = vpop.permute.xlu2 %2617  ;;  %7652 = vst [vmem:[#allocation34_spill] sm:$0xff] %v6647_v18  ;;  %v2367_v7 = vsub.f32 %v7653_v41, %v6512_v19 }
 0x885   :  { %v2777_v50 = vsel %vm2152_vm13, %v2776_v48, %v2775_v30  ;;  %v7654_v30 = vld [vmem:[#allocation60_spill] sm:$0xff]  ;;  %v2782_v48 = vperm.slane %v2609_v57, %v6114_v44  ;;  %v7657_v57 = vld [vmem:[#allocation61_spill] sm:$0xff] }
 0x886   :  { %v2779_v36 = vsel %vm2156_vm15, %v2778_v27, %v2777_v50  ;;  %v2366_v47 = vsub.f32 %v7654_v30, %v6512_v19  ;;  %v2492_v50 = vmul.f32 1.442695, %v2367_v7  ;;  %v6659_v14 = vpop.eup %4144  ;;  %v2785_v7 = vperm.slane %v6608_v38, %v6081_v28 }
 0x887   :  { %7655 = vst [vmem:[#allocation27_spill] sm:$0xff] %v6659_v14  ;;  %v6662_v23 = vpop.eup %4146 }
 0x888   :  { %2728 = vperm.xlu0 %4018, %v6645_v52   ;;  %7656 = vst [vmem:[#allocation13_spill] sm:$0xff] %v6662_v23  ;;  %4148 = vpow2.f32 %v2492_v50 }
 0x889   :  { %2725 = vperm.xlu2 %4017, %v6647_v18   ;;  %v2490_v18 = vmul.f32 1.442695, %v2366_v47  ;;  %v2642_v17 = vpop.permute.xlu1 %2641 }
 0x88a   :  { %v2606_v37 = vpop.permute.xlu0 %2605 }
 0x88b   :  { %v2780_v46 = vperm.slane %v2606_v37, %v6143_v6  ;;  %v2627_v4 = vpop.permute.xlu2 %2626  ;;  %4150 = vpow2.f32 %v2490_v18 }
 0x88d   :  { %v2781_v27 = vsel %vm2160_vm12, %v2780_v46, %v2779_v36  ;;  %v2369_v36 = vsub.f32 %v7657_v57, %v6512_v19  ;;  %v2793_v57 = vperm.slane %v2627_v4, %v6117_v16 }
 0x88e   :  { %v2783_v52 = vsel %vm2164_vm5, %v2782_v48, %v2781_v27  ;;  %v6674_v27 = vpop.eup %4148 }
 0x88f   :  { %v2874_v41 = vsel %vm2271_vm1, %v2783_v52, %v2768_v25  ;;  %v2787_v25 = vperm.slane %v2618_v10, %v6084_v40  ;;  %v2496_v48 = vmul.f32 1.442695, %v2369_v36  ;;  %7658 = vst [vmem:[#allocation39_spill] sm:$0xff] %v6674_v27  ;;  %v2791_v10 = vperm.slane %v6625_v5, %v6109_v42 }
 0x890   :  { %2737 = vperm.xlu0 %4018, %v6659_v14  }
 0x891   :  { %2734 = vperm.xlu2 %4017, %v6662_v23   ;;  %v6676_v50 = vpop.eup %4150  ;;  %4152 = vpow2.f32 %v2496_v48  ;;  %v2651_v38 = vpop.permute.xlu1 %2650 }
 0x892   :  { %v2612_v37 = vpop.permute.xlu0 %2611  ;;  %7659 = vst [vmem:[#allocation59_spill] sm:$0xff] %v6676_v50 }
 0x893   :  { %v2784_v30 = vperm.slane %v2612_v37, %v7557_v49  ;;  %v2636_v47 = vpop.permute.xlu2 %2635 }
 0x895   :  { %v2786_v52 = vsel %vm2140_vm10, %v2785_v7, %v2784_v30 }
 0x896   :  { %v2788_v46 = vsel %vm2144_vm11, %v2787_v25, %v2786_v52 }
 0x897   :  { %v6687_v25 = vpop.eup %4152 }
 0x898   :  { %2746 = vperm.xlu0 %4018, %v6674_v27   ;;  %7660 = vst [vmem:[#allocation15_spill] sm:$0xff] %v6687_v25  ;;  %v2797_v27 = vperm.slane %v2633_v11, %v6114_v44 }
 0x899   :  { %2743 = vperm.xlu2 %4017, %v6676_v50   ;;  %v2660_v23 = vpop.permute.xlu1 %2659 }
 0x89a   :  { %v2621_v19 = vpop.permute.xlu0 %2620 }
 0x89b   :  { %v2789_v18 = vperm.slane %v2621_v19, %v6103_v22  ;;  %v2645_v37 = vpop.permute.xlu2 %2644 }
 0x89c   :  { %v2804_v11 = vperm.slane %v2645_v37, %v6103_v22 }
 0x89d   :  { %v2790_v36 = vsel %vm2148_vm2, %v2789_v18, %v2788_v46 }
 0x89e   :  { %v2792_v7 = vsel %vm2152_vm13, %v2791_v10, %v2790_v36  ;;  %v2799_v10 = vperm.slane %v2636_v47, %v7557_v49 }
 0x89f   :  { %v2794_v30 = vsel %vm2156_vm15, %v2793_v57, %v2792_v7  ;;  %v2802_v7 = vperm.slane %v2642_v17, %v6084_v40  ;;  %v2808_v17 = vperm.slane %v2651_v38, %v6117_v16 }
 0x8a1   :  { %2752 = vperm.xlu2 %4017, %v6687_v25  }
 0x8a2   :  { %v2630_v52 = vpop.permute.xlu0 %2629 }
 0x8a3   :  { %v2795_v48 = vperm.slane %v2630_v52, %v6143_v6  ;;  %v2654_v19 = vpop.permute.xlu2 %2653  ;;  %v2814_v52 = vperm.slane %v2660_v23, %v7557_v49 }
 0x8a4   :  { %v2810_v23 = vperm.slane %v2654_v19, %v6143_v6 }
 0x8a5   :  { %v2796_v5 = vsel %vm2160_vm12, %v2795_v48, %v2794_v30  ;;  %v2669_v48 = vpop.permute.xlu1 %2668 }
 0x8a6   :  { %v2798_v4 = vsel %vm2164_vm5, %v2797_v27, %v2796_v5  ;;  %v2819_v19 = vperm.slane %v2669_v48, %v6103_v22 }
 0x8a7   :  { %v2875_v46 = vsel %vm2273_vm3, %v2798_v4, %v2874_v41 }
 0x8aa   :  { %v2639_v18 = vpop.permute.xlu0 %2638 }
 0x8ab   :  { %v2800_v57 = vperm.slane %v2639_v18, %v6081_v28  ;;  %v2663_v36 = vpop.permute.xlu2 %2662 }
 0x8ac   :  { %v2815_v25 = vperm.slane %v2663_v36, %v6081_v28 }
 0x8ad   :  { %v2801_v30 = vsel %vm2140_vm10, %v2800_v57, %v2799_v10  ;;  %v2678_v57 = vpop.permute.xlu1 %2677 }
 0x8ae   :  { %v2803_v27 = vsel %vm2144_vm11, %v2802_v7, %v2801_v30  ;;  %v2816_v41 = vsel %vm2140_vm10, %v2815_v25, %v2814_v52 }
 0x8af   :  { %v2805_v47 = vsel %vm2148_vm2, %v2804_v11, %v2803_v27 }
 0x8b2   :  { %v2648_v5 = vpop.permute.xlu0 %2647 }
 0x8b3   :  { %v2806_v4 = vperm.slane %v2648_v5, %v6109_v42  ;;  %v2672_v18 = vpop.permute.xlu2 %2671 }
 0x8b5   :  { %v2807_v36 = vsel %vm2152_vm13, %v2806_v4, %v2805_v47  ;;  %v2687_v5 = vpop.permute.xlu1 %2686  ;;  %v2821_v4 = vperm.slane %v2672_v18, %v6109_v42 }
 0x8b6   :  { %v2809_v37 = vsel %vm2156_vm15, %v2808_v17, %v2807_v36 }
 0x8b7   :  { %v2811_v10 = vsel %vm2160_vm12, %v2810_v23, %v2809_v37 }
 0x8ba   :  { %v2657_v7 = vpop.permute.xlu0 %2656 }
 0x8bb   :  { %v2812_v25 = vperm.slane %v2657_v7, %v6114_v44  ;;  %v2681_v52 = vpop.permute.xlu2 %2680 }
 0x8bd   :  { %v2813_v11 = vsel %vm2164_vm5, %v2812_v25, %v2811_v10  ;;  %v2696_v7 = vpop.permute.xlu1 %2695 }
 0x8be   :  { %v2876_v30 = vsel %vm2275_vm8, %v2813_v11, %v2875_v46 }
 0x8c2   :  { %v2666_v27 = vpop.permute.xlu0 %2665 }
 0x8c3   :  { %v2817_v38 = vperm.slane %v2666_v27, %v6084_v40  ;;  %v2690_v47 = vpop.permute.xlu2 %2689 }
 0x8c5   :  { %v2818_v17 = vsel %vm2144_vm11, %v2817_v38, %v2816_v41  ;;  %v6720_v46 = vpop.permute.xlu1 %2704  ;;  %v2825_v41 = vperm.slane %v2678_v57, %v6143_v6  ;;  %v2830_v57 = vperm.slane %v2687_v5, %v6081_v28 }
 0x8c6   :  { %v2820_v23 = vsel %vm2148_vm2, %v2819_v19, %v2818_v17  ;;  %v2827_v19 = vperm.slane %v2681_v52, %v6114_v44 }
 0x8c7   :  { %v2822_v36 = vsel %vm2152_vm13, %v2821_v4, %v2820_v23 }
 0x8ca   :  { %v2675_v37 = vpop.permute.xlu0 %2674 }
 0x8cb   :  { %v2699_v10 = vpop.permute.xlu2 %2698  ;;  %v2823_v48 = vperm.slane %v2675_v37, %v6117_v16 }
 0x8cd   :  { %v2714_v27 = vpop.permute.xlu1 %2713  ;;  %v2824_v18 = vsel %vm2156_vm15, %v2823_v48, %v2822_v36 }
 0x8ce   :  { %v2826_v38 = vsel %vm2160_vm12, %v2825_v41, %v2824_v18 }
 0x8cf   :  { %v2828_v23 = vsel %vm2164_vm5, %v2827_v19, %v2826_v38  ;;  %v2832_v38 = vperm.slane %v2690_v47, %v6084_v40  ;;  %v2847_v19 = vperm.slane %v2714_v27, %v6084_v40 }
 0x8d0   :  { %v2877_v61 = vsel %vm2277_vm14, %v2828_v23, %v2876_v30 }
 0x8d2   :  { %v2684_v25 = vpop.permute.xlu0 %2683 }
 0x8d3   :  { %v2708_v11 = vpop.permute.xlu2 %2707  ;;  %v2829_v26 = vperm.slane %v2684_v25, %v7557_v49 }
 0x8d4   :  { %v2844_v18 = vperm.slane %v2708_v11, %v7557_v49 }
 0x8d5   :  { %v2723_v17 = vpop.permute.xlu1 %2722  ;;  %v2831_v52 = vsel %vm2140_vm10, %v2830_v57, %v2829_v26 }
 0x8d6   :  { %v2833_v25 = vsel %vm2144_vm11, %v2832_v38, %v2831_v52  ;;  %v2838_v38 = vperm.slane %v2699_v10, %v6117_v16  ;;  %v2842_v10 = vperm.slane %v6720_v46, %v6114_v44 }
 0x8da   :  { %v2693_v50 = vpop.permute.xlu0 %2692 }
 0x8db   :  { %v2717_v12 = vpop.permute.xlu2 %2716  ;;  %v2834_v41 = vperm.slane %v2693_v50, %v6103_v22  ;;  %v2836_v50 = vperm.slane %v2696_v7, %v6109_v42  ;;  %v2853_v7 = vperm.slane %v2723_v17, %v6117_v16 }
 0x8dc   :  { %v2849_v47 = vperm.slane %v2717_v12, %v6103_v22 }
 0x8dd   :  { %v2732_v13 = vpop.permute.xlu1 %2731 }
 0x8e2   :  { %v2702_v14 = vpop.permute.xlu0 %2701 }
 0x8e3   :  { %v2726_v1 = vpop.permute.xlu2 %2725  ;;  %v2840_v52 = vperm.slane %v2702_v14, %v6143_v6 }
 0x8e5   :  { %v2741_v23 = vpop.permute.xlu1 %2740 }
 0x8ea   :  { %v2711_v4 = vpop.permute.xlu0 %2710 }
 0x8eb   :  { %v2735_v37 = vpop.permute.xlu2 %2734  ;;  %v2845_v36 = vperm.slane %v2711_v4, %v6081_v28  ;;  %v2835_v4 = vsel %vm2148_vm2, %v2834_v41, %v2833_v25 }
 0x8ec   :  { %v2860_v11 = vperm.slane %v2735_v37, %v6081_v28 }
 0x8ed   :  { %v2846_v30 = vsel %vm2140_vm10, %v2845_v36, %v2844_v18  ;;  %v2859_v36 = vperm.slane %v2732_v13, %v7557_v49  ;;  %v2837_v18 = vsel %vm2152_vm13, %v2836_v50, %v2835_v4  ;;  %v2864_v49 = vperm.slane %v2741_v23, %v6103_v22 }
 0x8ee   :  { %v2848_v5 = vsel %vm2144_vm11, %v2847_v19, %v2846_v30  ;;  %v2750_v30 = vpop.permute.xlu1 %2749  ;;  %v2855_v19 = vperm.slane %v2726_v1, %v6143_v6 }
 0x8ef   :  { %v2850_v41 = vsel %vm2148_vm2, %v2849_v47, %v2848_v5  ;;  %v2861_v28 = vsel %vm2140_vm10, %v2860_v11, %v2859_v36 }
 0x8f2   :  { %v2720_v35 = vpop.permute.xlu0 %2719 }
 0x8f3   :  { %v2744_v63 = vpop.permute.xlu2 %2743  ;;  %v2851_v26 = vperm.slane %v2720_v35, %v6109_v42 }
 0x8f4   :  { %v2866_v25 = vperm.slane %v2744_v63, %v6109_v42 }
 0x8f5   :  { %v2852_v35 = vsel %vm2152_vm13, %v2851_v26, %v2850_v41 }
 0x8f6   :  { %v2854_v14 = vsel %vm2156_vm15, %v2853_v7, %v2852_v35 }
 0x8f7   :  { %v2856_v5 = vsel %vm2160_vm12, %v2855_v19, %v2854_v14 }
 0x8fa   :  { %v2729_v48 = vpop.permute.xlu0 %2728 }
 0x8fb   :  { %v2857_v37 = vperm.slane %v2729_v48, %v6114_v44  ;;  %v2753_v4 = vpop.permute.xlu2 %2752  ;;  %v2870_v48 = vperm.slane %v2750_v30, %v6143_v6 }
 0x8fc   :  { %v2872_v1 = vperm.slane %v2753_v4, %v6114_v44 }
 0x8fd   :  { %v2858_v26 = vsel %vm2164_vm5, %v2857_v37, %v2856_v5 }
 0x902   :  { %v2738_v57 = vpop.permute.xlu0 %2737 }
 0x903   :  { %v2862_v27 = vperm.slane %v2738_v57, %v6084_v40  ;;  %v2839_v40 = vsel %vm2156_vm15, %v2838_v38, %v2837_v18 }
 0x904   :  { %v2841_v13 = vsel %vm2160_vm12, %v2840_v52, %v2839_v40 }
 0x905   :  { %v2863_v12 = vsel %vm2144_vm11, %v2862_v27, %v2861_v28  ;;  %v2843_v23 = vsel %vm2164_vm5, %v2842_v10, %v2841_v13 }
 0x906   :  { %v2865_v17 = vsel %vm2148_vm2, %v2864_v49, %v2863_v12  ;;  %v2878_v63 = vsel %vm2279_vm9, %v2843_v23, %v2877_v61 }
 0x907   :  { %v2867_v46 = vsel %vm2152_vm13, %v2866_v25, %v2865_v17  ;;  %v2879_v57 = vsel %vm2281_vm7, %v2858_v26, %v2878_v63 }
 0x90a   :  { %v2747_v22 = vpop.permute.xlu0 %2746 }
 0x90b   :  { %v2868_v11 = vperm.slane %v2747_v22, %v6117_v16 }
 0x90d   :  { %v2869_v50 = vsel %vm2156_vm15, %v2868_v11, %v2867_v46 }
 0x90e   :  { %v2871_v42 = vsel %vm2160_vm12, %v2870_v48, %v2869_v50 }
 0x90f   :  { %v2873_v47 = vsel %vm2164_vm5, %v2872_v1, %v2871_v42 }
 0x910   :  { %v2880_v16 = vsel %vm2283_vm4, %v2873_v47, %v2879_v57 }
 0x911   :  { %v2882_v6 = vsel %vm210_vm0, %v2880_v16, 0.0 }
 0x912   :  { %2883 = vadd.xlane.f32.xlu0 %v2882_v6 }
 0x985   :  { %v6779_v36 = vpop.xlane.xlu0 %2883 }
 0x986   :  { %v2886_v27 = vperm.slane %v6779_v36, 0  ;;  %v2887_v44 = vperm.slane %v6779_v36, 1  ;;  %v2888_v18 = vperm.slane %v6779_v36, 2  ;;  %v6785_v25 = vperm.slane %v6779_v36, 3 }
 0x988   :  { %4154 = vrcp.f32 %v2886_v27  ;;  %v2933_v49 = vand.u32 2147483647, %v2887_v44  ;;  %v2935_v40 = vand.u32 2147483648, %v2887_v44  ;;  %v2913_v13 = vand.u32 2147483648, %v2886_v27 }
 0x989   :  { %4156 = vrcp.f32 %v2887_v44  ;;  %v2911_v10 = vand.u32 2147483647, %v2886_v27  ;;  %vm2907_vm10 = vweird.f32 %v2886_v27  ;;  %vm2929_vm11 = vweird.f32 %v2887_v44 }
 0x98a   :  { %4158 = vrcp.f32 %v2888_v18  ;;  %v2914_v22 = vor.u32 1.1754944e-38, %v2913_v13  ;;  %vm2934_vm15 = vcmp.eq.f32.partialorder %v2933_v49, 8.507059e+37  ;;  %v2936_v23 = vor.u32 1.1754944e-38, %v2935_v40 }
 0x98b   :  { %vm2912_vm12 = vcmp.eq.f32.partialorder %v2911_v10, 8.507059e+37  ;;  %v2957_v42 = vand.u32 2147483648, %v2888_v18  ;;  %v2955_v47 = vand.u32 2147483647, %v2888_v18  ;;  %4160 = vrcp.f32 %v6785_v25 }
 0x98d   :  { %v2958_v16 = vor.u32 1.1754944e-38, %v2957_v42 }
 0x98e   :  { %v4155_v61 = vpop.eup %4154 }
 0x98f   :  { %v4157_v52 = vpop.eup %4156  ;;  %v2903_v41 = vmul.f32 %v4155_v61, %v2886_v27  ;;  %vm2908_vm0 = vweird.f32 %v4155_v61 }
 0x990   :  { %v4159_v38 = vpop.eup %4158  ;;  %v2925_v28 = vmul.f32 %v4157_v52, %v2887_v44  ;;  %vm2930_vm6 = vweird.f32 %v4157_v52  ;;  %vm2909_vm2 = vmor %vm2907_vm10, %vm2908_vm0  ;;  %vm2951_vm0 = vweird.f32 %v2888_v18  ;;  %vm2956_vm10 = vcmp.eq.f32.partialorder %v2955_v47, 8.507059e+37 }
 0x991   :  { %v2904_v35 = vsub.f32 1.0, %v2903_v41  ;;  %v2947_v7 = vmul.f32 %v4159_v38, %v2888_v18  ;;  %vm2931_vm13 = vmor %vm2929_vm11, %vm2930_vm6  ;;  %vm2952_vm5 = vweird.f32 %v4159_v38  ;;  %v2890_v18 = vperm.slane %v6779_v36, 4 }
 0x992   :  { %v2926_v12 = vsub.f32 1.0, %v2925_v28  ;;  %vm2953_vm6 = vmor %vm2951_vm0, %vm2952_vm5 }
 0x993   :  { %v2948_v14 = vsub.f32 1.0, %v2947_v7  ;;  %v2905_v37 = vmul.f32 %v4155_v61, %v2904_v35  ;;  %4162 = vrcp.f32 %v2890_v18  ;;  %v2979_v7 = vand.u32 2147483648, %v6785_v25 }
 0x994   :  { %v2927_v30 = vmul.f32 %v4157_v52, %v2926_v12  ;;  %vm2995_vm5 = vweird.f32 %v2890_v18 }
 0x995   :  { %v2906_v19 = vadd.f32 %v4155_v61, %v2905_v37  ;;  %v2949_v17 = vmul.f32 %v4159_v38, %v2948_v14  ;;  %v2980_v49 = vor.u32 1.1754944e-38, %v2979_v7 }
 0x996   :  { %v2928_v4 = vadd.f32 %v4157_v52, %v2927_v30 }
 0x997   :  { %v2910_v5 = vsel %vm2909_vm2, %v4155_v61, %v2906_v19  ;;  %v2950_v26 = vadd.f32 %v4159_v38, %v2949_v17  ;;  %vm2973_vm2 = vweird.f32 %v6785_v25  ;;  %v3001_v17 = vand.u32 2147483648, %v2890_v18 }
 0x998   :  { %v2932_v11 = vsel %vm2931_vm13, %v4157_v52, %v2928_v4  ;;  %v2915_v48 = vsel %vm2912_vm12, %v2914_v22, %v2910_v5 }
 0x999   :  { %v6787_v46 = vsel %vm2934_vm15, %v2936_v23, %v2932_v11  ;;  %v2917_v1 = vmul.f32 %v6325_v34, %v2915_v48  ;;  %v2916_v50 = vmul.f32 %v6328_v62, %v2915_v48  ;;  %v2954_v57 = vsel %vm2953_vm6, %v4159_v38, %v2950_v26  ;;  %v4161_v34 = vpop.eup %4160 }
 0x99a   :  { %v2940_v63 = vmul.f32 %v6323_v59, %v6787_v46  ;;  %v6794_v6 = vsel %vm2956_vm10, %v2958_v16, %v2954_v57  ;;  %v2919_v62 = vmul.f32 %v6338_v55, %v2915_v48  ;;  %v2918_v27 = vmul.f32 %v6341_v3, %v2915_v48  ;;  %v4163_v38 = vpop.eup %4162 }
 0x99b   :  { %3299 = vperm.xlu2 %4017, %v2917_v1   ;;  %3294 = vperm.xlu1 %4016, %v2916_v50   ;;  %v2960_v59 = vmul.f32 %v6435_v51, %v6794_v6  ;;  %v2969_v44 = vmul.f32 %v4161_v34, %v6785_v25  ;;  %v2921_v52 = vmul.f32 %v6354_v9, %v2915_v48  ;;  %vm2974_vm11 = vweird.f32 %v4161_v34 }
 0x99c   :  { %3344 = vperm.xlu0 %4018, %v2940_v63   ;;  %v2920_v41 = vmul.f32 %v6357_v54, %v2915_v48  ;;  %v2963_v55 = vmul.f32 %v6450_v53, %v6794_v6  ;;  %v2923_v28 = vmul.f32 %v6369_v60, %v2915_v48  ;;  %v2922_v35 = vmul.f32 %v6372_v33, %v2915_v48  ;;  %vm2975_vm13 = vmor %vm2973_vm2, %vm2974_vm11 }
 0x99d   :  { %v2970_v61 = vsub.f32 1.0, %v2969_v44  ;;  %v2966_v9 = vmul.f32 %v6465_v32, %v6794_v6  ;;  %v2977_v54 = vand.u32 2147483647, %v6785_v25  ;;  %v2991_v53 = vmul.f32 %v4163_v38, %v2890_v18 }
 0x99e   :  { %v2891_v60 = vperm.slane %v6779_v36, 5  ;;  %v2939_v32 = vmul.f32 %v6387_v15, %v6787_v46  ;;  %v2938_v13 = vmul.f32 %v6390_v56, %v6787_v46  ;;  %vm2996_vm12 = vweird.f32 %v4163_v38 }
 0x99f   :  { %v2971_v3 = vmul.f32 %v4161_v34, %v2970_v61  ;;  %vm2978_vm15 = vcmp.eq.f32.partialorder %v2977_v54, 8.507059e+37  ;;  %v2992_v40 = vsub.f32 1.0, %v2991_v53  ;;  %v2942_v19 = vmul.f32 %v6402_v31, %v6787_v46  ;;  %vm2997_vm0 = vmor %vm2995_vm5, %vm2996_vm12  ;;  %v7666_v53 = vld [vmem:[#allocation46_spill] sm:$0xff] }
 0x9a0   :  { %4164 = vrcp.f32 %v2891_v60  ;;  %v2941_v15 = vmul.f32 %v6405_v43, %v6787_v46  ;;  %v3002_v22 = vor.u32 1.1754944e-38, %v3001_v17  ;;  %v2893_v23 = vperm.slane %v6779_v36, 7 }
 0x9a1   :  { %v2972_v51 = vadd.f32 %v4161_v34, %v2971_v3  ;;  %v2993_v37 = vmul.f32 %v4163_v38, %v2992_v40  ;;  %v2944_v43 = vmul.f32 %v6417_v39, %v6787_v46  ;;  %v2961_v50 = vmul.f32 %v6336_v24, %v6794_v6 }
 0x9a2   :  { %4166 = vrcp.f32 %v2893_v23  ;;  %v2945_v39 = vmul.f32 %v6438_v21, %v6787_v46  ;;  %v3023_v42 = vand.u32 2147483648, %v2891_v60  ;;  %vm3017_vm11 = vweird.f32 %v2891_v60 }
 0x9a3   :  { %3309 = vperm.xlu2 %4017, %v2919_v62   ;;  %3304 = vperm.xlu1 %4016, %v2918_v27   ;;  %v2976_v12 = vsel %vm2975_vm13, %v4161_v34, %v2972_v51  ;;  %v2994_v10 = vadd.f32 %v4163_v38, %v2993_v37  ;;  %v2892_v16 = vperm.slane %v6779_v36, 6  ;;  %v6846_v34 = vpop.f32.mrf.mxu1  ;;  %v7661_v62 = vld [vmem:[#allocation21_spill] sm:$0xff]  ;;  %vm3061_vm12 = vweird.f32 %v2893_v23 }
 0x9a4   :  { %3374 = vperm.xlu0 %4018, %v2960_v59   ;;  %v6814_v33 = vsel %vm2978_vm15, %v2980_v49, %v2976_v12  ;;  %v3024_v57 = vor.u32 1.1754944e-38, %v3023_v42  ;;  %v3065_v51 = vand.u32 2147483647, %v2893_v23  ;;  %v7667_v49 = vld [vmem:[#allocation27_spill] sm:$0xff] }
 0x9a5   :  { %v2983_v14 = vmul.f32 %v6483_v0, %v6814_v33  ;;  %v2986_v56 = vmul.f32 %v6498_v58, %v6814_v33  ;;  %v2999_v0 = vand.u32 2147483647, %v2890_v18  ;;  %v2998_v4 = vsel %vm2997_vm0, %v4163_v38, %v2994_v10  ;;  %v7662_v18 = vld [vmem:[#allocation2_spill] sm:$0xff] }
 0x9a6   :  { %v4165_v30 = vpop.eup %4164  ;;  %v2943_v58 = vmul.f32 %v6420_v20, %v6787_v46  ;;  %v2962_v46 = vmul.f32 %v6453_v29, %v6794_v6  ;;  %4168 = vrcp.f32 %v2892_v16  ;;  %v2967_v61 = vmul.f32 %v7662_v18, %v6794_v6  ;;  %v7664_v29 = vld [vmem:[#allocation41_spill] sm:$0xff]  ;;  %v7669_v10 = vld [vmem:[#allocation58_spill] sm:$0xff] }
 0x9a7   :  { %v3013_v25 = vmul.f32 %v4165_v30, %v2891_v60  ;;  %vm3000_vm6 = vcmp.eq.f32.partialorder %v2999_v0, 8.507059e+37  ;;  %vm3018_vm10 = vweird.f32 %v4165_v30  ;;  %vm3066_vm0 = vcmp.eq.f32.partialorder %v3065_v51, 8.507059e+37 }
 0x9a8   :  { %v6829_v31 = vsel %vm3000_vm6, %v3002_v22, %v2998_v4  ;;  %v4167_v1 = vpop.eup %4166  ;;  %vm3019_vm2 = vmor %vm3017_vm11, %vm3018_vm10  ;;  %v2982_v12 = vmul.f32 %v7666_v53, %v6814_v33  ;;  %vm3039_vm10 = vweird.f32 %v2892_v16 }
 0x9a9   :  { %v3014_v5 = vsub.f32 1.0, %v3013_v25  ;;  %v3005_v11 = vmul.f32 %v6534_v8, %v6829_v31  ;;  %v3006_v20 = vmul.f32 %v6531_v45, %v6829_v31  ;;  %v3021_v8 = vand.u32 2147483647, %v2891_v60 }
 0x9aa   :  { %v3057_v63 = vmul.f32 %v4167_v1, %v2893_v23  ;;  %v2964_v45 = vmul.f32 %v6352_v2, %v6794_v6  ;;  %vm3062_vm15 = vweird.f32 %v4167_v1  ;;  %v3007_v3 = vmul.f32 %v7664_v29, %v6829_v31 }
 0x9ab   :  { %3319 = vperm.xlu2 %4017, %v2921_v52   ;;  %3314 = vperm.xlu1 %4016, %v2920_v41   ;;  %v3015_v48 = vmul.f32 %v4165_v30, %v3014_v5  ;;  %vm3022_vm13 = vcmp.eq.f32.partialorder %v3021_v8, 8.507059e+37  ;;  %v7663_v52 = vld [vmem:[#allocation43_spill] sm:$0xff]  ;;  %v3067_v41 = vand.u32 2147483648, %v2893_v23  ;;  %vm3063_vm5 = vmor %vm3061_vm12, %vm3062_vm15  ;;  %v7674_v8 = vld [vmem:[#allocation10_spill] sm:$0xff] }
 0x9ac   :  { %3389 = vperm.xlu0 %4018, %v2963_v55   ;;  %v3058_v21 = vsub.f32 1.0, %v3057_v63  ;;  %v4169_v44 = vpop.eup %4168  ;;  %v2965_v2 = vmul.f32 %v7663_v52, %v6794_v6  ;;  %v6858_v55 = vpop.f32.mrf.mxu1  ;;  %v7665_v6 = vld [vmem:[#allocation67_spill] sm:$0xff]  ;;  %v7679_v52 = vld [vmem:[#allocation16_spill] sm:$0xff] }
 0x9ad   :  { %v3016_v26 = vadd.f32 %v4165_v30, %v3015_v48  ;;  %v3035_v38 = vmul.f32 %v4169_v44, %v2892_v16  ;;  %v2984_v54 = vmul.f32 %v7665_v6, %v6814_v33  ;;  %vm3040_vm6 = vweird.f32 %v4169_v44  ;;  %v7671_v5 = vld [vmem:[#allocation31_spill] sm:$0xff]  ;;  %v7673_v48 = vld [vmem:[#allocation32_spill] sm:$0xff] }
 0x9ae   :  { %v3059_v59 = vmul.f32 %v4167_v1, %v3058_v21  ;;  %vm3041_vm11 = vmor %vm3039_vm10, %vm3040_vm6 }
 0x9af   :  { %v3020_v47 = vsel %vm3019_vm2, %v4165_v30, %v3016_v26  ;;  %v2985_v30 = vmul.f32 %v7669_v10, %v6814_v33 }
 0x9b0   :  { %v6844_v24 = vsel %vm3022_vm13, %v3024_v57, %v3020_v47  ;;  %v3060_v36 = vadd.f32 %v4167_v1, %v3059_v59  ;;  %v7675_v47 = vld [vmem:[#allocation48_spill] sm:$0xff]  ;;  %v7677_v59 = vld [vmem:[#allocation51_spill] sm:$0xff] }
 0x9b1   :  { %v3028_v27 = vmul.f32 %v7661_v62, %v6844_v24  ;;  %v3027_v57 = vmul.f32 %v7675_v47, %v6844_v24 }
 0x9b3   :  { %3329 = vperm.xlu2 %4017, %v2923_v28   ;;  %3324 = vperm.xlu1 %4016, %v2922_v35   ;;  %v3064_v28 = vsel %vm3063_vm5, %v4167_v1, %v3060_v36  ;;  %v3068_v35 = vor.u32 1.1754944e-38, %v3067_v41  ;;  %v4022_v1 = vld [vmem:[%s7247_s3 + $0x283] ss:$0 sm:$0xff] }
 0x9b4   :  { %3404 = vperm.xlu0 %4018, %v2966_v9   ;;  %v3036_v9 = vsub.f32 1.0, %v3035_v38  ;;  %v6870_v40 = vpop.f32.mrf.mxu1 }
 0x9b5   :  { %v6862_v7 = vsel %vm3066_vm0, %v3068_v35, %v3064_v28 }
 0x9b6   :  { %v3072_v60 = vmul.f32 %v7667_v49, %v6862_v7  ;;  %v3070_v36 = vmul.f32 %v7677_v59, %v6862_v7 }
 0x9bb   :  { %3339 = vperm.xlu2 %4017, %v2939_v32   ;;  %3334 = vperm.xlu1 %4016, %v2938_v13   ;;  %v3037_v32 = vmul.f32 %v4169_v44, %v3036_v9 }
 0x9bc   :  { %3419 = vperm.xlu0 %4018, %v2983_v14   ;;  %v7668_v14 = vld [vmem:[#allocation19_spill] sm:$0xff]  ;;  %v6878_v22 = vpop.f32.mrf.mxu1 }
 0x9bd   :  { %v3038_v13 = vadd.f32 %v4169_v44, %v3037_v32  ;;  %v2987_v37 = vmul.f32 %v7668_v14, %v6814_v33  ;;  %v7682_v32 = vld [vmem:[#allocation20_spill] sm:$0xff] }
 0x9bf   :  { %v3042_v0 = vsel %vm3041_vm11, %v4169_v44, %v3038_v13  ;;  %v7678_v44 = vld [vmem:[#allocation22_spill] sm:$0xff]  ;;  %v3011_v13 = vmul.f32 %v7682_v32, %v6829_v31 }
 0x9c3   :  { %3354 = vperm.xlu2 %4017, %v2942_v19   ;;  %3349 = vperm.xlu1 %4016, %v2941_v15   ;;  %v3045_v19 = vand.u32 2147483648, %v2892_v16  ;;  %v7670_v15 = vld [vmem:[#allocation24_spill] sm:$0xff] }
 0x9c4   :  { %3434 = vperm.xlu0 %4018, %v2986_v56   ;;  %v3030_v17 = vmul.f32 %v7670_v15, %v6844_v24  ;;  %v3043_v56 = vand.u32 2147483647, %v2892_v16  ;;  %v6891_v42 = vpop.f32.mrf.mxu1  ;;  %v7676_v16 = vld [vmem:[#allocation59_spill] sm:$0xff] }
 0x9c5   :  { %v3046_v4 = vor.u32 1.1754944e-38, %v3045_v19  ;;  %v3074_v21 = vmul.f32 %v7676_v16, %v6862_v7 }
 0x9c6   :  { %vm3044_vm2 = vcmp.eq.f32.partialorder %v3043_v56, 8.507059e+37 }
 0x9c7   :  { %v6880_v23 = vsel %vm3044_vm2, %v3046_v4, %v3042_v0  ;;  %v7683_v4 = vld [vmem:[#allocation11_spill] sm:$0xff] }
 0x9c8   :  { %v3052_v26 = vmul.f32 %v7673_v48, %v6880_v23  ;;  %v3048_v63 = vmul.f32 %v7674_v8, %v6880_v23  ;;  %v3049_v18 = vmul.f32 %v7678_v44, %v6880_v23  ;;  %v7685_v48 = vld [vmem:[#allocation52_spill] sm:$0xff]  ;;  %v7686_v44 = vld [vmem:[#allocation18_spill] sm:$0xff] }
 0x9cb   :  { %3364 = vperm.xlu2 %4017, %v2944_v43   ;;  %3359 = vperm.xlu1 %4016, %v2943_v58   ;;  %v3026_v43 = vmul.f32 %v7671_v5, %v6844_v24  ;;  %v7672_v58 = vld [vmem:[#allocation45_spill] sm:$0xff]  ;;  %v3008_v5 = vmul.f32 %v7683_v4, %v6829_v31 }
 0x9cc   :  { %3459 = vperm.xlu0 %4018, %v3005_v11   ;;  %v3004_v11 = vmul.f32 %v7672_v58, %v6829_v31 }
 0x9d3   :  { %3379 = vperm.xlu2 %4017, %v2961_v50   ;;  %3369 = vperm.xlu1 %4016, %v2945_v39   ;;  %v3096_v50 = vpop.f32.mrf.mxu0 }
 0x9d4   :  { %3464 = vperm.xlu0 %4018, %v3006_v20   ;;  %v6893_v20 = vadd.f32 %v4022_v1, %v3096_v50 }
 0x9d6   :  { %v3141_v16 = vrot.slane %v6893_v20, 1 }
 0x9db   :  { %3394 = vperm.xlu2 %4017, %v2964_v45   ;;  %3384 = vperm.xlu1 %4016, %v2962_v46   ;;  %v3148_v45 = vperm.slane %v6893_v20, 0 }
 0x9dc   :  { %3504 = vperm.xlu0 %4018, %v3028_v27  }
 0x9dd   :  { %v3165_v62 = vadd.f32 %v3148_v45, %v6858_v55  ;;  %v3164_v27 = vadd.f32 %v3148_v45, %v6846_v34  ;;  %v3166_v6 = vadd.f32 %v3148_v45, %v6870_v40 }
 0x9df   :  { %v3229_v41 = vmax.f32 %v3165_v62, 0.0  ;;  %v3228_v29 = vmax.f32 %v3164_v27, 0.0 }
 0x9e3   :  { %3409 = vperm.xlu2 %4017, %v2967_v61   ;;  %3399 = vperm.xlu1 %4016, %v2965_v2   ;;  %v6908_v61 = vpop.f32.mrf.mxu1  ;;  %v2989_v2 = vmul.f32 %v7679_v52, %v6814_v33  ;;  %v7687_v52 = vld [vmem:[#allocation25_spill] sm:$0xff] }
 0x9e4   :  { %3469 = vperm.xlu0 %4018, %v3007_v3  }
 0x9eb   :  { %3424 = vperm.xlu2 %4017, %v2984_v54   ;;  %3414 = vperm.xlu1 %4016, %v2982_v12   ;;  %v7680_v54 = vld [vmem:[#allocation17_spill] sm:$0xff]  ;;  %v6922_v14 = vpop.f32.mrf.mxu1 }
 0x9ec   :  { %3584 = vperm.xlu0 %4018, %v3072_v60   ;;  %v3050_v53 = vmul.f32 %v7680_v54, %v6880_v23  ;;  %v7681_v12 = vld [vmem:[#allocation13_spill] sm:$0xff]  ;;  %v3167_v60 = vadd.f32 %v3148_v45, %v6878_v22 }
 0x9ed   :  { %v3071_v49 = vmul.f32 %v7681_v12, %v6862_v7 }
 0x9ee   :  { %v3231_v19 = vmax.f32 %v3167_v60, 0.0 }
 0x9f3   :  { %3439 = vperm.xlu2 %4017, %v2987_v37   ;;  %3429 = vperm.xlu1 %4016, %v2985_v30   ;;  %v3230_v37 = vmax.f32 %v3166_v6, 0.0  ;;  %v6938_v62 = vpop.f32.mrf.mxu1 }
 0x9f4   :  { %3514 = vperm.xlu0 %4018, %v3030_v17  }
 0x9f5   :  { %v3300_v25 = vpop.permute.xlu2 %3299 }
 0x9f6   :  { %v3613_v38 = vmul.f32 %v3300_v25, %v3229_v41  ;;  %v3168_v25 = vadd.f32 %v3148_v45, %v6891_v42  ;;  %v3171_v41 = vadd.f32 %v3148_v45, %v6938_v62 }
 0x9f8   :  { %v3232_v50 = vmax.f32 %v3168_v25, 0.0  ;;  %v3235_v6 = vmax.f32 %v3171_v41, 0.0 }
 0x9fb   :  { %3494 = vperm.xlu2 %4017, %v3026_v43   ;;  %3454 = vperm.xlu1 %4016, %v3004_v11   ;;  %v7684_v43 = vld [vmem:[#allocation63_spill] sm:$0xff]  ;;  %v3169_v11 = vadd.f32 %v3148_v45, %v6908_v61 }
 0x9fc   :  { %3554 = vperm.xlu0 %4018, %v3052_v26   ;;  %v3029_v58 = vmul.f32 %v7684_v43, %v6844_v24  ;;  %v3076_v26 = vmul.f32 %v7685_v48, %v6862_v7 }
 0x9fd   :  { %v3310_v39 = vpop.permute.xlu2 %3309 }
 0x9fe   :  { %v3615_v56 = vmul.f32 %v3310_v39, %v3231_v19 }
 0xa03   :  { %3534 = vperm.xlu2 %4017, %v3048_v63   ;;  %3499 = vperm.xlu1 %4016, %v3027_v57   ;;  %v3233_v63 = vmax.f32 %v3169_v11, 0.0 }
 0xa04   :  { %3594 = vperm.xlu0 %4018, %v3074_v21   ;;  %v3142_v21 = vrot.slane %v6893_v20, 2 }
 0xa05   :  { %v3320_v46 = vpop.permute.xlu2 %3319 }
 0xa06   :  { %v3617_v27 = vmul.f32 %v3320_v46, %v3233_v63 }
 0xa0b   :  { %3574 = vperm.xlu2 %4017, %v3070_v36   ;;  %3539 = vperm.xlu1 %4016, %v3049_v18   ;;  %v3170_v36 = vadd.f32 %v3148_v45, %v6922_v14  ;;  %v3073_v18 = vmul.f32 %v7686_v44, %v6862_v7 }
 0xa0c   :  { %3449 = vperm.xlu0 %4018, %v2989_v2   ;;  %v3051_v2 = vmul.f32 %v7687_v52, %v6880_v23 }
 0xa0d   :  { %v3330_v3 = vpop.permute.xlu2 %3329  ;;  %v3295_v51 = vpop.permute.xlu1 %3294 }
 0xa0e   :  { %v6912_v28 = vpop.permute.xlu0 %3344  ;;  %v3612_v35 = vmul.f32 %v3295_v51, %v3228_v29  ;;  %v6946_v51 = vperm.slane %v3141_v16, 0 }
 0xa10   :  { %v3676_v9 = vadd.f32 %v3613_v38, %v3612_v35  ;;  %v6948_v38 = vperm.slane %v3142_v21, 0  ;;  %v3234_v35 = vmax.f32 %v3170_v36, 0.0  ;;  %v3173_v45 = vadd.f32 %v6946_v51, %v6858_v55  ;;  %v7690_v21 = vld [vmem:[#allocation23_spill] sm:$0xff] }
 0xa11   :  { %v3175_v16 = vadd.f32 %v6946_v51, %v6878_v22 }
 0xa12   :  { %v3180_v12 = vadd.f32 %v6948_v38, %v6846_v34  ;;  %v3181_v32 = vadd.f32 %v6948_v38, %v6858_v55  ;;  %v3237_v25 = vmax.f32 %v3173_v45, 0.0  ;;  %v3178_v45 = vadd.f32 %v6946_v51, %v6922_v14 }
 0xa13   :  { %3544 = vperm.xlu2 %4017, %v3050_v53   ;;  %3579 = vperm.xlu1 %4016, %v3071_v49   ;;  %v3619_v49 = vmul.f32 %v3330_v3, %v3235_v6  ;;  %v3239_v44 = vmax.f32 %v3175_v16, 0.0 }
 0xa14   :  { %3489 = vperm.xlu0 %4018, %v3011_v13   ;;  %v3172_v13 = vadd.f32 %v6946_v51, %v6846_v34  ;;  %v3244_v3 = vmax.f32 %v3180_v12, 0.0  ;;  %v3245_v4 = vmax.f32 %v3181_v32, 0.0 }
 0xa15   :  { %v3340_v10 = vpop.permute.xlu2 %3339  ;;  %v3305_v30 = vpop.permute.xlu1 %3304 }
 0xa16   :  { %v3375_v15 = vpop.permute.xlu0 %3374  ;;  %v3614_v17 = vmul.f32 %v3305_v30, %v3230_v37  ;;  %v3174_v37 = vadd.f32 %v6946_v51, %v6870_v40  ;;  %v7688_v30 = vld [vmem:[#allocation26_spill] sm:$0xff] }
 0xa17   :  { %v2988_v19 = vmul.f32 %v7688_v30, %v6814_v33  ;;  %v3628_v48 = vmul.f32 %v3375_v15, %v3244_v3  ;;  %v7694_v3 = vld [vmem:[#allocation34_spill] sm:$0xff] }
 0xa18   :  { %v3677_v0 = vadd.f32 %v3676_v9, %v3614_v17  ;;  %v7689_v17 = vld [vmem:[#allocation28_spill] sm:$0xff]  ;;  %v3238_v43 = vmax.f32 %v3174_v37, 0.0 }
 0xa1a   :  { %v3678_v1 = vadd.f32 %v3677_v0, %v3615_v56  ;;  %v3009_v56 = vmul.f32 %v7689_v17, %v6829_v31  ;;  %v3622_v33 = vmul.f32 %v6912_v28, %v3238_v43 }
 0xa1b   :  { %3474 = vperm.xlu2 %4017, %v3008_v5   ;;  %3509 = vperm.xlu1 %4016, %v3029_v58   ;;  %v3236_v5 = vmax.f32 %v3172_v13, 0.0  ;;  %v3242_v13 = vmax.f32 %v3178_v45, 0.0 }
 0xa1c   :  { %3604 = vperm.xlu0 %4018, %v3076_v26   ;;  %v3621_v26 = vmul.f32 %v3340_v10, %v3237_v25  ;;  %v3176_v10 = vadd.f32 %v6946_v51, %v6891_v42  ;;  %v3054_v25 = vmul.f32 %v7694_v3, %v6880_v23 }
 0xa1d   :  { %v6932_v39 = vpop.permute.xlu2 %3354  ;;  %v3315_v8 = vpop.permute.xlu1 %3314 }
 0xa1e   :  { %v6934_v47 = vpop.permute.xlu0 %3389  ;;  %v3616_v57 = vmul.f32 %v3315_v8, %v3232_v50  ;;  %v3240_v52 = vmax.f32 %v3176_v10, 0.0 }
 0xa20   :  { %v3679_v59 = vadd.f32 %v3678_v1, %v3616_v57  ;;  %v3624_v41 = vmul.f32 %v6932_v39, %v3240_v52 }
 0xa22   :  { %v3680_v29 = vadd.f32 %v3679_v59, %v3617_v27  ;;  %v3010_v27 = vmul.f32 %v7690_v21, %v6829_v31  ;;  %v7691_v59 = vld [vmem:[#allocation65_spill] sm:$0xff]  ;;  %v3177_v31 = vadd.f32 %v6946_v51, %v6908_v61 }
 0xa23   :  { %3589 = vperm.xlu2 %4017, %v3073_v18   ;;  %3549 = vperm.xlu1 %4016, %v3051_v2   ;;  %v3031_v36 = vmul.f32 %v7691_v59, %v6844_v24  ;;  %v7697_v21 = vld [vmem:[#allocation9_spill] sm:$0xff]  ;;  %v3183_v59 = vadd.f32 %v6948_v38, %v6878_v22 }
 0xa25   :  { %v3365_v46 = vpop.permute.xlu2 %3364  ;;  %v3325_v9 = vpop.permute.xlu1 %3324 }
 0xa26   :  { %v6950_v54 = vpop.permute.xlu0 %3404  ;;  %v3618_v53 = vmul.f32 %v3325_v9, %v3234_v35  ;;  %v7692_v9 = vld [vmem:[#allocation14_spill] sm:$0xff]  ;;  %v3626_v30 = vmul.f32 %v3365_v46, %v3242_v13 }
 0xa27   :  { %v3032_v6 = vmul.f32 %v7692_v9, %v6844_v24  ;;  %v3185_v9 = vadd.f32 %v6948_v38, %v6908_v61 }
 0xa28   :  { %v3681_v60 = vadd.f32 %v3680_v29, %v3618_v53  ;;  %v7693_v53 = vld [vmem:[#allocation6_spill] sm:$0xff] }
 0xa29   :  { %v3053_v12 = vmul.f32 %v7693_v53, %v6880_v23  ;;  %v3249_v3 = vmax.f32 %v3185_v9, 0.0 }
 0xa2a   :  { %v3682_v0 = vadd.f32 %v3681_v60, %v3619_v49  ;;  %v3241_v60 = vmax.f32 %v3177_v31, 0.0 }
 0xa2b   :  { %3444 = vperm.xlu2 %4017, %v2988_v19   ;;  %3479 = vperm.xlu1 %4016, %v3009_v56   ;;  %v3179_v56 = vadd.f32 %v6946_v51, %v6938_v62  ;;  %v3182_v51 = vadd.f32 %v6948_v38, %v6870_v40 }
 0xa2c   :  { %v3683_v19 = vrot.slane %v3682_v0, 4 }
 0xa2d   :  { %v3380_v58 = vpop.permute.xlu2 %3379  ;;  %v3335_v11 = vpop.permute.xlu1 %3334 }
 0xa2e   :  { %v6966_v1 = vpop.permute.xlu0 %3419  ;;  %v3629_v50 = vmul.f32 %v3380_v58, %v3245_v4  ;;  %v3620_v8 = vmul.f32 %v3335_v11, %v3236_v5  ;;  %v7695_v4 = vld [vmem:[#allocation39_spill] sm:$0xff]  ;;  %v3684_v11 = vadd.f32 %v3683_v19, %v3682_v0 }
 0xa2f   :  { %v3075_v5 = vmul.f32 %v7695_v4, %v6862_v7 }
 0xa30   :  { %v6969_v63 = vadd.f32 %v3629_v50, %v3628_v48  ;;  %v3689_v57 = vadd.f32 %v3621_v26, %v3620_v8  ;;  %v3243_v48 = vmax.f32 %v3179_v56, 0.0  ;;  %v3685_v8 = vrot.slane %v3684_v11, 2 }
 0xa32   :  { %v3690_v15 = vadd.f32 %v3689_v57, %v3622_v33  ;;  %v7696_v57 = vld [vmem:[#allocation12_spill] sm:$0xff]  ;;  %v3686_v10 = vadd.f32 %v3685_v8, %v3684_v11 }
 0xa33   :  { %3484 = vperm.xlu2 %4017, %v3010_v27   ;;  %3519 = vperm.xlu1 %4016, %v3031_v36   ;;  %v3055_v16 = vmul.f32 %v7696_v57, %v6880_v23  ;;  %v3033_v27 = vmul.f32 %v7697_v21, %v6844_v24  ;;  %v3184_v36 = vadd.f32 %v6948_v38, %v6891_v42 }
 0xa34   :  { %v3687_v53 = vrot.slane %v3686_v10, 1 }
 0xa35   :  { %v3395_v28 = vpop.permute.xlu2 %3394  ;;  %v3350_v18 = vpop.permute.xlu1 %3349  ;;  %v3248_v31 = vmax.f32 %v3184_v36, 0.0 }
 0xa36   :  { %v3623_v2 = vmul.f32 %v3350_v18, %v3239_v44  ;;  %v6980_v29 = vpop.permute.xlu0 %3434  ;;  %v3246_v18 = vmax.f32 %v3182_v51, 0.0 }
 0xa37   :  { %v3632_v13 = vmul.f32 %v3395_v28, %v3248_v31 }
 0xa38   :  { %v3691_v35 = vadd.f32 %v3690_v15, %v3623_v2  ;;  %v3247_v2 = vmax.f32 %v3183_v59, 0.0 }
 0xa3a   :  { %v3692_v49 = vadd.f32 %v3691_v35, %v3624_v41  ;;  %v3143_v35 = vrot.slane %v6893_v20, 3 }
 0xa3b   :  { %3524 = vperm.xlu2 %4017, %v3032_v6   ;;  %3559 = vperm.xlu1 %4016, %v3053_v12   ;;  %v3631_v6 = vmul.f32 %v6934_v47, %v3247_v2  ;;  %v3688_v47 = vadd.f32 %v3687_v53, %v3686_v10  ;;  %v3144_v10 = vrot.slane %v6893_v20, 4  ;;  %v3145_v53 = vrot.slane %v6893_v20, 5 }
 0xa3c   :  { %v7025_v19 = vperm.slane %v3143_v35, 0 }
 0xa3d   :  { %v6990_v39 = vpop.permute.xlu2 %3409  ;;  %v3360_v32 = vpop.permute.xlu1 %3359 }
 0xa3e   :  { %v3625_v37 = vmul.f32 %v3360_v32, %v3241_v60  ;;  %v6998_v43 = vpop.permute.xlu0 %3459  ;;  %v3186_v32 = vadd.f32 %v6948_v38, %v6922_v14  ;;  %v3189_v28 = vadd.f32 %v7025_v19, %v6858_v55  ;;  %v3192_v2 = vadd.f32 %v7025_v19, %v6891_v42 }
 0xa40   :  { %v3693_v17 = vadd.f32 %v3692_v49, %v3625_v37  ;;  %v7698_v49 = vld [vmem:[#allocation15_spill] sm:$0xff]  ;;  %v3253_v57 = vmax.f32 %v3189_v28, 0.0 }
 0xa41   :  { %v3077_v60 = vmul.f32 %v7698_v49, %v6862_v7 }
 0xa42   :  { %v3694_v58 = vadd.f32 %v3693_v17, %v3626_v30  ;;  %v3187_v17 = vadd.f32 %v6948_v38, %v6938_v62 }
 0xa43   :  { %3564 = vperm.xlu2 %4017, %v3054_v25   ;;  %3599 = vperm.xlu1 %4016, %v3075_v5   ;;  %v3250_v5 = vmax.f32 %v3186_v32, 0.0 }
 0xa44   :  { %v3251_v38 = vmax.f32 %v3187_v17, 0.0  ;;  %v7068_v17 = vperm.slane %v3145_v53, 0 }
 0xa45   :  { %v7000_v26 = vpop.permute.xlu2 %3424  ;;  %v3370_v46 = vpop.permute.xlu1 %3369 }
 0xa46   :  { %v3627_v50 = vmul.f32 %v3370_v46, %v3243_v48  ;;  %v7012_v15 = vpop.permute.xlu0 %3464  ;;  %v3634_v48 = vmul.f32 %v6950_v54, %v3250_v5  ;;  %v3635_v8 = vmul.f32 %v6990_v39, %v3251_v38  ;;  %v3191_v39 = vadd.f32 %v7025_v19, %v6878_v22 }
 0xa48   :  { %v3695_v33 = vadd.f32 %v3694_v58, %v3627_v50  ;;  %v3188_v50 = vadd.f32 %v7025_v19, %v6846_v34  ;;  %v3255_v35 = vmax.f32 %v3191_v39, 0.0 }
 0xa4a   :  { %v3696_v0 = vrot.slane %v3695_v33, 4  ;;  %v3252_v21 = vmax.f32 %v3188_v50, 0.0 }
 0xa4b   :  { %3569 = vperm.xlu2 %4017, %v3055_v16   ;;  %3529 = vperm.xlu1 %4016, %v3033_v27  }
 0xa4c   :  { %v3697_v44 = vadd.f32 %v3696_v0, %v3695_v33  ;;  %v3190_v33 = vadd.f32 %v7025_v19, %v6870_v40  ;;  %v3637_v0 = vmul.f32 %v6966_v1, %v3253_v57  ;;  %v3193_v1 = vadd.f32 %v7025_v19, %v6908_v61 }
 0xa4d   :  { %v7014_v52 = vpop.permute.xlu2 %3439  ;;  %v3385_v23 = vpop.permute.xlu1 %3384 }
 0xa4e   :  { %v3698_v41 = vrot.slane %v3697_v44, 2  ;;  %v3630_v24 = vmul.f32 %v3385_v23, %v3246_v18  ;;  %v7034_v11 = vpop.permute.xlu0 %3504  ;;  %v3254_v54 = vmax.f32 %v3190_v33, 0.0  ;;  %v3257_v49 = vmax.f32 %v3193_v1, 0.0 }
 0xa50   :  { %v3699_v12 = vadd.f32 %v3698_v41, %v3697_v44  ;;  %v3703_v45 = vadd.f32 %v6969_v63, %v3630_v24  ;;  %v3638_v44 = vmul.f32 %v7000_v26, %v3254_v54  ;;  %v7053_v24 = vperm.slane %v3144_v10, 0 }
 0xa51   :  { %v3256_v26 = vmax.f32 %v3192_v2, 0.0  ;;  %v3194_v2 = vadd.f32 %v7025_v19, %v6922_v14 }
 0xa52   :  { %v3700_v37 = vrot.slane %v3699_v12, 1  ;;  %v3704_v30 = vadd.f32 %v3703_v45, %v3631_v6  ;;  %v3196_v32 = vadd.f32 %v7053_v24, %v6846_v34 }
 0xa53   :  { %3609 = vperm.xlu1 %4016, %v3077_v60   ;;  %v3640_v45 = vmul.f32 %v6980_v29, %v3256_v26  ;;  %v3195_v26 = vadd.f32 %v7025_v19, %v6938_v62 }
 0xa54   :  { %v3701_v56 = vadd.f32 %v3700_v37, %v3699_v12  ;;  %v3705_v25 = vadd.f32 %v3704_v30, %v3632_v13  ;;  %v3197_v12 = vadd.f32 %v7053_v24, %v6858_v55  ;;  %v3641_v13 = vmul.f32 %v7014_v52, %v3257_v49 }
 0xa55   :  { %v3495_v63 = vpop.permute.xlu2 %3494  ;;  %v3400_v4 = vpop.permute.xlu1 %3399  ;;  %v3205_v52 = vadd.f32 %v7068_v17, %v6858_v55  ;;  %v3259_v49 = vmax.f32 %v3195_v26, 0.0 }
 0xa56   :  { %v7030_v7 = vsel %vm2271_vm1, %v3701_v56, %v3688_v47  ;;  %v3633_v58 = vmul.f32 %v3400_v4, %v3249_v3  ;;  %v7049_v23 = vpop.permute.xlu0 %3469  ;;  %v3261_v47 = vmax.f32 %v3197_v12, 0.0  ;;  %v3260_v56 = vmax.f32 %v3196_v32, 0.0 }
 0xa57   :  { %v3269_v50 = vmax.f32 %v3205_v52, 0.0  ;;  %v3146_v32 = vrot.slane %v6893_v20, 6 }
 0xa58   :  { %v3706_v46 = vadd.f32 %v3705_v25, %v3633_v58  ;;  %v3645_v4 = vmul.f32 %v6998_v43, %v3261_v47  ;;  %v3204_v58 = vadd.f32 %v7068_v17, %v6846_v34 }
 0xa5a   :  { %v3707_v51 = vadd.f32 %v3706_v46, %v3634_v48  ;;  %v3268_v38 = vmax.f32 %v3204_v58, 0.0  ;;  %v3201_v58 = vadd.f32 %v7053_v24, %v6908_v61 }
 0xa5c   :  { %v3708_v16 = vadd.f32 %v3707_v51, %v3635_v8  ;;  %v3652_v51 = vmul.f32 %v3495_v63, %v3268_v38 }
 0xa5d   :  { %v7042_v27 = vpop.permute.xlu2 %3534  ;;  %v3415_v59 = vpop.permute.xlu1 %3414 }
 0xa5e   :  { %v3636_v36 = vmul.f32 %v3415_v59, %v3252_v21  ;;  %v7066_v30 = vpop.permute.xlu0 %3584  ;;  %v3709_v28 = vrot.slane %v3708_v16, 4 }
 0xa60   :  { %v3715_v18 = vadd.f32 %v3637_v0, %v3636_v36  ;;  %v3710_v46 = vadd.f32 %v3709_v28, %v3708_v16  ;;  %v7111_v28 = vperm.slane %v3146_v32, 0 }
 0xa62   :  { %v3716_v41 = vadd.f32 %v3715_v18, %v3638_v44  ;;  %v3711_v43 = vrot.slane %v3710_v46, 2  ;;  %v3215_v32 = vadd.f32 %v7111_v28, %v6878_v22 }
 0xa64   :  { %v3712_v0 = vadd.f32 %v3711_v43, %v3710_v46 }
 0xa65   :  { %v7057_v31 = vpop.permute.xlu2 %3574  ;;  %v3430_v9 = vpop.permute.xlu1 %3429 }
 0xa66   :  { %v3639_v6 = vmul.f32 %v3430_v9, %v3255_v35  ;;  %v7077_v8 = vpop.permute.xlu0 %3514  ;;  %v3713_v10 = vrot.slane %v3712_v0, 1  ;;  %v3258_v35 = vmax.f32 %v3194_v2, 0.0  ;;  %v3198_v9 = vadd.f32 %v7053_v24, %v6870_v40 }
 0xa68   :  { %v3717_v60 = vadd.f32 %v3716_v41, %v3639_v6  ;;  %v3714_v18 = vadd.f32 %v3713_v10, %v3712_v0  ;;  %v3262_v12 = vmax.f32 %v3198_v9, 0.0 }
 0xa6a   :  { %v3718_v37 = vadd.f32 %v3717_v60, %v3640_v45  ;;  %v7091_v39 = vsel %vm2273_vm3, %v3714_v18, %v7030_v7  ;;  %v3199_v7 = vadd.f32 %v7053_v24, %v6878_v22  ;;  %v3200_v45 = vadd.f32 %v7053_v24, %v6891_v42 }
 0xa6b   :  { %v3212_v18 = vadd.f32 %v7111_v28, %v6846_v34 }
 0xa6c   :  { %v3719_v3 = vadd.f32 %v3718_v37, %v3641_v13  ;;  %v3646_v37 = vmul.f32 %v7012_v15, %v3262_v12  ;;  %v3264_v19 = vmax.f32 %v3200_v45, 0.0  ;;  %v121_v15 = vld [vmem:[%s7247_s3 + $0x278] sm:$0xff] }
 0xa6d   :  { %v3455_v25 = vpop.permute.xlu1 %3454  ;;  %v7071_v29 = vpop.permute.xlu2 %3544  ;;  %3797 = vmatpush.msrb.mxu2 %v121_v15  ;;  %v3276_v45 = vmax.f32 %v3212_v18, 0.0 }
 0xa6e   :  { %v3644_v5 = vmul.f32 %v3455_v25, %v3260_v56  ;;  %v7083_v36 = vpop.permute.xlu0 %3554  ;;  %v3263_v56 = vmax.f32 %v3199_v7, 0.0 }
 0xa70   :  { %v3728_v48 = vadd.f32 %v3645_v4, %v3644_v5  ;;  %v3647_v52 = vmul.f32 %v7049_v23, %v3263_v56  ;;  %v119_v23 = vld [vmem:[%s7247_s3 + $0x268] sm:$0xff]  ;;  %v3660_v56 = vmul.f32 %v7042_v27, %v3276_v45  ;;  %v3217_v27 = vadd.f32 %v7111_v28, %v6908_v61 }
 0xa72   :  { %v3729_v25 = vadd.f32 %v3728_v48, %v3646_v37  ;;  %v120_v48 = vld [vmem:[%s7247_s3 + $0x270] sm:$0xff] }
 0xa73   :  { %3798 = vmatpush.msrb.mxu2 %v120_v48 }
 0xa74   :  { %v3730_v46 = vadd.f32 %v3729_v25, %v3647_v52  ;;  %v3206_v52 = vadd.f32 %v7068_v17, %v6870_v40 }
 0xa75   :  { %v3500_v33 = vpop.permute.xlu1 %3499  ;;  %v3475_v59 = vpop.permute.xlu2 %3474  ;;  %3799 = vmatpush.msrb.mxu2 %v119_v23 }
 0xa76   :  { %v3653_v57 = vmul.f32 %v3500_v33, %v3269_v50  ;;  %v7093_v63 = vpop.permute.xlu0 %3594  ;;  %v3648_v38 = vmul.f32 %v3475_v59, %v3264_v19  ;;  %v3203_v50 = vadd.f32 %v7053_v24, %v6938_v62 }
 0xa78   :  { %v7079_v21 = vadd.f32 %v3653_v57, %v3652_v51  ;;  %v3265_v51 = vmax.f32 %v3201_v58, 0.0  ;;  %v3213_v57 = vadd.f32 %v7111_v28, %v6858_v55  ;;  %v3731_v59 = vadd.f32 %v3730_v46, %v3648_v38 }
 0xa79   :  { %v3279_v58 = vmax.f32 %v3215_v32, 0.0 }
 0xa7a   :  { %v3277_v26 = vmax.f32 %v3213_v57, 0.0  ;;  %v3270_v57 = vmax.f32 %v3206_v52, 0.0  ;;  %v3219_v52 = vadd.f32 %v7111_v28, %v6938_v62 }
 0xa7d   :  { %v7081_v54 = vpop.permute.xlu1 %3539  ;;  %v7085_v44 = vpop.permute.xlu2 %3589 }
 0xa7e   :  { %v3450_v53 = vpop.permute.xlu0 %3449 }
 0xa7f   :  { %v3643_v47 = vmul.f32 %v3450_v53, %v3259_v49  ;;  %v3214_v49 = vadd.f32 %v7111_v28, %v6870_v40 }
 0xa85   :  { %v7087_v16 = vpop.permute.xlu1 %3579  ;;  %v3445_v41 = vpop.permute.xlu2 %3444 }
 0xa86   :  { %v3642_v6 = vmul.f32 %v3445_v41, %v3258_v35  ;;  %v3490_v2 = vpop.permute.xlu0 %3489 }
 0xa88   :  { %v3720_v60 = vadd.f32 %v3719_v3, %v3642_v6  ;;  %v3202_v3 = vadd.f32 %v7053_v24, %v6922_v14  ;;  %v3267_v24 = vmax.f32 %v3203_v50, 0.0  ;;  %v3147_v6 = vrot.slane %v6893_v20, 7 }
 0xa8a   :  { %v3721_v4 = vadd.f32 %v3720_v60, %v3643_v47  ;;  %v3266_v0 = vmax.f32 %v3202_v3, 0.0  ;;  %v3651_v7 = vmul.f32 %v3490_v2, %v3267_v24  ;;  %v3661_v60 = vmul.f32 %v7081_v54, %v3277_v26  ;;  %v116_v26 = vld [vmem:[%s7247_s3 + $0x250] sm:$0xff] }
 0xa8b   :  { %v7142_v20 = vperm.slane %v3147_v6, 0  ;;  %v3216_v3 = vadd.f32 %v7111_v28, %v6891_v42  ;;  %v3281_v2 = vmax.f32 %v3217_v27, 0.0 }
 0xa8c   :  { %v3722_v33 = vrot.slane %v3721_v4, 4 }
 0xa8d   :  { %v7097_v1 = vpop.permute.xlu1 %3509  ;;  %v3485_v5 = vpop.permute.xlu2 %3484  ;;  %v3220_v46 = vadd.f32 %v7142_v20, %v6846_v34  ;;  %v3221_v50 = vadd.f32 %v7142_v20, %v6858_v55  ;;  %v117_v34 = vld [vmem:[%s7247_s3 + $0x258] sm:$0xff]  ;;  %v3208_v55 = vadd.f32 %v7068_v17, %v6891_v42 }
 0xa8e   :  { %v3723_v41 = vadd.f32 %v3722_v33, %v3721_v4  ;;  %v3650_v35 = vmul.f32 %v3485_v5, %v3266_v0  ;;  %v3278_v4 = vmax.f32 %v3214_v49, 0.0  ;;  %v3754_v5 = vadd.f32 %v3661_v60, %v3660_v56  ;;  %v118_v0 = vld [vmem:[%s7247_s3 + $0x260] sm:$0xff] }
 0xa8f   :  { %v3207_v33 = vadd.f32 %v7068_v17, %v6878_v22  ;;  %3800 = vmatpush.msrb.mxu2 %v118_v0  ;;  %v3654_v49 = vmul.f32 %v7034_v11, %v3270_v57  ;;  %v114_v11 = vld [vmem:[%s7247_s3 + $0x240] sm:$0xff] }
 0xa90   :  { %v3724_v37 = vrot.slane %v3723_v41, 2  ;;  %v3662_v15 = vmul.f32 %v7071_v29, %v3278_v4  ;;  %v3272_v4 = vmax.f32 %v3208_v55, 0.0 }
 0xa91   :  { %3801 = vmatpush.msrb.mxu2 %v117_v34 }
 0xa92   :  { %v3725_v38 = vadd.f32 %v3724_v37, %v3723_v41  ;;  %v3755_v23 = vadd.f32 %v3754_v5, %v3662_v15  ;;  %v3285_v41 = vmax.f32 %v3221_v50, 0.0  ;;  %v3210_v50 = vadd.f32 %v7068_v17, %v6922_v14 }
 0xa93   :  { %3802 = vmatpush.msrb.mxu2 %v116_v26 }
 0xa94   :  { %v3726_v29 = vrot.slane %v3725_v38, 1  ;;  %v3669_v32 = vmul.f32 %v7087_v16, %v3285_v41  ;;  %v3223_v16 = vadd.f32 %v7142_v20, %v6878_v22  ;;  %v3274_v34 = vmax.f32 %v3210_v50, 0.0  ;;  %v109_v41 = vld [vmem:[%s7247_s3 + $0x218] sm:$0xff] }
 0xa95   :  { %v3550_v13 = vpop.permute.xlu1 %3549  ;;  %v7132_v53 = vpop.permute.xlu2 %3524 }
 0xa96   :  { %v3663_v48 = vmul.f32 %v3550_v13, %v3279_v58  ;;  %v3727_v60 = vadd.f32 %v3726_v29, %v3725_v38  ;;  %v3742_v58 = vadd.f32 %v7079_v21, %v3654_v49  ;;  %v3287_v57 = vmax.f32 %v3223_v16, 0.0 }
 0xa98   :  { %v3756_v18 = vadd.f32 %v3755_v23, %v3663_v48  ;;  %v3791_v21 = vsel %vm2275_vm8, %v3727_v60, %v7091_v39  ;;  %v112_v39 = vld [vmem:[%s7247_s3 + $0x230] sm:$0xff]  ;;  %v3224_v23 = vadd.f32 %v7142_v20, %v6891_v42  ;;  %v3671_v42 = vmul.f32 %v7085_v44, %v3287_v57 }
 0xa99   :  { %v3226_v44 = vadd.f32 %v7142_v20, %v6922_v14  ;;  %v3227_v60 = vadd.f32 %v7142_v20, %v6938_v62 }
 0xa9d   :  { %v3480_v43 = vpop.permute.xlu1 %3479  ;;  %v3565_v13 = vpop.permute.xlu2 %3564 }
 0xa9e   :  { %v3649_v10 = vmul.f32 %v3480_v43, %v3265_v51  ;;  %v3222_v43 = vadd.f32 %v7142_v20, %v6870_v40  ;;  %v3284_v40 = vmax.f32 %v3220_v46, 0.0  ;;  %v3656_v46 = vmul.f32 %v7077_v8, %v3272_v4 }
 0xa9f   :  { %v3225_v8 = vadd.f32 %v7142_v20, %v6908_v61 }
 0xaa0   :  { %v3732_v9 = vadd.f32 %v3731_v59, %v3649_v10  ;;  %v3280_v10 = vmax.f32 %v3216_v3, 0.0  ;;  %v3668_v5 = vmul.f32 %v7057_v31, %v3284_v40  ;;  %v113_v31 = vld [vmem:[%s7247_s3 + $0x238] sm:$0xff] }
 0xaa2   :  { %v3733_v12 = vadd.f32 %v3732_v9, %v3650_v35  ;;  %v3271_v35 = vmax.f32 %v3207_v33, 0.0  ;;  %v3664_v6 = vmul.f32 %v7083_v36, %v3280_v10  ;;  %v110_v10 = vld [vmem:[%s7247_s3 + $0x220] sm:$0xff] }
 0xaa4   :  { %v3734_v47 = vadd.f32 %v3733_v12, %v3651_v7  ;;  %v3218_v7 = vadd.f32 %v7111_v28, %v6922_v14  ;;  %v3209_v12 = vadd.f32 %v7068_v17, %v6908_v61  ;;  %v3655_v37 = vmul.f32 %v7097_v1, %v3271_v35  ;;  %v107_v14 = vld [vmem:[%s7247_s3 + $0x208] sm:$0xff] }
 0xaa5   :  { %v7140_v25 = vpop.permute.xlu1 %3519  ;;  %v3757_v56 = vadd.f32 %v3756_v18, %v3664_v6  ;;  %v3570_v33 = vpop.permute.xlu2 %3569  ;;  %v3288_v18 = vmax.f32 %v3224_v23, 0.0  ;;  %v3658_v61 = vmul.f32 %v7132_v53, %v3274_v34  ;;  %v108_v53 = vld [vmem:[%s7247_s3 + $0x210] sm:$0xff]  ;;  %v4023_v23 = vld [vmem:[%s7247_s3 + $0x284] ss:$0 sm:$0xff] }
 0xaa6   :  { %v3735_v19 = vrot.slane %v3734_v47, 4  ;;  %v3282_v1 = vmax.f32 %v3218_v7, 0.0  ;;  %v3743_v3 = vadd.f32 %v3742_v58, %v3655_v37  ;;  %v3273_v15 = vmax.f32 %v3209_v12, 0.0 }
 0xaa8   :  { %v3736_v54 = vadd.f32 %v3735_v19, %v3734_v47  ;;  %v115_v47 = vld [vmem:[%s7247_s3 + $0x248] sm:$0xff]  ;;  %v3286_v19 = vmax.f32 %v3222_v43, 0.0  ;;  %v3666_v48 = vmul.f32 %v3565_v13, %v3282_v1  ;;  %v3283_v43 = vmax.f32 %v3219_v52, 0.0 }
 0xaa9   :  { %3803 = vmatpush.msrb.mxu2 %v115_v47  ;;  %v3744_v13 = vadd.f32 %v3743_v3, %v3656_v46 }
 0xaaa   :  { %v3737_v51 = vrot.slane %v3736_v54, 2  ;;  %v3670_v28 = vmul.f32 %v7066_v30, %v3286_v19  ;;  %v3667_v0 = vmul.f32 %v3570_v33, %v3283_v43 }
 0xaab   :  { %3804 = vmatpush.msrb.mxu2 %v114_v11 }
 0xaac   :  { %v3738_v59 = vadd.f32 %v3737_v51, %v3736_v54  ;;  %v3767_v54 = vadd.f32 %v3669_v32, %v3668_v5  ;;  %v3657_v51 = vmul.f32 %v7140_v25, %v3273_v15  ;;  %v111_v25 = vld [vmem:[%s7247_s3 + $0x228] sm:$0xff]  ;;  %v3605_v32 = vpop.permute.xlu0 %3604  ;;  %v3291_v5 = vmax.f32 %v3227_v60, 0.0 }
 0xaad   :  { %v3560_v24 = vpop.permute.xlu1 %3559  ;;  %3805 = vmatpush.msrb.mxu2 %v113_v31 }
 0xaae   :  { %v3739_v9 = vrot.slane %v3738_v59, 1  ;;  %v3665_v45 = vmul.f32 %v3560_v24, %v3281_v2  ;;  %v3768_v30 = vadd.f32 %v3767_v54, %v3670_v28  ;;  %v3745_v55 = vadd.f32 %v3744_v13, %v3657_v51 }
 0xaaf   :  { %3806 = vmatpush.msrb.mxu2 %v112_v39 }
 0xab0   :  { %v3740_v36 = vadd.f32 %v3739_v9, %v3738_v59  ;;  %v3758_v38 = vadd.f32 %v3757_v56, %v3665_v45  ;;  %v3211_v59 = vadd.f32 %v7068_v17, %v6938_v62  ;;  %v3289_v17 = vmax.f32 %v3225_v8, 0.0 }
 0xab1   :  { %3807 = vmatpush.msrb.mxu2 %v111_v25  ;;  %v3769_v24 = vadd.f32 %v3768_v30, %v3671_v42  ;;  %v3672_v9 = vmul.f32 %v7093_v63, %v3288_v18  ;;  %v3746_v6 = vadd.f32 %v3745_v55, %v3658_v61  ;;  %v3290_v63 = vmax.f32 %v3226_v44, 0.0 }
 0xab2   :  { %v7196_v22 = vsel %vm2277_vm14, %v3740_v36, %v3791_v21  ;;  %v3759_v29 = vadd.f32 %v3758_v38, %v3666_v48  ;;  %v3275_v40 = vmax.f32 %v3211_v59, 0.0  ;;  %v106_v36 = vld [vmem:[%s7247_s3 + $0x200] sm:$0xff] }
 0xab3   :  { %3808 = vmatpush.msrb.mxu2 %v110_v10  ;;  %v3770_v45 = vadd.f32 %v3769_v24, %v3672_v9  ;;  %v3674_v19 = vmul.f32 %v3605_v32, %v3290_v63 }
 0xab4   :  { %v3760_v2 = vadd.f32 %v3759_v29, %v3667_v0 }
 0xab5   :  { %v3600_v27 = vpop.permute.xlu1 %3599  ;;  %3809 = vmatpush.msrb.mxu2 %v109_v41 }
 0xab6   :  { %v3673_v26 = vmul.f32 %v3600_v27, %v3289_v17  ;;  %v3761_v12 = vrot.slane %v3760_v2, 4 }
 0xab7   :  { %3810 = vmatpush.msrb.mxu2 %v108_v53 }
 0xab8   :  { %v3771_v37 = vadd.f32 %v3770_v45, %v3673_v26  ;;  %v3762_v56 = vadd.f32 %v3761_v12, %v3760_v2 }
 0xab9   :  { %3811 = vmatpush.msrb.mxu2 %v107_v14 }
 0xaba   :  { %v3772_v20 = vadd.f32 %v3771_v37, %v3674_v19  ;;  %v3763_v16 = vrot.slane %v3762_v56, 2 }
 0xabb   :  { %3812 = vmatpush.msrb.mxu2 %v106_v36 }
 0xabc   :  { %v3764_v3 = vadd.f32 %v3763_v16, %v3762_v56 }
 0xabd   :  { %v3530_v35 = vpop.permute.xlu1 %3529 }
 0xabe   :  { %v3659_v7 = vmul.f32 %v3530_v35, %v3275_v40  ;;  %v3765_v27 = vrot.slane %v3764_v3, 1 }
 0xac0   :  { %v3747_v49 = vadd.f32 %v3746_v6, %v3659_v7  ;;  %v3766_v50 = vadd.f32 %v3765_v27, %v3764_v3 }
 0xac2   :  { %v3748_v47 = vrot.slane %v3747_v49, 4 }
 0xac4   :  { %v3749_v4 = vadd.f32 %v3748_v47, %v3747_v49 }
 0xac5   :  { %v3610_v58 = vpop.permute.xlu1 %3609 }
 0xac6   :  { %v3750_v62 = vrot.slane %v3749_v4, 2  ;;  %v3675_v11 = vmul.f32 %v3610_v58, %v3291_v5 }
 0xac8   :  { %v3751_v1 = vadd.f32 %v3750_v62, %v3749_v4  ;;  %v3773_v52 = vadd.f32 %v3772_v20, %v3675_v11 }
 0xaca   :  { %v3752_v38 = vrot.slane %v3751_v1, 1  ;;  %v3774_v54 = vrot.slane %v3773_v52, 4 }
 0xacc   :  { %v3753_v15 = vadd.f32 %v3752_v38, %v3751_v1  ;;  %v3775_v31 = vadd.f32 %v3774_v54, %v3773_v52 }
 0xace   :  { %v3776_v21 = vrot.slane %v3775_v31, 2  ;;  %v3793_v48 = vsel %vm2279_vm9, %v3753_v15, %v7196_v22 }
 0xacf   :  { %v3794_v51 = vsel %vm2281_vm7, %v3766_v50, %v3793_v48 }
 0xad0   :  { %v3777_v28 = vadd.f32 %v3776_v21, %v3775_v31 }
 0xad2   :  { %v3778_v46 = vrot.slane %v3777_v28, 1 }
 0xad4   :  { %v3779_v33 = vadd.f32 %v3778_v46, %v3777_v28 }
 0xad6   :  { %v3795_v39 = vsel %vm2283_vm4, %v3779_v33, %v3794_v51 }
 0xad7   :  { %3813 = vmatmul.f32.vlgmr.msrb.gmra.mxu2 %v3795_v39 }
 0xb5a   :  { %v3814_v57 = vpop.f32.mrf.mxu2 }
 0xb5b   :  { %v3815_v43 = vadd.f32 %v4023_v23, %v3814_v57 }
 0xb5d   :  { %3817 = vst [vmem:[%s7251_s4] sm:$0xff] %v3815_v43 }

</bundles_post_ra>
